<compile_context>
chip_gen: v7x
topology: tpu7x:2x2x1
jax: 0.10.0
libtpu: 0.0.40
codegen_flags: <defaults>
</compile_context>

<pallas_src>
import functools

import jax
import jax.numpy as jnp
from jax import lax
from jax.experimental import pallas as pl
from jax.experimental.pallas import tpu as pltpu


# --------------------------------------------------------------------------
# Fused kernel: one grid step == one batch element.
#   x_ref     : (1, N, Cin)     channels-last input tile
#   w1_ref    : (Cin, hidden)   fc1 weight with BN1 scale folded in
#   shift1_ref: (1, hidden)     folded fc1 bias + BN1 shift
#   dw_ref    : (9, 1, hidden)  depthwise taps with BN2 scale folded in
#   shift2_ref: (1, hidden)     folded dw bias + BN2 shift
#   mask_ref  : (N, 8)          0/1 boundary masks for the 8 non-centre taps
#   w2_ref    : (C_out, hidden) fc2 weight
#   b2_ref    : (C_out, 1)      fc2 bias
#   o_ref     : (1, C_out, N)   channels-first output tile (lane-dense store)
# --------------------------------------------------------------------------
def _mlp_fused_kernel(x_ref, w1_ref, shift1_ref, dw_ref, shift2_ref, mask_ref,
                      w2_ref, b2_ref, o_ref, *, H, W):
    N = H * W

    # ---- fc1 (+ folded BN1) ------------------------------------------------
    x = x_ref[0]                                                  # (N, Cin)
    h = jnp.dot(x, w1_ref[...], preferred_element_type=jnp.float32)
    h = h + shift1_ref[...]                                       # (N, hidden)

    # ---- depthwise 3x3 (+ folded BN2) + ReLU -------------------------------
    taps = dw_ref[...]                                            # (9, 1, C)
    emask = mask_ref[...]                                         # (N, 8)
    acc = h * taps[4]                                             # centre tap
    t = 0
    for di in (-1, 0, 1):
        for dj in (-1, 0, 1):
            if di == 0 and dj == 0:
                continue
            off = di * W + dj                                     # static
            shifted = pltpu.roll(h, shift=(-off) % N, axis=0)     # sublane roll
            tap = taps[(di + 1) * 3 + (dj + 1)]                   # (1, C)
            m = emask[:, t:t + 1]                                 # (N, 1)
            acc = acc + (shifted * tap) * m
            t += 1
    acc = acc + shift2_ref[...]                                   # BN2 shift
    act = jnp.maximum(acc, 0.0)                                   # ReLU

    # ---- fc2 ('oh,nh->on': lane-dense (C_out, N) result) -------------------
    out = lax.dot_general(w2_ref[...], act,
                          dimension_numbers=(((1,), (1,)), ((), ())),
                          preferred_element_type=jnp.float32)
    out = out + b2_ref[...]                                       # (C_out, 1)
    o_ref[0] = out.astype(o_ref.dtype)


# --------------------------------------------------------------------------
# Host wrapper: folds BN into weights, builds boundary masks, launches kernel.
# --------------------------------------------------------------------------
def mlp_forward(x, p, H, W):
    eps = 1e-5
    B, C_in, N = x.shape
    assert N == H * W
    hidden = p['fc1_w'].shape[0]
    C_out = p['fc2_w'].shape[0]
    f32 = jnp.float32

    # fold BN1 into fc1 weight / shift
    s1 = p['bn1_gamma'] / jnp.sqrt(p['bn1_var'] + eps)
    w1f = (p['fc1_w'] * s1[:, None]).T                            # (Cin, hidden)
    shift1 = (s1 * (p['fc1_b'] - p['bn1_mean']) + p['bn1_beta']).reshape(1, hidden)

    # fold BN2 into the 9 depthwise taps / shift
    s2 = p['bn2_gamma'] / jnp.sqrt(p['bn2_var'] + eps)
    dw9 = jnp.transpose(p['dw_w'][:, 0].reshape(hidden, 9), (1, 0))  # (9, hidden)
    dw9f = (dw9 * s2[None, :]).reshape(9, 1, hidden)
    shift2 = (s2 * (p['dw_b'] - p['bn2_mean']) + p['bn2_beta']).reshape(1, hidden)

    # fc2 (plain bias)
    w2 = p['fc2_w']                                               # (C_out, hidden)
    b2 = p['fc2_b'].reshape(C_out, 1)

    # host-precomputed 0/1 boundary masks for the 8 non-centre taps
    rows = jnp.arange(N) // W
    cols = jnp.arange(N) % W
    masks = []
    for di in (-1, 0, 1):
        for dj in (-1, 0, 1):
            if di == 0 and dj == 0:
                continue
            valid = ((rows + di >= 0) & (rows + di < H) &
                     (cols + dj >= 0) & (cols + dj < W))
            masks.append(valid.astype(f32))
    edge_masks = jnp.stack(masks, axis=1)                         # (N, 8)

    # channels-last input for the kernel (layout plumbing on the smallest tensor)
    x_nc = jnp.transpose(x, (0, 2, 1))                            # (B, N, Cin)

    kernel = functools.partial(_mlp_fused_kernel, H=H, W=W)
    return pl.pallas_call(
        kernel,
        out_shape=jax.ShapeDtypeStruct((B, C_out, N), x.dtype),
        grid=(B,),
        in_specs=[
            pl.BlockSpec((1, N, C_in), lambda b: (b, 0, 0)),      # streamed
            pl.BlockSpec((C_in, hidden), lambda b: (0, 0)),       # resident
            pl.BlockSpec((1, hidden), lambda b: (0, 0)),
            pl.BlockSpec((9, 1, hidden), lambda b: (0, 0, 0)),
            pl.BlockSpec((1, hidden), lambda b: (0, 0)),
            pl.BlockSpec((N, 8), lambda b: (0, 0)),
            pl.BlockSpec((C_out, hidden), lambda b: (0, 0)),
            pl.BlockSpec((C_out, 1), lambda b: (0, 0)),
        ],
        out_specs=pl.BlockSpec((1, C_out, N), lambda b: (b, 0, 0)),
        compiler_params=pltpu.CompilerParams(
            dimension_semantics=("parallel",)),
    )(x_nc, w1f, shift1, dw9f, shift2, edge_masks, w2, b2)


# --------------------------------------------------------------------------
# Pure-JAX reference (for correctness check).
# --------------------------------------------------------------------------
def ref_forward(x, p, H, W):
    eps = 1e-5
    B = x.shape[0]
    y = jnp.einsum('oc,bcn->bon', p['fc1_w'], x) + p['fc1_b'][None, :, None]
    s1 = p['bn1_gamma'] / jnp.sqrt(p['bn1_var'] + eps)
    y = s1[None, :, None] * (y - p['bn1_mean'][None, :, None]) \
        + p['bn1_beta'][None, :, None]
    C = y.shape[1]
    img = y.reshape(B, C, H, W)
    dw = lax.conv_general_dilated(
        img, p['dw_w'], window_strides=(1, 1), padding='SAME',
        feature_group_count=C,
        dimension_numbers=('NCHW', 'OIHW', 'NCHW')) + p['dw_b'][None, :, None, None]
    s2 = p['bn2_gamma'] / jnp.sqrt(p['bn2_var'] + eps)
    dw = s2[None, :, None, None] * (dw - p['bn2_mean'][None, :, None, None]) \
        + p['bn2_beta'][None, :, None, None]
    dw = jnp.maximum(dw, 0.0)
    z = dw.reshape(B, C, -1)
    return jnp.einsum('oc,bcn->bon', p['fc2_w'], z) + p['fc2_b'][None, :, None]


if __name__ == "__main__":
    # Small but lane-friendly demo shapes (hidden = 128 keeps the channels-last
    # layout lane-dense; N = 256 keeps the output store lane-dense).
    B, C_in, H, W = 2, 32, 16, 16
    hidden, out_f = 128, 32
    N = H * W
    f32 = jnp.float32

    ks = jax.random.split(jax.random.PRNGKey(0), 12)
    params = dict(
        # Conv1d weights: trunc_normal(std=0.02)-style; Conv1d biases -> 0
        fc1_w=0.02 * jax.random.normal(ks[0], (hidden, C_in), f32),
        fc1_b=jnp.zeros((hidden,), f32),
        fc2_w=0.02 * jax.random.normal(ks[11], (out_f, hidden), f32),
        fc2_b=jnp.zeros((out_f,), f32),
        # depthwise Conv2d(dim, dim, 3, groups=dim): weight (dim, 1, 3, 3)
        dw_w=0.1 * jax.random.normal(ks[1], (hidden, 1, 3, 3), f32),
        dw_b=0.05 * jax.random.normal(ks[2], (hidden,), f32),
        # BatchNorm params + running stats (inference mode)
        bn1_gamma=1.0 + 0.1 * jax.random.normal(ks[3], (hidden,), f32),
        bn1_beta=0.1 * jax.random.normal(ks[4], (hidden,), f32),
        bn1_mean=0.1 * jax.random.normal(ks[5], (hidden,), f32),
        bn1_var=0.5 + jnp.abs(jax.random.normal(ks[6], (hidden,), f32)),
        bn2_gamma=1.0 + 0.1 * jax.random.normal(ks[7], (hidden,), f32),
        bn2_beta=0.1 * jax.random.normal(ks[8], (hidden,), f32),
        bn2_mean=0.1 * jax.random.normal(ks[9], (hidden,), f32),
        bn2_var=0.5 + jnp.abs(jax.random.normal(ks[10], (hidden,), f32)),
    )

    x = jax.random.normal(jax.random.PRNGKey(1), (B, C_in, N), f32)

    out = jax.block_until_ready(mlp_forward(x, params, H, W))
    assert out.shape == (B, out_f, N), out.shape

    ref = ref_forward(x, params, H, W)
    err = float(jnp.max(jnp.abs(out - ref)))
    assert err < 2e-3, f"max abs err {err}"

    print("KERNEL_OK")
</pallas_src>

<mosaic_0001>
module attributes {stable_mosaic.version = 11 : i64} {
  func.func @_mlp_fused_kernel(%arg0: i32, %arg1: memref<1x256x32xf32, #tpu.memory_space<vmem>>, %arg2: memref<32x128xf32, #tpu.memory_space<vmem>>, %arg3: memref<1x128xf32, #tpu.memory_space<vmem>>, %arg4: memref<9x1x128xf32, #tpu.memory_space<vmem>>, %arg5: memref<1x128xf32, #tpu.memory_space<vmem>>, %arg6: memref<256x8xf32, #tpu.memory_space<vmem>>, %arg7: memref<32x128xf32, #tpu.memory_space<vmem>>, %arg8: memref<32x1xf32, #tpu.memory_space<vmem>>, %arg9: memref<1x32x256xf32, #tpu.memory_space<vmem>>) attributes {dimension_semantics = [#tpu.dimension_semantics<parallel>], iteration_bounds = array<i64: 2>, scalar_prefetch = 0 : i64, scratch_operands = 0 : i64, tpu.core_type = #tpu.core_type<tc>, window_params = [{transform_indices = @transform_0, window_bounds = array<i64: 1, 256, 32>}, {pipeline_mode = #tpu.pipeline_mode<synchronous>, transform_indices = @transform_1, window_bounds = array<i64: 32, 128>}, {pipeline_mode = #tpu.pipeline_mode<synchronous>, transform_indices = @transform_2, window_bounds = array<i64: 1, 128>}, {pipeline_mode = #tpu.pipeline_mode<synchronous>, transform_indices = @transform_3, window_bounds = array<i64: 9, 1, 128>}, {pipeline_mode = #tpu.pipeline_mode<synchronous>, transform_indices = @transform_4, window_bounds = array<i64: 1, 128>}, {pipeline_mode = #tpu.pipeline_mode<synchronous>, transform_indices = @transform_5, window_bounds = array<i64: 256, 8>}, {pipeline_mode = #tpu.pipeline_mode<synchronous>, transform_indices = @transform_6, window_bounds = array<i64: 32, 128>}, {pipeline_mode = #tpu.pipeline_mode<synchronous>, transform_indices = @transform_7, window_bounds = array<i64: 32, 1>}, {transform_indices = @transform_8, window_bounds = array<i64: 1, 32, 256>}]} {
    %c0 = arith.constant 0 : index
    %c0_0 = arith.constant 0 : index
    %c0_1 = arith.constant 0 : index
    %0 = vector.load %arg1[%c0, %c0_0, %c0_1] : memref<1x256x32xf32, #tpu.memory_space<vmem>>, vector<1x256x32xf32>
    %1 = vector.shape_cast %0 : vector<1x256x32xf32> to vector<256x32xf32>
    %c0_2 = arith.constant 0 : index
    %c0_3 = arith.constant 0 : index
    %2 = vector.load %arg2[%c0_2, %c0_3] : memref<32x128xf32, #tpu.memory_space<vmem>>, vector<32x128xf32>
    %cst = arith.constant dense<0.000000e+00> : vector<256x128xf32>
    %3 = tpu.matmul %1, %2, %cst {dimension_numbers = #tpu.dot_dimension_numbers<[1], [0], [0], [1], [0, 0, 1, 1], [], []>} : vector<256x32xf32>, vector<32x128xf32>, vector<256x128xf32> -> vector<256x128xf32>
    %c0_4 = arith.constant 0 : index
    %c0_5 = arith.constant 0 : index
    %4 = vector.load %arg3[%c0_4, %c0_5] : memref<1x128xf32, #tpu.memory_space<vmem>>, vector<1x128xf32>
    %5 = vector.broadcast %4 : vector<1x128xf32> to vector<256x128xf32>
    %6 = arith.addf %3, %5 : vector<256x128xf32>
    %c0_6 = arith.constant 0 : index
    %c0_7 = arith.constant 0 : index
    %c0_8 = arith.constant 0 : index
    %7 = vector.load %arg4[%c0_6, %c0_7, %c0_8] : memref<9x1x128xf32, #tpu.memory_space<vmem>>, vector<9x1x128xf32>
    %c0_9 = arith.constant 0 : index
    %c0_10 = arith.constant 0 : index
    %8 = vector.load %arg6[%c0_9, %c0_10] : memref<256x8xf32, #tpu.memory_space<vmem>>, vector<256x8xf32>
    %9 = vector.extract_strided_slice %7 {offsets = [4, 0, 0], sizes = [1, 1, 128], strides = [1, 1, 1]} : vector<9x1x128xf32> to vector<1x1x128xf32>
    %10 = vector.shape_cast %9 : vector<1x1x128xf32> to vector<1x128xf32>
    %11 = vector.broadcast %10 : vector<1x128xf32> to vector<256x128xf32>
    %12 = arith.mulf %6, %11 : vector<256x128xf32>
    %c17_i32 = arith.constant 17 : i32
    %13 = tpu.dynamic_rotate %6 by %c17_i32 dim 0 : vector<256x128xf32>, i32 -> vector<256x128xf32>
    %14 = vector.extract_strided_slice %7 {offsets = [0, 0, 0], sizes = [1, 1, 128], strides = [1, 1, 1]} : vector<9x1x128xf32> to vector<1x1x128xf32>
    %15 = vector.shape_cast %14 : vector<1x1x128xf32> to vector<1x128xf32>
    %16 = vector.extract_strided_slice %8 {offsets = [0, 0], sizes = [256, 1], strides = [1, 1]} : vector<256x8xf32> to vector<256x1xf32>
    %17 = vector.broadcast %15 : vector<1x128xf32> to vector<256x128xf32>
    %18 = arith.mulf %13, %17 : vector<256x128xf32>
    %19 = vector.broadcast %16 : vector<256x1xf32> to vector<256x128xf32>
    %20 = arith.mulf %18, %19 : vector<256x128xf32>
    %21 = arith.addf %12, %20 : vector<256x128xf32>
    %c16_i32 = arith.constant 16 : i32
    %22 = tpu.dynamic_rotate %6 by %c16_i32 dim 0 : vector<256x128xf32>, i32 -> vector<256x128xf32>
    %23 = vector.extract_strided_slice %7 {offsets = [1, 0, 0], sizes = [1, 1, 128], strides = [1, 1, 1]} : vector<9x1x128xf32> to vector<1x1x128xf32>
    %24 = vector.shape_cast %23 : vector<1x1x128xf32> to vector<1x128xf32>
    %25 = vector.extract_strided_slice %8 {offsets = [0, 1], sizes = [256, 1], strides = [1, 1]} : vector<256x8xf32> to vector<256x1xf32>
    %26 = vector.broadcast %24 : vector<1x128xf32> to vector<256x128xf32>
    %27 = arith.mulf %22, %26 : vector<256x128xf32>
    %28 = vector.broadcast %25 : vector<256x1xf32> to vector<256x128xf32>
    %29 = arith.mulf %27, %28 : vector<256x128xf32>
    %30 = arith.addf %21, %29 : vector<256x128xf32>
    %c15_i32 = arith.constant 15 : i32
    %31 = tpu.dynamic_rotate %6 by %c15_i32 dim 0 : vector<256x128xf32>, i32 -> vector<256x128xf32>
    %32 = vector.extract_strided_slice %7 {offsets = [2, 0, 0], sizes = [1, 1, 128], strides = [1, 1, 1]} : vector<9x1x128xf32> to vector<1x1x128xf32>
    %33 = vector.shape_cast %32 : vector<1x1x128xf32> to vector<1x128xf32>
    %34 = vector.extract_strided_slice %8 {offsets = [0, 2], sizes = [256, 1], strides = [1, 1]} : vector<256x8xf32> to vector<256x1xf32>
    %35 = vector.broadcast %33 : vector<1x128xf32> to vector<256x128xf32>
    %36 = arith.mulf %31, %35 : vector<256x128xf32>
    %37 = vector.broadcast %34 : vector<256x1xf32> to vector<256x128xf32>
    %38 = arith.mulf %36, %37 : vector<256x128xf32>
    %39 = arith.addf %30, %38 : vector<256x128xf32>
    %c1_i32 = arith.constant 1 : i32
    %40 = tpu.dynamic_rotate %6 by %c1_i32 dim 0 : vector<256x128xf32>, i32 -> vector<256x128xf32>
    %41 = vector.extract_strided_slice %7 {offsets = [3, 0, 0], sizes = [1, 1, 128], strides = [1, 1, 1]} : vector<9x1x128xf32> to vector<1x1x128xf32>
    %42 = vector.shape_cast %41 : vector<1x1x128xf32> to vector<1x128xf32>
    %43 = vector.extract_strided_slice %8 {offsets = [0, 3], sizes = [256, 1], strides = [1, 1]} : vector<256x8xf32> to vector<256x1xf32>
    %44 = vector.broadcast %42 : vector<1x128xf32> to vector<256x128xf32>
    %45 = arith.mulf %40, %44 : vector<256x128xf32>
    %46 = vector.broadcast %43 : vector<256x1xf32> to vector<256x128xf32>
    %47 = arith.mulf %45, %46 : vector<256x128xf32>
    %48 = arith.addf %39, %47 : vector<256x128xf32>
    %c255_i32 = arith.constant 255 : i32
    %49 = tpu.dynamic_rotate %6 by %c255_i32 dim 0 : vector<256x128xf32>, i32 -> vector<256x128xf32>
    %50 = vector.extract_strided_slice %7 {offsets = [5, 0, 0], sizes = [1, 1, 128], strides = [1, 1, 1]} : vector<9x1x128xf32> to vector<1x1x128xf32>
    %51 = vector.shape_cast %50 : vector<1x1x128xf32> to vector<1x128xf32>
    %52 = vector.extract_strided_slice %8 {offsets = [0, 4], sizes = [256, 1], strides = [1, 1]} : vector<256x8xf32> to vector<256x1xf32>
    %53 = vector.broadcast %51 : vector<1x128xf32> to vector<256x128xf32>
    %54 = arith.mulf %49, %53 : vector<256x128xf32>
    %55 = vector.broadcast %52 : vector<256x1xf32> to vector<256x128xf32>
    %56 = arith.mulf %54, %55 : vector<256x128xf32>
    %57 = arith.addf %48, %56 : vector<256x128xf32>
    %c241_i32 = arith.constant 241 : i32
    %58 = tpu.dynamic_rotate %6 by %c241_i32 dim 0 : vector<256x128xf32>, i32 -> vector<256x128xf32>
    %59 = vector.extract_strided_slice %7 {offsets = [6, 0, 0], sizes = [1, 1, 128], strides = [1, 1, 1]} : vector<9x1x128xf32> to vector<1x1x128xf32>
    %60 = vector.shape_cast %59 : vector<1x1x128xf32> to vector<1x128xf32>
    %61 = vector.extract_strided_slice %8 {offsets = [0, 5], sizes = [256, 1], strides = [1, 1]} : vector<256x8xf32> to vector<256x1xf32>
    %62 = vector.broadcast %60 : vector<1x128xf32> to vector<256x128xf32>
    %63 = arith.mulf %58, %62 : vector<256x128xf32>
    %64 = vector.broadcast %61 : vector<256x1xf32> to vector<256x128xf32>
    %65 = arith.mulf %63, %64 : vector<256x128xf32>
    %66 = arith.addf %57, %65 : vector<256x128xf32>
    %c240_i32 = arith.constant 240 : i32
    %67 = tpu.dynamic_rotate %6 by %c240_i32 dim 0 : vector<256x128xf32>, i32 -> vector<256x128xf32>
    %68 = vector.extract_strided_slice %7 {offsets = [7, 0, 0], sizes = [1, 1, 128], strides = [1, 1, 1]} : vector<9x1x128xf32> to vector<1x1x128xf32>
    %69 = vector.shape_cast %68 : vector<1x1x128xf32> to vector<1x128xf32>
    %70 = vector.extract_strided_slice %8 {offsets = [0, 6], sizes = [256, 1], strides = [1, 1]} : vector<256x8xf32> to vector<256x1xf32>
    %71 = vector.broadcast %69 : vector<1x128xf32> to vector<256x128xf32>
    %72 = arith.mulf %67, %71 : vector<256x128xf32>
    %73 = vector.broadcast %70 : vector<256x1xf32> to vector<256x128xf32>
    %74 = arith.mulf %72, %73 : vector<256x128xf32>
    %75 = arith.addf %66, %74 : vector<256x128xf32>
    %c239_i32 = arith.constant 239 : i32
    %76 = tpu.dynamic_rotate %6 by %c239_i32 dim 0 : vector<256x128xf32>, i32 -> vector<256x128xf32>
    %77 = vector.extract_strided_slice %7 {offsets = [8, 0, 0], sizes = [1, 1, 128], strides = [1, 1, 1]} : vector<9x1x128xf32> to vector<1x1x128xf32>
    %78 = vector.shape_cast %77 : vector<1x1x128xf32> to vector<1x128xf32>
    %79 = vector.extract_strided_slice %8 {offsets = [0, 7], sizes = [256, 1], strides = [1, 1]} : vector<256x8xf32> to vector<256x1xf32>
    %80 = vector.broadcast %78 : vector<1x128xf32> to vector<256x128xf32>
    %81 = arith.mulf %76, %80 : vector<256x128xf32>
    %82 = vector.broadcast %79 : vector<256x1xf32> to vector<256x128xf32>
    %83 = arith.mulf %81, %82 : vector<256x128xf32>
    %84 = arith.addf %75, %83 : vector<256x128xf32>
    %c0_11 = arith.constant 0 : index
    %c0_12 = arith.constant 0 : index
    %85 = vector.load %arg5[%c0_11, %c0_12] : memref<1x128xf32, #tpu.memory_space<vmem>>, vector<1x128xf32>
    %86 = vector.broadcast %85 : vector<1x128xf32> to vector<256x128xf32>
    %87 = arith.addf %84, %86 : vector<256x128xf32>
    %cst_13 = arith.constant 0.000000e+00 : f32
    %88 = vector.broadcast %cst_13 : f32 to vector<256x128xf32>
    %89 = arith.maximumf %87, %88 : vector<256x128xf32>
    %c0_14 = arith.constant 0 : index
    %c0_15 = arith.constant 0 : index
    %90 = vector.load %arg7[%c0_14, %c0_15] : memref<32x128xf32, #tpu.memory_space<vmem>>, vector<32x128xf32>
    %cst_16 = arith.constant dense<0.000000e+00> : vector<32x256xf32>
    %91 = tpu.matmul %90, %89, %cst_16 {dimension_numbers = #tpu.dot_dimension_numbers<[1], [1], [0], [0], [0, 0, 1, 0], [], []>} : vector<32x128xf32>, vector<256x128xf32>, vector<32x256xf32> -> vector<32x256xf32>
    %c0_17 = arith.constant 0 : index
    %c0_18 = arith.constant 0 : index
    %92 = vector.load %arg8[%c0_17, %c0_18] : memref<32x1xf32, #tpu.memory_space<vmem>>, vector<32x1xf32>
    %93 = vector.broadcast %92 : vector<32x1xf32> to vector<32x256xf32>
    %94 = arith.addf %91, %93 : vector<32x256xf32>
    %c0_19 = arith.constant 0 : index
    %c0_20 = arith.constant 0 : index
    %c0_21 = arith.constant 0 : index
    %95 = vector.load %arg9[%c0_19, %c0_20, %c0_21] : memref<1x32x256xf32, #tpu.memory_space<vmem>>, vector<1x32x256xf32>
    %96 = vector.shape_cast %95 : vector<1x32x256xf32> to vector<32x256xf32>
    %97 = vector.shape_cast %94 : vector<32x256xf32> to vector<1x32x256xf32>
    tpu.vector_store %arg9[%c0_19, %c0_20, %c0_21], %97 {strides = array<i32>} : memref<1x32x256xf32, #tpu.memory_space<vmem>>, vector<1x32x256xf32>,
    return
  }
  func.func @transform_0(%arg0: i32) -> (i32, i32, i32) {
    %c0_i32 = arith.constant 0 : i32
    %c0_i32_0 = arith.constant 0 : i32
    %c0_i32_1 = arith.constant 0 : i32
    return %arg0, %c0_i32, %c0_i32_0 : i32, i32, i32
  }
  func.func @transform_1(%arg0: i32) -> (i32, i32) {
    %c0_i32 = arith.constant 0 : i32
    %c0_i32_0 = arith.constant 0 : i32
    %c0_i32_1 = arith.constant 0 : i32
    return %c0_i32, %c0_i32_0 : i32, i32
  }
  func.func @transform_2(%arg0: i32) -> (i32, i32) {
    %c0_i32 = arith.constant 0 : i32
    %c0_i32_0 = arith.constant 0 : i32
    %c0_i32_1 = arith.constant 0 : i32
    return %c0_i32, %c0_i32_0 : i32, i32
  }
  func.func @transform_3(%arg0: i32) -> (i32, i32, i32) {
    %c0_i32 = arith.constant 0 : i32
    %c0_i32_0 = arith.constant 0 : i32
    %c0_i32_1 = arith.constant 0 : i32
    %c0_i32_2 = arith.constant 0 : i32
    return %c0_i32, %c0_i32_0, %c0_i32_1 : i32, i32, i32
  }
  func.func @transform_4(%arg0: i32) -> (i32, i32) {
    %c0_i32 = arith.constant 0 : i32
    %c0_i32_0 = arith.constant 0 : i32
    %c0_i32_1 = arith.constant 0 : i32
    return %c0_i32, %c0_i32_0 : i32, i32
  }
  func.func @transform_5(%arg0: i32) -> (i32, i32) {
    %c0_i32 = arith.constant 0 : i32
    %c0_i32_0 = arith.constant 0 : i32
    %c0_i32_1 = arith.constant 0 : i32
    return %c0_i32, %c0_i32_0 : i32, i32
  }
  func.func @transform_6(%arg0: i32) -> (i32, i32) {
    %c0_i32 = arith.constant 0 : i32
    %c0_i32_0 = arith.constant 0 : i32
    %c0_i32_1 = arith.constant 0 : i32
    return %c0_i32, %c0_i32_0 : i32, i32
  }
  func.func @transform_7(%arg0: i32) -> (i32, i32) {
    %c0_i32 = arith.constant 0 : i32
    %c0_i32_0 = arith.constant 0 : i32
    %c0_i32_1 = arith.constant 0 : i32
    return %c0_i32, %c0_i32_0 : i32, i32
  }
  func.func @transform_8(%arg0: i32) -> (i32, i32, i32) {
    %c0_i32 = arith.constant 0 : i32
    %c0_i32_0 = arith.constant 0 : i32
    %c0_i32_1 = arith.constant 0 : i32
    return %arg0, %c0_i32, %c0_i32_0 : i32, i32, i32
  }
}

</mosaic_0001>

<bundles_post_ra>
// kernel: tpu_custom_call.1
= control target key start
LH: loop header
LB: loop body
LE: loop exit
PB: predicated region body
PF: predicated region fallthrough
CT: control target
= control target key end

     0   :  { %13 = vsyncpa [#allocation3], 0  ;;  %s6327_s0 = inlined_call_operand.vmem [shape: f32[2,256,32], index: 0, kind: input, shape index: {}]   ;;  %s6328_s1 = inlined_call_operand.vmem [shape: f32[32,128], index: 1, kind: input, shape index: {}]   ;;  %s6329_s2 = inlined_call_operand.vmem [shape: f32[1,128], index: 2, kind: input, shape index: {}]   ;;  %s6330_s3 = inlined_call_operand.vmem [shape: f32[9,1,128], index: 3, kind: input, shape index: {}]   ;;  %s6331_s4 = inlined_call_operand.vmem [shape: f32[1,128], index: 4, kind: input, shape index: {}]   ;;  %s6332_s5 = inlined_call_operand.vmem [shape: f32[256,8], index: 5, kind: input, shape index: {}]   ;;  %s6333_s6 = inlined_call_operand.vmem [shape: f32[32,128], index: 6, kind: input, shape index: {}]   ;;  %s6334_s7 = inlined_call_operand.vmem [shape: f32[32,1], index: 7, kind: input, shape index: {}]   ;;  %s6335_s8 = inlined_call_operand.hbm [shape: f32[2,32,256], index: 8, kind: output, shape index: {}]  }
   0x1   :  { %15 = vsyncpa [#allocation3 + $0x1], 0  ;;  %s3528_s27 = smov 0   ;;  %s3530_s28 = smov 0  }
   0x2   :  { %s3532_s29 = smov 0   ;;  %s3534_s30 = smov 0  }
   0x3 LB: > { %s3549_s9 = sadd.s32 4294967295, %s3470_s30   ;;  %s3024_s10 = sadd.s32 4294967294, %s3470_s30   ;;  %s3470_s30 = sphi %s3534_s30, %s7152_s30   ;;  %s3466_s29 = sphi %s3532_s29, %s7151_s29   ;;  %s3462_s28 = sphi %s3530_s28, %s7150_s28   ;;  %s3458_s27 = sphi %s3528_s27, %s7149_s27  }
   0x4   : > { %s3553_s11 = sadd.s32 1, %s3470_s30   ;;  %s201_s12 = sadd.s32 1, %s3466_s29 }
   0x5   : > { %s198_s13 = ssub.s32 %s3470_s30, %s3553_s11  ;;  %p211_p0 = scmp.ne.s32.totalorder %s3466_s29, %s3462_s28 }
   0x6   : > { %p199_p1 = scmp.eq.s32.totalorder %s198_s13, 0  ;;  %p212_p2 = scmp.eq.s32.totalorder %s3549_s9, 1 }
   0x7   : > { %p217_p3 = scmp.ne.s32.totalorder %s3462_s28, %s3458_s27  ;;  %p218_p4 = scmp.eq.s32.totalorder %s3024_s10, 1 }
   0x8   : > { %s3564_s14 = scalar_select %p199_p1, %s3466_s29, %s201_s12  }
   0x9   : > { %p3566_p5 = por %p212_p2, %p211_p0  ;;  %p3570_p6 = por %p218_p4, %p217_p3 }
   0xa   : > { %p3027_p7 = scmp.ge.s32.totalorder %s3470_s30, 1  ;;  %p265_p8 = scmp.lt.s32.totalorder %s3470_s30, 3 }
   0xc   : > { %p266_p9 = pnand %p3027_p7, %p265_p8 }
   0xe   : > { %269 = sbr.rel (%p266_p9) target bundleno = 1000 (0x3e8), region = 52 }
  0x15   : > { %v3579_v0 = vld [vmem:[%s6332_s5 + $0x10] sm:$0xff]  ;;  %v3584_v1 = vld [vmem:[%s6332_s5] sm:$0xff]  ;;  %p299_p10 = scmp.lt.s32.totalorder %s3549_s9, 1  ;;  %v6336_v3 = vmov 0   ;;  %v337_v4 = vld [vmem:[%s6328_s1 + $0x8] sm:$0xff]  ;;  %vm347_vm0 = vcmask 261120  }
  0x16   : > { %v336_v2 = vld [vmem:[%s6328_s1] sm:$0xff]  ;;  %3319 = vset.pattern.permute.xlu1 %v6336_v3  ;;  %3318 = vset.pattern.permute.xlu0 %v6336_v3  ;;  %v338_v6 = vld [vmem:[%s6328_s1 + $0x10] sm:$0xff]  ;;  %v339_v7 = vld [vmem:[%s6328_s1 + $0x18] sm:$0xff]  ;;  %s296_s26 = sand.u32 1, %s3462_s28  }
  0x17   : > { %865 = vperm.xlu1 %3319, %v3579_v0   ;;  %855 = vperm.xlu0 %3318, %v3584_v1   ;;  %v3213_v5 = vpack.c.bf16 %v337_v4, %v336_v2  ;;  %s300_s13 = scalar_select %p299_p10, %s3549_s9, 1  ;;  %v3607_v8 = vld [vmem:[%s6332_s5 + $0x18] sm:$0xff]  ;;  %v3612_v9 = vld [vmem:[%s6332_s5 + $0x8] sm:$0xff]  ;;  %v3217_v10 = vpack.c.bf16 %v339_v7, %v338_v6  ;;  %v3630_v13 = vld [vmem:[%s6332_s5 + $0x20] sm:$0xff] }
  0x18   : > { %v3625_v12 = vld [vmem:[%s6332_s5 + $0x28] sm:$0xff]  ;;  %v3640_v16 = vld [vmem:[%s6332_s5 + $0x38] sm:$0xff]  ;;  %v3645_v17 = vld [vmem:[%s6332_s5 + $0x30] sm:$0xff]  ;;  %s3028_s10 = sshll.u32 %s296_s26, 6 }
  0x19   : > { %3214 = vmatprep.subr.bf16.mxu0 %v3213_v5  ;;  %s3079_s21 = sshll.u32 %s300_s13, 8  ;;  %6550 = vst [vmem:[#allocation5_spill] sm:$0xff] %v3625_v12  ;;  %6551 = vst [vmem:[#allocation6_spill] sm:$0xff] %v3640_v16  ;;  %v3656_v20 = vld [vmem:[%s6332_s5 + $0x48] sm:$0xff]  ;;  %v3661_v21 = vld [vmem:[%s6332_s5 + $0x40] sm:$0xff]  ;;  %s298_s12 = scalar_lea.vmem [#allocation2], %s3028_s10 }
  0x1a   : > { %3216 = vmatpush3.bf16.msra.mxu0 %v3213_v5  ;;  %s3617_s24 = scalar_lea.vmem %s6327_s0, %s3079_s21  ;;  %6552 = vst [vmem:[#allocation7_spill] sm:$0xff] %v3656_v20  ;;  %v3672_v24 = vld [vmem:[%s6332_s5 + $0x58] sm:$0xff]  ;;  %v3677_v25 = vld [vmem:[%s6332_s5 + $0x50] sm:$0xff]  ;;  %v3688_v28 = vld [vmem:[%s6332_s5 + $0x68] sm:$0xff]  ;;  %s3080_s13 = sshll.u32 %s3549_s9, 10 }
  0x1b   : > { %870 = vperm.xlu1 %3319, %v3607_v8   ;;  %860 = vperm.xlu0 %3318, %v3612_v9   ;;  %v304_v11 = vld [vmem:[%s3617_s24] sm:$0xff]  ;;  %v305_v14 = vld [vmem:[%s3617_s24 + $0x8] sm:$0xff]  ;;  %v306_v15 = vld [vmem:[%s3617_s24 + $0x10] sm:$0xff]  ;;  %6553 = vst [vmem:[#allocation8_spill] sm:$0xff] %v3672_v24  ;;  %s2962_s17 = sshll.u32 %s298_s12, 4  ;;  %s6286_s9 = scalar_lea.sflag [#allocation3], %s296_s26  ;;  %s6282_s17 = int_to_ptr.vmem [resolvable:$true] %s2962_s17 }
  0x1c   : > { %3218 = vmatprep.subr.bf16.mxu0 %v3217_v10  ;;  %3165 = vmatprep.mubr.msk.f32.mxu0 %vm347_vm0, %v304_v11  ;;  %v307_v18 = vld [vmem:[%s3617_s24 + $0x18] sm:$0xff]  ;;  %v308_v19 = vld [vmem:[%s3617_s24 + $0x20] sm:$0xff]  ;;  %v309_v22 = vld [vmem:[%s3617_s24 + $0x28] sm:$0xff]  ;;  %6554 = vst [vmem:[#allocation9_spill] sm:$0xff] %v3688_v28  ;;  %s3408_s20 = scalar_lea.vmem %s6282_s17, 1024  ;;  %s3480_s21 = smov [#allocation2]  }
  0x1d   : > { %v310_v23 = vld [vmem:[%s3617_s24 + $0x30] sm:$0xff]  ;;  %v311_v26 = vld [vmem:[%s3617_s24 + $0x38] sm:$0xff]  ;;  %v312_v27 = vld [vmem:[%s3617_s24 + $0x40] sm:$0xff]  ;;  %p3409_p11 = scmp.ne.s32.totalorder %s6282_s17, %s3408_s20  ;;  %s3412_s22 = sshll.u32 %s3480_s21, 4  ;;  %s3413_s22 = int_to_ptr.vmem [resolvable:$false] %s3412_s22 }
  0x1e   : > { %3220 = vmatpush3.bf16.msra.mxu0 %v3217_v10  ;;  %v3693_v29 = vld [vmem:[%s6332_s5 + $0x60] sm:$0xff]  ;;  %v313_v30 = vld [vmem:[%s3617_s24 + $0x48] sm:$0xff]  ;;  %v314_v31 = vld [vmem:[%s3617_s24 + $0x50] sm:$0xff]  ;;  %v3473_v10 = vmov 1   ;;  %s3414_s23 = scalar_lea.vmem %s3413_s22, 2048  ;;  %p3415_p0 = scmp.lt.s32.totalorder %s6282_s17, %s3413_s22 }
  0x1f   : > { %880 = vperm.xlu1 %3319, %v3625_v12   ;;  %875 = vperm.xlu0 %3318, %v3630_v13   ;;  %6555 = vst [vmem:[#allocation10_spill] sm:$0xff] %v3693_v29  ;;  %v3704_v32 = vld [vmem:[%s6332_s5 + $0x78] sm:$0xff]  ;;  %v3709_v33 = vld [vmem:[%s6332_s5 + $0x70] sm:$0xff]  ;;  %v316_v35 = vld [vmem:[%s3617_s24 + $0x60] sm:$0xff]  ;;  %p3410_p12 = pnand %p3409_p11, %p3566_p5  ;;  %p3416_p1 = scmp.lt.s32.totalorder %s3414_s23, %s3408_s20 }
  0x20   : > { %6556 = vst [vmem:[#allocation11_spill] sm:$0xff] %v3709_v33  ;;  %v315_v34 = vld [vmem:[%s3617_s24 + $0x58] sm:$0xff]  ;;  %v3720_v36 = vld [vmem:[%s6332_s5 + $0x88] sm:$0xff]  ;;  %v3725_v37 = vld [vmem:[%s6332_s5 + $0x80] sm:$0xff] }
  0x21   : > { %3166 = vmatmul.mubr.msk.f32.vlgmr.msra.gmra.mrb[0].mxu0 %vm347_vm0, %v305_v14  ;;  %6557 = vst [vmem:[#allocation12_spill] sm:$0xff] %v3725_v37  ;;  %v317_v38 = vld [vmem:[%s3617_s24 + $0x68] sm:$0xff]  ;;  %v318_v39 = vld [vmem:[%s3617_s24 + $0x70] sm:$0xff]  ;;  %v3736_v40 = vld [vmem:[%s6332_s5 + $0x98] sm:$0xff]  ;;  %p3411_p13 = pneg %p3410_p12  ;;  %p3417_p2 = por %p3416_p1, %p3415_p0 }
  0x22   : > { %3168 = vmatprep.mubr.msk.f32.mxu0 %vm347_vm0, %v306_v15  ;;  %v3741_v41 = vld [vmem:[%s6332_s5 + $0x90] sm:$0xff]  ;;  %v319_v42 = vld [vmem:[%s3617_s24 + $0x78] sm:$0xff]  ;;  %v320_v43 = vld [vmem:[%s3617_s24 + $0x80] sm:$0xff] }
  0x23   : > { %890 = vperm.xlu1 %3319, %v3640_v16   ;;  %885 = vperm.xlu0 %3318, %v3645_v17   ;;  %6558 = vst [vmem:[#allocation13_spill] sm:$0xff] %v3741_v41  ;;  %v3752_v44 = vld [vmem:[%s6332_s5 + $0xa8] sm:$0xff]  ;;  %v3757_v45 = vld [vmem:[%s6332_s5 + $0xa0] sm:$0xff]  ;;  %v322_v47 = vld [vmem:[%s3617_s24 + $0x90] sm:$0xff]  ;;  %p3418_p3 = pnand %p3417_p2, %p3411_p13 }
  0x24   : > { %v321_v46 = vld [vmem:[%s3617_s24 + $0x88] sm:$0xff]  ;;  %v3768_v48 = vld [vmem:[%s6332_s5 + $0xb8] sm:$0xff]  ;;  %v3773_v49 = vld [vmem:[%s6332_s5 + $0xb0] sm:$0xff] }
  0x25   : > { %3169 = vmatmul.mubr.msk.f32.gmra.mrb[2].mxu0 %vm347_vm0, %v307_v18  ;;  %v323_v50 = vld [vmem:[%s3617_s24 + $0x98] sm:$0xff]  ;;  %v324_v51 = vld [vmem:[%s3617_s24 + $0xa0] sm:$0xff]  ;;  %v3784_v52 = vld [vmem:[%s6332_s5 + $0xc8] sm:$0xff] }
  0x26   : > { %3171 = vmatprep.mubr.msk.f32.mxu0 %vm347_vm0, %v308_v19  ;;  %v3789_v53 = vld [vmem:[%s6332_s5 + $0xc0] sm:$0xff]  ;;  %v325_v54 = vld [vmem:[%s3617_s24 + $0xa8] sm:$0xff]  ;;  %v326_v55 = vld [vmem:[%s3617_s24 + $0xb0] sm:$0xff]  ;;  %v3474_v19 = vmov 2  }
  0x27   : > { %900 = vperm.xlu1 %3319, %v3656_v20   ;;  %895 = vperm.xlu0 %3318, %v3661_v21   ;;  %v3800_v56 = vld [vmem:[%s6332_s5 + $0xd8] sm:$0xff]  ;;  %v3805_v57 = vld [vmem:[%s6332_s5 + $0xd0] sm:$0xff]  ;;  %v328_v59 = vld [vmem:[%s3617_s24 + $0xc0] sm:$0xff] }
  0x28   : > { %v327_v58 = vld [vmem:[%s3617_s24 + $0xb8] sm:$0xff]  ;;  %v3816_v60 = vld [vmem:[%s6332_s5 + $0xe8] sm:$0xff]  ;;  %v3821_v61 = vld [vmem:[%s6332_s5 + $0xe0] sm:$0xff] }
  0x29   : > { %3172 = vmatmul.mubr.msk.f32.gmra.mrb[4].mxu0 %vm347_vm0, %v309_v22  ;;  %v329_v62 = vld [vmem:[%s3617_s24 + $0xc8] sm:$0xff]  ;;  %v330_v63 = vld [vmem:[%s3617_s24 + $0xd0] sm:$0xff]  ;;  %v3832_v2 = vld [vmem:[%s6332_s5 + $0xf8] sm:$0xff] }
  0x2a   : > { %3174 = vmatprep.mubr.msk.f32.mxu0 %vm347_vm0, %v310_v23  ;;  %v3837_v4 = vld [vmem:[%s6332_s5 + $0xf0] sm:$0xff]  ;;  %v331_v5 = vld [vmem:[%s3617_s24 + $0xd8] sm:$0xff]  ;;  %v332_v6 = vld [vmem:[%s3617_s24 + $0xe0] sm:$0xff] }
  0x2b   : > { %910 = vperm.xlu1 %3319, %v3672_v24   ;;  %905 = vperm.xlu0 %3318, %v3677_v25   ;;  %v333_v7 = vld [vmem:[%s3617_s24 + $0xe8] sm:$0xff]  ;;  %v334_v11 = vld [vmem:[%s3617_s24 + $0xf0] sm:$0xff]  ;;  %v335_v14 = vld [vmem:[%s3617_s24 + $0xf8] sm:$0xff]  ;;  %s6280_s24 = scalar_lea.hbm %s6335_s8, %s3080_s13 }
  0x2d   : > { %3175 = vmatmul.mubr.msk.f32.gmra.mrb[6].mxu0 %vm347_vm0, %v311_v26 }
  0x2e   : > { %3177 = vmatprep.mubr.msk.f32.mxu0 %vm347_vm0, %v312_v27 }
  0x2f   : > { %920 = vperm.xlu1 %3319, %v3688_v28   ;;  %915 = vperm.xlu0 %3318, %v3693_v29  }
  0x31   : > { %3178 = vmatmul.mubr.msk.f32.gmra.mrb[8].mxu0 %vm347_vm0, %v313_v30 }
  0x32   : > { %3180 = vmatprep.mubr.msk.f32.mxu0 %vm347_vm0, %v314_v31 }
  0x33   : > { %930 = vperm.xlu1 %3319, %v3704_v32   ;;  %925 = vperm.xlu0 %3318, %v3709_v33  }
  0x35   : > { %3181 = vmatmul.mubr.msk.f32.gmra.mrb[10].mxu0 %vm347_vm0, %v315_v34 }
  0x36   : > { %3183 = vmatprep.mubr.msk.f32.mxu0 %vm347_vm0, %v316_v35 }
  0x37   : > { %940 = vperm.xlu1 %3319, %v3720_v36   ;;  %935 = vperm.xlu0 %3318, %v3725_v37  }
  0x39   : > { %3184 = vmatmul.mubr.msk.f32.gmra.mrb[12].mxu0 %vm347_vm0, %v317_v38 }
  0x3a   : > { %3186 = vmatprep.mubr.msk.f32.mxu0 %vm347_vm0, %v318_v39 }
  0x3b   : > { %950 = vperm.xlu1 %3319, %v3736_v40   ;;  %945 = vperm.xlu0 %3318, %v3741_v41  }
  0x3d   : > { %3187 = vmatmul.mubr.msk.f32.gmra.mrb[14].mxu0 %vm347_vm0, %v319_v42 }
  0x3e   : > { %3189 = vmatprep.mubr.msk.f32.mxu0 %vm347_vm0, %v320_v43 }
  0x3f   : > { %960 = vperm.xlu1 %3319, %v3752_v44   ;;  %955 = vperm.xlu0 %3318, %v3757_v45  }
  0x41   : > { %3190 = vmatmul.mubr.msk.f32.gmra.mrb[16].mxu0 %vm347_vm0, %v321_v46 }
  0x42   : > { %3192 = vmatprep.mubr.msk.f32.mxu0 %vm347_vm0, %v322_v47 }
  0x43   : > { %970 = vperm.xlu1 %3319, %v3768_v48   ;;  %965 = vperm.xlu0 %3318, %v3773_v49  }
  0x45   : > { %3193 = vmatmul.mubr.msk.f32.gmra.mrb[18].mxu0 %vm347_vm0, %v323_v50 }
  0x46   : > { %3195 = vmatprep.mubr.msk.f32.mxu0 %vm347_vm0, %v324_v51 }
  0x47   : > { %980 = vperm.xlu1 %3319, %v3784_v52   ;;  %975 = vperm.xlu0 %3318, %v3789_v53  }
  0x49   : > { %3196 = vmatmul.mubr.msk.f32.gmra.mrb[20].mxu0 %vm347_vm0, %v325_v54 }
  0x4a   : > { %3198 = vmatprep.mubr.msk.f32.mxu0 %vm347_vm0, %v326_v55 }
  0x4b   : > { %990 = vperm.xlu1 %3319, %v3800_v56   ;;  %985 = vperm.xlu0 %3318, %v3805_v57  }
  0x4d   : > { %3199 = vmatmul.mubr.msk.f32.gmra.mrb[22].mxu0 %vm347_vm0, %v327_v58 }
  0x4e   : > { %3201 = vmatprep.mubr.msk.f32.mxu0 %vm347_vm0, %v328_v59 }
  0x4f   : > { %1000 = vperm.xlu1 %3319, %v3816_v60   ;;  %995 = vperm.xlu0 %3318, %v3821_v61  }
  0x51   : > { %3202 = vmatmul.mubr.msk.f32.gmra.mrb[24].mxu0 %vm347_vm0, %v329_v62 }
  0x52   : > { %3204 = vmatprep.mubr.msk.f32.mxu0 %vm347_vm0, %v330_v63 }
  0x53   : > { %1010 = vperm.xlu1 %3319, %v3832_v2   ;;  %1005 = vperm.xlu0 %3318, %v3837_v4  }
  0x55   : > { %3205 = vmatmul.mubr.msk.f32.gmra.mrb[26].mxu0 %vm347_vm0, %v331_v5 }
  0x56   : > { %3207 = vmatprep.mubr.msk.f32.mxu0 %vm347_vm0, %v332_v6 }
  0x57   : > { %3321 = vset.pattern.permute.xlu1 %v3473_v10  ;;  %3320 = vset.pattern.permute.xlu0 %v3473_v10 }
  0x58   : > { %1120 = vperm.xlu1 %3321, %v3612_v9   ;;  %1116 = vperm.xlu0 %3320, %v3584_v1  }
  0x59   : > { %3208 = vmatmul.mubr.msk.f32.gmra.mrb[28].mxu0 %vm347_vm0, %v333_v7 }
  0x5a   : > { %3210 = vmatprep.mubr.msk.f32.mxu0 %vm347_vm0, %v334_v11 }
  0x5c   : > { %1124 = vperm.xlu1 %3321, %v3579_v0   ;;  %1128 = vperm.xlu0 %3320, %v3607_v8  }
  0x5d   : > { %3211 = vmatmul.mubr.msk.f32.gmra.mrb[30].mxu0 %vm347_vm0, %v335_v14 }
  0x60   : > { %1132 = vperm.xlu1 %3321, %v3630_v13   ;;  %1136 = vperm.xlu0 %3320, %v3625_v12  }
  0x64   : > { %1140 = vperm.xlu1 %3321, %v3645_v17   ;;  %1144 = vperm.xlu0 %3320, %v3640_v16  }
  0x68   : > { %1148 = vperm.xlu1 %3321, %v3661_v21   ;;  %1152 = vperm.xlu0 %3320, %v3656_v20  }
  0x6c   : > { %1156 = vperm.xlu1 %3321, %v3677_v25   ;;  %1160 = vperm.xlu0 %3320, %v3672_v24  }
  0x70   : > { %1164 = vperm.xlu1 %3321, %v3693_v29   ;;  %1168 = vperm.xlu0 %3320, %v3688_v28  }
  0x74   : > { %1172 = vperm.xlu1 %3321, %v3709_v33   ;;  %1176 = vperm.xlu0 %3320, %v3704_v32  }
  0x78   : > { %1180 = vperm.xlu1 %3321, %v3725_v37   ;;  %1184 = vperm.xlu0 %3320, %v3720_v36  }
  0x7c   : > { %1188 = vperm.xlu1 %3321, %v3741_v41   ;;  %1192 = vperm.xlu0 %3320, %v3736_v40  }
  0x80   : > { %1196 = vperm.xlu1 %3321, %v3757_v45   ;;  %1200 = vperm.xlu0 %3320, %v3752_v44  }
  0x84   : > { %1204 = vperm.xlu1 %3321, %v3773_v49   ;;  %1208 = vperm.xlu0 %3320, %v3768_v48  }
  0x88   : > { %1212 = vperm.xlu1 %3321, %v3789_v53   ;;  %1216 = vperm.xlu0 %3320, %v3784_v52  }
  0x8c   : > { %1220 = vperm.xlu1 %3321, %v3805_v57   ;;  %1224 = vperm.xlu0 %3320, %v3800_v56  }
  0x90   : > { %1228 = vperm.xlu1 %3321, %v3821_v61   ;;  %1232 = vperm.xlu0 %3320, %v3816_v60  }
  0x94   : > { %1236 = vperm.xlu1 %3321, %v3837_v4   ;;  %1240 = vperm.xlu0 %3320, %v3832_v2  }
  0x96   : > { %v3885_v15 = vpop.permute.xlu1 %865  ;;  %v3887_v18 = vpop.permute.xlu0 %855 }
  0x97   : > { %6559 = vst [vmem:[#allocation14_spill] sm:$0xff] %v3885_v15  ;;  %6560 = vst [vmem:[#allocation15_spill] sm:$0xff] %v3887_v18 }
  0x98   : > { %3322 = vset.pattern.permute.xlu1 %v3474_v19  ;;  %3323 = vset.pattern.permute.xlu0 %v3474_v19 }
  0x99   : > { %1411 = vperm.xlu1 %3322, %v3584_v1   ;;  %1415 = vperm.xlu0 %3323, %v3612_v9  }
  0x9a   : > { %v3891_v22 = vpop.permute.xlu1 %870  ;;  %v3893_v23 = vpop.permute.xlu0 %860 }
  0x9b   : > { %6561 = vst [vmem:[#allocation16_spill] sm:$0xff] %v3891_v22  ;;  %6562 = vst [vmem:[#allocation17_spill] sm:$0xff] %v3893_v23 }
  0x9d   : > { %1419 = vperm.xlu1 %3322, %v3579_v0   ;;  %1427 = vperm.xlu0 %3323, %v3630_v13  }
  0x9e   : > { %v3897_v26 = vpop.permute.xlu1 %880  ;;  %v3899_v27 = vpop.permute.xlu0 %875 }
  0xa1   : > { %1423 = vperm.xlu1 %3322, %v3607_v8   ;;  %1435 = vperm.xlu0 %3323, %v3645_v17  }
  0xa2   : > { %v3903_v30 = vpop.permute.xlu1 %890  ;;  %v3905_v31 = vpop.permute.xlu0 %885 }
  0xa5   : > { %1431 = vperm.xlu1 %3322, %v3625_v12   ;;  %1443 = vperm.xlu0 %3323, %v3661_v21  }
  0xa6   : > { %v3909_v34 = vpop.permute.xlu1 %900  ;;  %v3911_v35 = vpop.permute.xlu0 %895 }
  0xa9   : > { %1439 = vperm.xlu1 %3322, %v3640_v16   ;;  %1451 = vperm.xlu0 %3323, %v3677_v25  }
  0xaa   : > { %v3915_v38 = vpop.permute.xlu1 %910  ;;  %v3917_v39 = vpop.permute.xlu0 %905 }
  0xad   : > { %1447 = vperm.xlu1 %3322, %v3656_v20   ;;  %1459 = vperm.xlu0 %3323, %v3693_v29  }
  0xae   : > { %v3921_v42 = vpop.permute.xlu1 %920  ;;  %v3923_v43 = vpop.permute.xlu0 %915 }
  0xaf   : > { %6563 = vst [vmem:[#allocation18_spill] sm:$0xff] %v3921_v42 }
  0xb1   : > { %1455 = vperm.xlu1 %3322, %v3672_v24   ;;  %1467 = vperm.xlu0 %3323, %v3709_v33  }
  0xb2   : > { %v3927_v46 = vpop.permute.xlu1 %930  ;;  %v3929_v47 = vpop.permute.xlu0 %925 }
  0xb3   : > { %6564 = vst [vmem:[#allocation19_spill] sm:$0xff] %v3927_v46  ;;  %6565 = vst [vmem:[#allocation20_spill] sm:$0xff] %v3929_v47 }
  0xb5   : > { %1463 = vperm.xlu1 %3322, %v3688_v28   ;;  %1475 = vperm.xlu0 %3323, %v3725_v37  }
  0xb6   : > { %v3933_v50 = vpop.permute.xlu1 %940  ;;  %v3935_v51 = vpop.permute.xlu0 %935 }
  0xb7   : > { %6566 = vst [vmem:[#allocation21_spill] sm:$0xff] %v3933_v50  ;;  %6567 = vst [vmem:[#allocation22_spill] sm:$0xff] %v3935_v51  ;;  %v3475_v51 = vmov 3  }
  0xb9   : > { %1471 = vperm.xlu1 %3322, %v3704_v32   ;;  %1483 = vperm.xlu0 %3323, %v3741_v41  }
  0xba   : > { %v3939_v54 = vpop.permute.xlu1 %950  ;;  %v3941_v55 = vpop.permute.xlu0 %945 }
  0xbb   : > { %6568 = vst [vmem:[#allocation23_spill] sm:$0xff] %v3939_v54  ;;  %6569 = vst [vmem:[#allocation24_spill] sm:$0xff] %v3941_v55 }
  0xbd   : > { %1479 = vperm.xlu1 %3322, %v3720_v36   ;;  %1491 = vperm.xlu0 %3323, %v3757_v45  }
  0xbe   : > { %v3945_v58 = vpop.permute.xlu1 %960  ;;  %v3947_v59 = vpop.permute.xlu0 %955 }
  0xbf   : > { %6570 = vst [vmem:[#allocation25_spill] sm:$0xff] %v3945_v58  ;;  %6571 = vst [vmem:[#allocation26_spill] sm:$0xff] %v3947_v59 }
  0xc1   : > { %1487 = vperm.xlu1 %3322, %v3736_v40   ;;  %1499 = vperm.xlu0 %3323, %v3773_v49  }
  0xc2   : > { %v3951_v62 = vpop.permute.xlu1 %970  ;;  %v3953_v63 = vpop.permute.xlu0 %965 }
  0xc3   : > { %6572 = vst [vmem:[#allocation27_spill] sm:$0xff] %v3951_v62  ;;  %6573 = vst [vmem:[#allocation28_spill] sm:$0xff] %v3953_v63 }
  0xc5   : > { %1495 = vperm.xlu1 %3322, %v3752_v44   ;;  %1507 = vperm.xlu0 %3323, %v3789_v53  }
  0xc6   : > { %v3957_v5 = vpop.permute.xlu1 %980  ;;  %v3959_v6 = vpop.permute.xlu0 %975 }
  0xc7   : > { %6574 = vst [vmem:[#allocation29_spill] sm:$0xff] %v3957_v5  ;;  %6575 = vst [vmem:[#allocation30_spill] sm:$0xff] %v3959_v6  ;;  %v780_v5 = vlaneseq }
  0xc9   : > { %1503 = vperm.xlu1 %3322, %v3768_v48   ;;  %1515 = vperm.xlu0 %3323, %v3805_v57   ;;  %v4046_v58 = vshrl.u32 %v780_v5, 7 }
  0xca   : > { %v3963_v7 = vpop.permute.xlu1 %990  ;;  %v3965_v10 = vpop.permute.xlu0 %985 }
  0xcb   : > { %6576 = vst [vmem:[#allocation31_spill] sm:$0xff] %v3963_v7  ;;  %6577 = vst [vmem:[#allocation32_spill] sm:$0xff] %v3965_v10  ;;  %v4030_v7 = vld [vmem:[%s6329_s2] ss:$0 sm:$0xff]  ;;  %vm1339_vm1 = vcmp.lt.s32.totalorder %v4046_v58, 7  ;;  %vm782_vm2 = vcmp.lt.s32.totalorder %v4046_v58, 1 }
  0xcd   : > { %1511 = vperm.xlu1 %3322, %v3784_v52   ;;  %1523 = vperm.xlu0 %3323, %v3821_v61  }
  0xce   : > { %v3969_v11 = vpop.permute.xlu1 %1000  ;;  %v3971_v14 = vpop.permute.xlu0 %995 }
  0xcf   : > { %6578 = vst [vmem:[#allocation33_spill] sm:$0xff] %v3969_v11  ;;  %6579 = vst [vmem:[#allocation34_spill] sm:$0xff] %v3971_v14 }
  0xd1   : > { %1519 = vperm.xlu1 %3322, %v3800_v56   ;;  %1531 = vperm.xlu0 %3323, %v3837_v4  }
  0xd2   : > { %v3975_v19 = vpop.permute.xlu1 %1010  ;;  %v3977_v3 = vpop.permute.xlu0 %1005 }
  0xd3   : > { %6580 = vst [vmem:[#allocation35_spill] sm:$0xff] %v3975_v19  ;;  %6581 = vst [vmem:[#allocation36_spill] sm:$0xff] %v3977_v3 }
  0xd5   : > { %1527 = vperm.xlu1 %3322, %v3816_v60   ;;  %3324 = vset.pattern.permute.xlu0 %v3475_v51 }
  0xd6   : > { %1641 = vperm.xlu0 %3324, %v3584_v1  }
  0xd7   : > { %v3981_v18 = vpop.permute.xlu1 %1120  ;;  %v3983_v50 = vpop.permute.xlu0 %1116 }
  0xd8   : > { %6582 = vst [vmem:[#allocation37_spill] sm:$0xff] %v3981_v18  ;;  %6583 = vst [vmem:[#allocation38_spill] sm:$0xff] %v3983_v50 }
  0xd9   : > { %1535 = vperm.xlu1 %3322, %v3832_v2  }
  0xda   : > { %1653 = vperm.xlu0 %3324, %v3607_v8  }
  0xdb   : > { %v3987_v23 = vpop.permute.xlu1 %1124  ;;  %v3989_v55 = vpop.permute.xlu0 %1128 }
  0xdc   : > { %6584 = vst [vmem:[#allocation39_spill] sm:$0xff] %v3987_v23  ;;  %6585 = vst [vmem:[#allocation40_spill] sm:$0xff] %v3989_v55 }
  0xdd   : > { %3325 = vset.pattern.permute.xlu1 %v3475_v51 }
  0xde   : > { %1645 = vperm.xlu1 %3325, %v3612_v9   ;;  %1661 = vperm.xlu0 %3324, %v3625_v12  }
  0xdf   : > { %v3993_v3 = vpop.permute.xlu1 %1132  ;;  %v3995_v47 = vpop.permute.xlu0 %1136 }
  0xe2   : > { %1649 = vperm.xlu1 %3325, %v3579_v0   ;;  %1669 = vperm.xlu0 %3324, %v3640_v16  }
  0xe3   : > { %v3999_v50 = vpop.permute.xlu1 %1140  ;;  %v4001_v18 = vpop.permute.xlu0 %1144 }
  0xe6   : > { %1657 = vperm.xlu1 %3325, %v3630_v13   ;;  %1677 = vperm.xlu0 %3324, %v3656_v20  }
  0xe7   : > { %v4005_v51 = vpop.permute.xlu1 %1148  ;;  %v4007_v23 = vpop.permute.xlu0 %1152 }
  0xea   : > { %1665 = vperm.xlu1 %3325, %v3645_v17   ;;  %1685 = vperm.xlu0 %3324, %v3672_v24  }
  0xeb   : > { %v4011_v15 = vpop.permute.xlu1 %1156  ;;  %v4013_v11 = vpop.permute.xlu0 %1160 }
  0xee   : > { %1673 = vperm.xlu1 %3325, %v3661_v21   ;;  %1693 = vperm.xlu0 %3324, %v3688_v28  }
  0xef   : > { %v4017_v54 = vpop.permute.xlu1 %1164  ;;  %v4019_v42 = vpop.permute.xlu0 %1168 }
  0xf0   : > { %6586 = vst [vmem:[#allocation41_spill] sm:$0xff] %v4017_v54  ;;  %6587 = vst [vmem:[#allocation42_spill] sm:$0xff] %v4019_v42 }
  0xf2   : > { %1681 = vperm.xlu1 %3325, %v3677_v25   ;;  %1701 = vperm.xlu0 %3324, %v3704_v32  }
  0xf3   : > { %v4023_v19 = vpop.permute.xlu1 %1172  ;;  %v4025_v55 = vpop.permute.xlu0 %1176 }
  0xf4   : > { %6588 = vst [vmem:[#allocation43_spill] sm:$0xff] %v4023_v19  ;;  %6589 = vst [vmem:[#allocation44_spill] sm:$0xff] %v4025_v55  ;;  %v3167_v22 = vpop.f32.mrb[0].mxu0 }
  0xf5   : > { %v4032_v14 = vpop.f32.mrb[1].mxu0  ;;  %v4041_v19 = vadd.f32 %v3167_v22, %v4030_v7 }
  0xf6   : > { %6590 = vst [vmem:[#allocation45_spill] sm:$0xff] %v4032_v14  ;;  %1689 = vperm.xlu1 %3325, %v3693_v29   ;;  %1709 = vperm.xlu0 %3324, %v3720_v36  }
  0xf7   : > { %v4036_v42 = vpop.permute.xlu1 %1180  ;;  %v4038_v32 = vpop.permute.xlu0 %1184  ;;  %6593 = vst [vmem:[#allocation48_spill] sm:$0xff] %v4041_v19  ;;  %v6599_v5 = vrot.slane %v4041_v19, 7 }
  0xf8   : > { %6591 = vst [vmem:[#allocation46_spill] sm:$0xff] %v4036_v42  ;;  %6592 = vst [vmem:[#allocation47_spill] sm:$0xff] %v4038_v32  ;;  %v3170_v10 = vpop.f32.mrb[2].mxu0  ;;  %v4071_v32 = vld [vmem:[%s6330_s3] ss:$0 sm:$0xff] }
  0xf9   : > { %v4044_v62 = vadd.f32 %v3170_v10, %v4030_v7  ;;  %v520_v6 = vpop.f32.mrb[3].mxu0 }
  0xfa   : > { %v4049_v63 = vadd.f32 %v4030_v7, %v520_v6  ;;  %1697 = vperm.xlu1 %3325, %v3709_v33   ;;  %1717 = vperm.xlu0 %3324, %v3736_v40  }
  0xfb   : > { %6594 = vst [vmem:[#allocation49_spill] sm:$0xff] %v4044_v62  ;;  %v4053_v36 = vpop.permute.xlu1 %1188  ;;  %v4055_v42 = vpop.permute.xlu0 %1192  ;;  %v1310_v22 = vrot.slane %v4044_v62, 1 }
  0xfc   : > { %6595 = vst [vmem:[#allocation50_spill] sm:$0xff] %v4049_v63  ;;  %6596 = vst [vmem:[#allocation51_spill] sm:$0xff] %v4053_v36  ;;  %v750_v10 = vrot.slane %v4049_v63, 7  ;;  %v3173_v59 = vpop.f32.mrb[4].mxu0  ;;  %v4076_v36 = vld [vmem:[%s6330_s3 + $0x1] ss:$0 sm:$0xff] }
  0xfd   : > { %6597 = vst [vmem:[#allocation52_spill] sm:$0xff] %v4055_v42  ;;  %v530_v6 = vpop.f32.mrb[5].mxu0  ;;  %v1087_v55 = vmul.f32 %v4076_v36, %v4049_v63  ;;  %v6603_v19 = vrot.slane %v4049_v63, 1  ;;  %v4109_v20 = vadd.f32 %v3173_v59, %v4030_v7 }
  0xfe   : > { %v4064_v40 = vadd.f32 %v4030_v7, %v530_v6  ;;  %1705 = vperm.xlu1 %3325, %v3725_v37   ;;  %1725 = vperm.xlu0 %3324, %v3752_v44   ;;  %v4082_v6 = vsel %vm782_vm2, %v6599_v5, %v750_v10  ;;  %v4091_v44 = vld [vmem:[%s6330_s3 + $0x4] ss:$0 sm:$0xff] }
  0xff   : > { %6600 = vst [vmem:[#allocation54_spill] sm:$0xff] %v4082_v6  ;;  %v4084_v42 = vpop.permute.xlu1 %1196  ;;  %v4086_v28 = vpop.permute.xlu0 %1200  ;;  %v825_v24 = vmul.f32 %v4071_v32, %v4082_v6  ;;  %v4101_v5 = vsel %vm1339_vm1, %v6603_v19, %v1310_v22  ;;  %6605 = vst [vmem:[#allocation58_spill] sm:$0xff] %v4109_v20  ;;  %v6353_v29 = vrot.slane %v4109_v20, 1 }
 0x100   : > { %6598 = vst [vmem:[#allocation53_spill] sm:$0xff] %v4064_v40  ;;  %6601 = vst [vmem:[#allocation55_spill] sm:$0xff] %v4084_v42  ;;  %v751_v42 = vrot.slane %v4044_v62, 7  ;;  %v3176_v14 = vpop.f32.mrb[6].mxu0  ;;  %v720_v46 = vmul.f32 %v4091_v44, %v4064_v40  ;;  %v1311_v33 = vrot.slane %v4064_v40, 1  ;;  %v1089_v59 = vmul.f32 %v4076_v36, %v4064_v40 }
 0x101   : > { %6602 = vst [vmem:[#allocation56_spill] sm:$0xff] %v4086_v28  ;;  %6604 = vst [vmem:[#allocation57_spill] sm:$0xff] %v4101_v5  ;;  %v752_v28 = vrot.slane %v4064_v40, 7  ;;  %v540_v37 = vpop.f32.mrb[7].mxu0  ;;  %v1017_v6 = vmul.f32 %v3899_v27, %v825_v24  ;;  %v1247_v27 = vmul.f32 %v3993_v3, %v1087_v55  ;;  %v4164_v40 = vadd.f32 %v3176_v14, %v4030_v7 }
 0x102   : > { %v4112_v63 = vadd.f32 %v4030_v7, %v540_v37  ;;  %1713 = vperm.xlu1 %3325, %v3741_v41   ;;  %1733 = vperm.xlu0 %3324, %v3768_v48   ;;  %v4147_v55 = vsel %vm1339_vm1, %v1311_v33, %v6353_v29  ;;  %v753_v29 = vrot.slane %v4109_v20, 7 }
 0x103   : > { %v4118_v19 = vsel %vm782_vm2, %v751_v42, %v752_v28  ;;  %v4121_v16 = vpop.permute.xlu1 %1204  ;;  %v4123_v54 = vpop.permute.xlu0 %1208  ;;  %v1049_v24 = vadd.f32 %v1017_v6, %v720_v46  ;;  %v1088_v46 = vmul.f32 %v4076_v36, %v4044_v62  ;;  %6611 = vst [vmem:[#allocation64_spill] sm:$0xff] %v4147_v55  ;;  %v4151_v6 = vsel %vm782_vm2, %v750_v10, %v751_v42 }
 0x104   : > { %6606 = vst [vmem:[#allocation59_spill] sm:$0xff] %v4112_v63  ;;  %6607 = vst [vmem:[#allocation60_spill] sm:$0xff] %v4118_v19  ;;  %v827_v37 = vmul.f32 %v4071_v32, %v4118_v19  ;;  %v3179_v48 = vpop.f32.mrb[8].mxu0  ;;  %v722_v41 = vmul.f32 %v4091_v44, %v4112_v63  ;;  %v4168_v10 = vsel %vm1339_vm1, %v1310_v22, %v1311_v33 }
 0x105   : > { %6608 = vst [vmem:[#allocation61_spill] sm:$0xff] %v4121_v16  ;;  %6609 = vst [vmem:[#allocation62_spill] sm:$0xff] %v4123_v54  ;;  %v4134_v12 = vadd.f32 %v3179_v48, %v4030_v7  ;;  %v550_v16 = vpop.f32.mrb[9].mxu0  ;;  %v4136_v54 = vadd.f32 %v1247_v27, %v1049_v24  ;;  %v826_v48 = vmul.f32 %v4071_v32, %v4151_v6 }
 0x106   : > { %v1019_v3 = vmul.f32 %v3905_v31, %v827_v37  ;;  %1721 = vperm.xlu1 %3325, %v3757_v45   ;;  %1741 = vperm.xlu0 %3324, %v3784_v52   ;;  %6612 = vst [vmem:[#allocation65_spill] sm:$0xff] %v4151_v6  ;;  %v1249_v37 = vmul.f32 %v3999_v50, %v1089_v59  ;;  %6615 = vst [vmem:[#allocation68_spill] sm:$0xff] %v4164_v40 }
 0x107   : > { %6610 = vst [vmem:[#allocation63_spill] sm:$0xff] %v4134_v12  ;;  %v4153_v24 = vpop.permute.xlu1 %1212  ;;  %v4155_v31 = vpop.permute.xlu0 %1216  ;;  %v721_v52 = vmul.f32 %v4091_v44, %v4109_v20  ;;  %6616 = vst [vmem:[#allocation69_spill] sm:$0xff] %v4168_v10  ;;  %v1248_v19 = vmul.f32 %v3995_v47, %v1088_v46  ;;  %v723_v46 = vmul.f32 %v4091_v44, %v4164_v40 }
 0x108   : > { %6613 = vst [vmem:[#allocation66_spill] sm:$0xff] %v4153_v24  ;;  %6614 = vst [vmem:[#allocation67_spill] sm:$0xff] %v4155_v31  ;;  %v1051_v27 = vadd.f32 %v1019_v3, %v722_v41  ;;  %v3182_v42 = vpop.f32.mrb[10].mxu0  ;;  %v1018_v3 = vmul.f32 %v3897_v26, %v826_v48 }
 0x109   : > { %v4171_v41 = vadd.f32 %v3182_v42, %v4030_v7  ;;  %v560_v50 = vpop.f32.mrb[11].mxu0 }
 0x10a   : > { %v4173_v59 = vadd.f32 %v1249_v37, %v1051_v27  ;;  %v4178_v6 = vadd.f32 %v4030_v7, %v560_v50  ;;  %1729 = vperm.xlu1 %3325, %v3773_v49   ;;  %1749 = vperm.xlu0 %3324, %v3800_v56   ;;  %v1050_v22 = vadd.f32 %v1018_v3, %v721_v52  ;;  %v755_v52 = vrot.slane %v4164_v40, 7 }
 0x10b   : > { %6617 = vst [vmem:[#allocation70_spill] sm:$0xff] %v4171_v41  ;;  %v4182_v14 = vpop.permute.xlu1 %1220  ;;  %v4184_v33 = vpop.permute.xlu0 %1224  ;;  %v4190_v27 = vsel %vm782_vm2, %v752_v28, %v753_v29  ;;  %v1090_v28 = vmul.f32 %v4076_v36, %v4109_v20 }
 0x10c   : > { %6618 = vst [vmem:[#allocation71_spill] sm:$0xff] %v4178_v6  ;;  %6619 = vst [vmem:[#allocation72_spill] sm:$0xff] %v4182_v14  ;;  %v4186_v42 = vpop.f32.mrb[12].mxu0  ;;  %v4192_v47 = vadd.f32 %v1248_v19, %v1050_v22  ;;  %v828_v56 = vmul.f32 %v4071_v32, %v4190_v27  ;;  %v754_v19 = vrot.slane %v4112_v63, 7 }
 0x10d   : > { %6620 = vst [vmem:[#allocation73_spill] sm:$0xff] %v4184_v33  ;;  %6621 = vst [vmem:[#allocation74_spill] sm:$0xff] %v4190_v27  ;;  %v570_v26 = vpop.f32.mrb[13].mxu0 }
 0x10e   : > { %v4197_v37 = vadd.f32 %v4030_v7, %v570_v26  ;;  %1737 = vperm.xlu1 %3325, %v3789_v53   ;;  %1757 = vperm.xlu0 %3324, %v3816_v60   ;;  %v1020_v22 = vmul.f32 %v3903_v30, %v828_v56  ;;  %v1250_v60 = vmul.f32 %v4001_v18, %v1090_v28 }
 0x10f   : > { %v4207_v48 = vpop.permute.xlu1 %1228  ;;  %v4209_v50 = vpop.permute.xlu0 %1232  ;;  %v4216_v26 = vadd.f32 %v4030_v7, %v550_v16  ;;  %v1092_v28 = vmul.f32 %v4076_v36, %v4164_v40 }
 0x110   : > { %6622 = vst [vmem:[#allocation75_spill] sm:$0xff] %v4197_v37  ;;  %6623 = vst [vmem:[#allocation76_spill] sm:$0xff] %v4207_v48  ;;  %v4211_v3 = vpop.f32.mrb[14].mxu0  ;;  %v1052_v62 = vadd.f32 %v1020_v22, %v723_v46  ;;  %v757_v22 = vrot.slane %v4134_v12, 7 }
 0x111   : > { %6624 = vst [vmem:[#allocation77_spill] sm:$0xff] %v4209_v50  ;;  %6625 = vst [vmem:[#allocation78_spill] sm:$0xff] %v4216_v26  ;;  %v4218_v27 = vpop.f32.mrb[15].mxu0  ;;  %v4228_v50 = vsel %vm782_vm2, %v754_v19, %v755_v52  ;;  %v756_v16 = vrot.slane %v4216_v26, 7 }
 0x112   : > { %1745 = vperm.xlu1 %3325, %v3805_v57   ;;  %1765 = vperm.xlu0 %3324, %v3832_v2   ;;  %6628 = vst [vmem:[#allocation81_spill] sm:$0xff] %v4228_v50  ;;  %v4232_v18 = vadd.f32 %v1250_v60, %v1052_v62  ;;  %v725_v2 = vmul.f32 %v4091_v44, %v4134_v12  ;;  %v4253_v60 = vld [vmem:[%s6330_s3 + $0x2] ss:$0 sm:$0xff] }
 0x113   : > { %v4222_v33 = vpop.permute.xlu1 %1236  ;;  %v4224_v48 = vpop.permute.xlu0 %1240  ;;  %v830_v46 = vmul.f32 %v4071_v32, %v4228_v50  ;;  %v4247_v62 = vsel %vm782_vm2, %v753_v29, %v754_v19  ;;  %v4269_v29 = vsel %vm782_vm2, %v755_v52, %v756_v16 }
 0x114   : > { %6626 = vst [vmem:[#allocation79_spill] sm:$0xff] %v4222_v33  ;;  %6627 = vst [vmem:[#allocation80_spill] sm:$0xff] %v4224_v48  ;;  %v4230_v30 = vpop.f32.mrb[16].mxu0  ;;  %v3476_v33 = vmov 4   ;;  %v1252_v48 = vmul.f32 %v4007_v23, %v1092_v28  ;;  %v1382_v23 = vmul.f32 %v4253_v60, %v4101_v5  ;;  %v1313_v28 = vrot.slane %v4112_v63, 1 }
 0x115   : > { %v4235_v56 = vpop.f32.mrb[17].mxu0  ;;  %6630 = vst [vmem:[#allocation83_spill] sm:$0xff] %v4247_v62  ;;  %v1022_v50 = vmul.f32 %v3909_v34, %v830_v46  ;;  %6633 = vst [vmem:[#allocation86_spill] sm:$0xff] %v4269_v29  ;;  %v4277_v46 = vsel %vm782_vm2, %v756_v16, %v757_v22  ;;  %v727_v34 = vmul.f32 %v4091_v44, %v4171_v41 }
 0x116   : > { %6629 = vst [vmem:[#allocation82_spill] sm:$0xff] %v4235_v56  ;;  %1753 = vperm.xlu1 %3325, %v3821_v61   ;;  %3327 = vset.pattern.permute.xlu0 %v3476_v33  ;;  %6634 = vst [vmem:[#allocation87_spill] sm:$0xff] %v4277_v46  ;;  %v832_v16 = vmul.f32 %v4071_v32, %v4277_v46 }
 0x117   : > { %1875 = vperm.xlu0 %3327, %v3612_v9   ;;  %v829_v9 = vmul.f32 %v4071_v32, %v4247_v62  ;;  %v1054_v19 = vadd.f32 %v1022_v50, %v725_v2 }
 0x118   : > { %v4257_v56 = vpop.f32.mrb[18].mxu0  ;;  %v4259_v61 = vpop.permute.xlu1 %1411  ;;  %v1024_v46 = vmul.f32 %v3915_v38, %v832_v16  ;;  %v1383_v16 = vmul.f32 %v4253_v60, %v4168_v10 }
 0x119   : > { %6631 = vst [vmem:[#allocation84_spill] sm:$0xff] %v4259_v61  ;;  %v4261_v31 = vpop.permute.xlu0 %1415  ;;  %v4263_v14 = vpop.f32.mrb[19].mxu0  ;;  %v1314_v61 = vrot.slane %v4164_v40, 1  ;;  %v4282_v52 = vadd.f32 %v1252_v48, %v1054_v19  ;;  %v1384_v48 = vmul.f32 %v4253_v60, %v4147_v55  ;;  %v724_v19 = vmul.f32 %v4091_v44, %v4216_v26 }
 0x11a   : > { %6632 = vst [vmem:[#allocation85_spill] sm:$0xff] %v4261_v31  ;;  %1761 = vperm.xlu1 %3325, %v3837_v4   ;;  %v831_v4 = vmul.f32 %v4071_v32, %v4269_v29  ;;  %v1021_v5 = vmul.f32 %v3911_v35, %v829_v9  ;;  %v6636_v29 = vrot.slane %v4178_v6, 7  ;;  %v1091_v55 = vmul.f32 %v4076_v36, %v4112_v63 }
 0x11b   : > { %1887 = vperm.xlu0 %3327, %v3630_v13   ;;  %v1094_v13 = vmul.f32 %v4076_v36, %v4134_v12  ;;  %v4317_v35 = vsel %vm1339_vm1, %v1313_v28, %v1314_v61  ;;  %v1056_v9 = vadd.f32 %v1024_v46, %v727_v34  ;;  %v1093_v46 = vmul.f32 %v4076_v36, %v4216_v26 }
 0x11c   : > { %v4284_v50 = vpop.f32.mrb[20].mxu0  ;;  %v4286_v2 = vpop.permute.xlu1 %1419  ;;  %v4307_v62 = vsel %vm782_vm2, %v757_v22, %v6636_v29  ;;  %6638 = vst [vmem:[#allocation90_spill] sm:$0xff] %v4317_v35  ;;  %v1053_v63 = vadd.f32 %v1021_v5, %v724_v19 }
 0x11d   : > { %6635 = vst [vmem:[#allocation88_spill] sm:$0xff] %v4286_v2  ;;  %v1428_v31 = vpop.permute.xlu0 %1427  ;;  %v4296_v40 = vpop.f32.mrb[21].mxu0  ;;  %6637 = vst [vmem:[#allocation89_spill] sm:$0xff] %v4307_v62  ;;  %v1254_v24 = vmul.f32 %v4013_v11, %v1094_v13  ;;  %v6639_v13 = vrot.slane %v4109_v20, 1 }
 0x11e   : > { %v1542_v2 = vmul.f32 %v1428_v31, %v1382_v23  ;;  %3326 = vset.pattern.permute.xlu1 %v3476_v33  ;;  %v1315_v31 = vrot.slane %v4216_v26, 1  ;;  %v1316_v33 = vrot.slane %v4134_v12, 1 }
 0x11f   : > { %1871 = vperm.xlu1 %3326, %v3584_v1   ;;  %1895 = vperm.xlu0 %3327, %v3645_v17   ;;  %v726_v1 = vmul.f32 %v4091_v44, %v4178_v6  ;;  %v1023_v17 = vmul.f32 %v3917_v39, %v831_v4  ;;  %v1386_v39 = vmul.f32 %v4253_v60, %v4317_v35  ;;  %v1317_v4 = vrot.slane %v4178_v6, 1  ;;  %v6695_v35 = vld [vmem:[#allocation55_spill] sm:$0xff] }
 0x120   : > { %v4322_v22 = vadd.f32 %v1542_v2, %v4136_v54  ;;  %v4324_v38 = vpop.f32.mrb[22].mxu0  ;;  %v4326_v11 = vpop.permute.xlu1 %1423  ;;  %v4339_v54 = vsel %vm1339_vm1, %v6639_v13, %v1313_v28  ;;  %v833_v2 = vmul.f32 %v4071_v32, %v4307_v62  ;;  %v4345_v34 = vadd.f32 %v1254_v24, %v1056_v9 }
 0x121   : > { %v1436_v29 = vpop.permute.xlu0 %1435  ;;  %v4331_v23 = vpop.f32.mrb[23].mxu0  ;;  %6640 = vst [vmem:[#allocation91_spill] sm:$0xff] %v4339_v54  ;;  %v4353_v28 = vsel %vm1339_vm1, %v1315_v31, %v1316_v33  ;;  %v1055_v9 = vadd.f32 %v1023_v17, %v726_v1  ;;  %v4369_v20 = vsel %vm1339_vm1, %v1314_v61, %v1315_v31  ;;  %v1253_v61 = vmul.f32 %v4011_v15, %v1093_v46 }
 0x122   : > { %v1544_v12 = vmul.f32 %v1436_v29, %v1384_v48  ;;  %6641 = vst [vmem:[#allocation92_spill] sm:$0xff] %v4353_v28  ;;  %6643 = vst [vmem:[#allocation94_spill] sm:$0xff] %v4369_v20  ;;  %v6644_v31 = vrot.slane %v4171_v41, 1 }
 0x123   : > { %1879 = vperm.xlu1 %3326, %v3579_v0   ;;  %1903 = vperm.xlu0 %3327, %v3661_v21   ;;  %v1251_v0 = vmul.f32 %v4005_v51, %v1091_v55  ;;  %v1385_v21 = vmul.f32 %v4253_v60, %v4339_v54  ;;  %v1388_v51 = vmul.f32 %v4253_v60, %v4353_v28  ;;  %v6700_v28 = vld [vmem:[#allocation28_spill] sm:$0xff] }
 0x124   : > { %v4358_v48 = vadd.f32 %v1544_v12, %v4173_v59  ;;  %v4360_v24 = vpop.f32.mrb[24].mxu0  ;;  %v1432_v19 = vpop.permute.xlu1 %1431  ;;  %v728_v12 = vmul.f32 %v4091_v44, %v4197_v37  ;;  %v1025_v59 = vmul.f32 %v3923_v43, %v833_v2  ;;  %v4386_v1 = vsel %vm1339_vm1, %v1317_v4, %v6644_v31  ;;  %v6654_v31 = vld [vmem:[#allocation41_spill] sm:$0xff] }
 0x125   : > { %v1543_v29 = vmul.f32 %v1432_v19, %v1383_v16  ;;  %v1444_v13 = vpop.permute.xlu0 %1443  ;;  %v4365_v26 = vpop.f32.mrb[25].mxu0  ;;  %v1283_v5 = vadd.f32 %v1251_v0, %v1053_v63  ;;  %6645 = vst [vmem:[#allocation95_spill] sm:$0xff] %v4386_v1  ;;  %v4390_v43 = vadd.f32 %v4186_v42, %v4030_v7  ;;  %v4408_v0 = vsel %vm1339_vm1, %v1316_v33, %v1317_v4 }
 0x126   : > { %6642 = vst [vmem:[#allocation93_spill] sm:$0xff] %v4358_v48  ;;  %v1546_v10 = vmul.f32 %v1444_v13, %v1386_v39  ;;  %v1285_v39 = vadd.f32 %v1253_v61, %v1055_v9  ;;  %v1057_v19 = vadd.f32 %v1025_v59, %v728_v12  ;;  %6650 = vst [vmem:[#allocation100_spill] sm:$0xff] %v4408_v0  ;;  %v6651_v13 = vld [vmem:[#allocation5_spill] sm:$0xff]  ;;  %v6383_v12 = vrot.slane %v4197_v37, 7 }
 0x127   : > { %v4377_v55 = vadd.f32 %v1543_v29, %v4192_v47  ;;  %1883 = vperm.xlu1 %3326, %v3607_v8   ;;  %1911 = vperm.xlu0 %3327, %v3677_v25   ;;  %6646 = vst [vmem:[#allocation96_spill] sm:$0xff] %v4390_v43  ;;  %v1387_v8 = vmul.f32 %v4253_v60, %v4369_v20  ;;  %v6382_v9 = vrot.slane %v4390_v43, 7 }
 0x128   : > { %v4392_v63 = vadd.f32 %v1546_v10, %v1283_v5  ;;  %v3206_v47 = vpop.f32.mrb[26].mxu0  ;;  %v1440_v17 = vpop.permute.xlu1 %1439  ;;  %v1095_v25 = vmul.f32 %v4076_v36, %v4178_v6  ;;  %v1390_v5 = vmul.f32 %v4253_v60, %v4386_v1 }
 0x129   : > { %v4399_v15 = vadd.f32 %v3206_v47, %v4030_v7  ;;  %v1545_v16 = vmul.f32 %v1440_v17, %v1385_v21  ;;  %v1452_v2 = vpop.permute.xlu0 %1451  ;;  %v640_v46 = vpop.f32.mrb[27].mxu0  ;;  %v6652_v21 = vld [vmem:[#allocation10_spill] sm:$0xff] }
 0x12a   : > { %6647 = vst [vmem:[#allocation97_spill] sm:$0xff] %v4392_v63  ;;  %v1548_v42 = vmul.f32 %v1452_v2, %v1388_v51  ;;  %v4402_v10 = vadd.f32 %v4030_v7, %v640_v46  ;;  %v1255_v47 = vmul.f32 %v6654_v31, %v1095_v25 }
 0x12b   : > { %6648 = vst [vmem:[#allocation98_spill] sm:$0xff] %v4399_v15  ;;  %v4411_v29 = vadd.f32 %v1545_v16, %v4232_v18  ;;  %1891 = vperm.xlu1 %3326, %v6651_v13   ;;  %1919 = vperm.xlu0 %3327, %v6652_v21   ;;  %v1389_v18 = vmul.f32 %v4253_v60, %v4408_v0  ;;  %v6657_v13 = vld [vmem:[#allocation6_spill] sm:$0xff] }
 0x12c   : > { %6649 = vst [vmem:[#allocation99_spill] sm:$0xff] %v4402_v10  ;;  %v4417_v59 = vadd.f32 %v1548_v42, %v1285_v39  ;;  %v4419_v51 = vpop.f32.mrb[28].mxu0  ;;  %v1448_v61 = vpop.permute.xlu1 %1447  ;;  %v4426_v16 = vadd.f32 %v4211_v3, %v4030_v7  ;;  %v1287_v2 = vadd.f32 %v1255_v47, %v1057_v19  ;;  %v4446_v3 = vsel %vm782_vm2, %v6383_v12, %v6382_v9  ;;  %v6667_v9 = vld [vmem:[#allocation45_spill] sm:$0xff] }
 0x12d   : > { %v1547_v33 = vmul.f32 %v1448_v61, %v1387_v8  ;;  %v1460_v4 = vpop.permute.xlu0 %1459  ;;  %v650_v17 = vpop.f32.mrb[29].mxu0  ;;  %v6658_v8 = vld [vmem:[#allocation11_spill] sm:$0xff]  ;;  %v4474_v12 = vadd.f32 %v4030_v7, %v6667_v9 }
 0x12e   : > { %6653 = vst [vmem:[#allocation5_spill] sm:$0xff] %v4417_v59  ;;  %6655 = vst [vmem:[#allocation10_spill] sm:$0xff] %v4426_v16  ;;  %v1550_v46 = vmul.f32 %v1460_v4, %v1390_v5  ;;  %v4429_v39 = vadd.f32 %v4030_v7, %v650_v17  ;;  %v731_v47 = vmul.f32 %v4091_v44, %v4426_v16  ;;  %v6389_v17 = vrot.slane %v4390_v43, 1 }
 0x12f   : > { %v4432_v42 = vadd.f32 %v1547_v33, %v4282_v52  ;;  %1899 = vperm.xlu1 %3326, %v6657_v13   ;;  %1927 = vperm.xlu0 %3327, %v6658_v8   ;;  %6660 = vst [vmem:[#allocation11_spill] sm:$0xff] %v4446_v3  ;;  %v4450_v52 = vadd.f32 %v4030_v7, %v4218_v27  ;;  %v6665_v27 = vld [vmem:[#allocation12_spill] sm:$0xff]  ;;  %v6666_v8 = vld [vmem:[#allocation19_spill] sm:$0xff] }
 0x130   : > { %6656 = vst [vmem:[#allocation41_spill] sm:$0xff] %v4429_v39  ;;  %v4436_v25 = vadd.f32 %v1550_v46, %v1287_v2  ;;  %v4438_v21 = vpop.f32.mrb[30].mxu0  ;;  %v1456_v61 = vpop.permute.xlu1 %1455  ;;  %v836_v33 = vmul.f32 %v4071_v32, %v4446_v3  ;;  %v6664_v2 = vld [vmem:[#allocation7_spill] sm:$0xff]  ;;  %v1098_v46 = vmul.f32 %v4076_v36, %v4390_v43 }
 0x131   : > { %6661 = vst [vmem:[#allocation101_spill] sm:$0xff] %v4450_v52  ;;  %v1549_v19 = vmul.f32 %v1456_v61, %v1389_v18  ;;  %v4452_v5 = vpop.permute.xlu0 %1467  ;;  %v4454_v31 = vpop.f32.mrb[31].mxu0  ;;  %v6388_v18 = vrot.slane %v4450_v52, 1  ;;  %6668 = vst [vmem:[#allocation7_spill] sm:$0xff] %v4474_v12 }
 0x132   : > { %6659 = vst [vmem:[#allocation6_spill] sm:$0xff] %v4436_v25  ;;  %6662 = vst [vmem:[#allocation102_spill] sm:$0xff] %v4452_v5  ;;  %v1028_v61 = vmul.f32 %v6666_v8, %v836_v33  ;;  %v6674_v8 = vld [vmem:[#allocation8_spill] sm:$0xff] }
 0x133   : > { %v4461_v4 = vadd.f32 %v1549_v19, %v4345_v34  ;;  %1907 = vperm.xlu1 %3326, %v6664_v2   ;;  %1935 = vperm.xlu0 %3327, %v6665_v27   ;;  %v4478_v34 = vadd.f32 %v4030_v7, %v4263_v14  ;;  %v6671_v2 = vld [vmem:[#allocation44_spill] sm:$0xff]  ;;  %v4489_v20 = vsel %vm1339_vm1, %v6389_v17, %v6388_v18 }
 0x134   : > { %v4469_v13 = vpop.permute.xlu1 %1463  ;;  %v1258_v27 = vmul.f32 %v6671_v2, %v1098_v46  ;;  %6672 = vst [vmem:[#allocation45_spill] sm:$0xff] %v4489_v20  ;;  %v1060_v33 = vadd.f32 %v1028_v61, %v731_v47  ;;  %v1393_v9 = vmul.f32 %v4253_v60, %v4489_v20  ;;  %v4495_v14 = vadd.f32 %v4230_v30, %v4030_v7 }
 0x135   : > { %6663 = vst [vmem:[#allocation103_spill] sm:$0xff] %v4461_v4  ;;  %6669 = vst [vmem:[#allocation12_spill] sm:$0xff] %v4478_v34  ;;  %v4480_v19 = vpop.permute.xlu0 %1475  ;;  %v6390_v2 = vrot.slane %v4474_v12, 7  ;;  %v766_v5 = vrot.slane %v4478_v34, 7  ;;  %v4505_v47 = vadd.f32 %v4030_v7, %v4296_v40  ;;  %v4521_v40 = vadd.f32 %v4284_v50, %v4030_v7 }
 0x136   : > { %6670 = vst [vmem:[#allocation19_spill] sm:$0xff] %v4480_v19  ;;  %6673 = vst [vmem:[#allocation44_spill] sm:$0xff] %v4495_v14  ;;  %v6675_v19 = vld [vmem:[#allocation13_spill] sm:$0xff]  ;;  %v1290_v54 = vadd.f32 %v1258_v27, %v1060_v33  ;;  %v6391_v30 = vrot.slane %v4495_v14, 7 }
 0x137   : > { %1915 = vperm.xlu1 %3326, %v6674_v8   ;;  %1943 = vperm.xlu0 %3327, %v6675_v19   ;;  %6677 = vst [vmem:[#allocation13_spill] sm:$0xff] %v4505_v47  ;;  %v6679_v8 = vld [vmem:[#allocation9_spill] sm:$0xff]  ;;  %v4514_v19 = vadd.f32 %v4257_v56, %v4030_v7  ;;  %6682 = vst [vmem:[#allocation106_spill] sm:$0xff] %v4521_v40  ;;  %v736_v50 = vmul.f32 %v4091_v44, %v4505_v47  ;;  %v1327_v1 = vrot.slane %v4505_v47, 1 }
 0x138   : > { %v1472_v46 = vpop.permute.xlu1 %1471  ;;  %v737_v25 = vmul.f32 %v4091_v44, %v4521_v40 }
 0x139   : > { %v1553_v18 = vmul.f32 %v1472_v46, %v1393_v9  ;;  %v4501_v17 = vpop.permute.xlu0 %1483  ;;  %6680 = vst [vmem:[#allocation9_spill] sm:$0xff] %v4514_v19  ;;  %v4539_v46 = vsel %vm782_vm2, %v6391_v30, %v766_v5  ;;  %v1326_v33 = vrot.slane %v4514_v19, 1  ;;  %v3359_v30 = vld [vmem:[%s6332_s5 + $0x78] sm:$0xff]  ;;  %v767_v52 = vrot.slane %v4514_v19, 7 }
 0x13a   : > { %6676 = vst [vmem:[#allocation8_spill] sm:$0xff] %v4501_v17  ;;  %6687 = vst [vmem:[#allocation109_spill] sm:$0xff] %v4539_v46 }
 0x13b   : > { %v4508_v61 = vadd.f32 %v1553_v18, %v1290_v54  ;;  %1923 = vperm.xlu1 %3326, %v6679_v8   ;;  %1951 = vperm.xlu0 %3327, %v3757_v45   ;;  %v4525_v54 = vadd.f32 %v4324_v38, %v4030_v7  ;;  %v6684_v18 = vld [vmem:[#allocation48_spill] sm:$0xff]  ;;  %v841_v38 = vmul.f32 %v4071_v32, %v4539_v46  ;;  %v6690_v46 = vrot.slane %v4478_v34, 1 }
 0x13c   : > { %v4516_v27 = vpop.permute.xlu1 %1479  ;;  %v6685_v9 = vrot.slane %v6684_v18, 7  ;;  %v1103_v8 = vmul.f32 %v4076_v36, %v4478_v34 }
 0x13d   : > { %6678 = vst [vmem:[#allocation104_spill] sm:$0xff] %v4508_v61  ;;  %6681 = vst [vmem:[#allocation105_spill] sm:$0xff] %v4516_v27  ;;  %v1492_v56 = vpop.permute.xlu0 %1491  ;;  %v6689_v61 = vld [vmem:[#allocation26_spill] sm:$0xff]  ;;  %v1330_v4 = vrot.slane %v4525_v54, 1 }
 0x13e   : > { %6683 = vst [vmem:[#allocation107_spill] sm:$0xff] %v4525_v54  ;;  %v4533_v45 = vsel %vm782_vm2, %v6390_v2, %v6685_v9  ;;  %v4551_v2 = vadd.f32 %v4030_v7, %v4331_v23  ;;  %v1033_v17 = vmul.f32 %v6689_v61, %v841_v38  ;;  %v4566_v9 = vsel %vm1339_vm1, %v6690_v46, %v1326_v33 }
 0x13f   : > { %6686 = vst [vmem:[#allocation108_spill] sm:$0xff] %v4533_v45  ;;  %1931 = vperm.xlu1 %3326, %v3359_v30   ;;  %1959 = vperm.xlu0 %3327, %v3773_v49   ;;  %v4559_v27 = vmul.f32 %v4071_v32, %v4533_v45  ;;  %6691 = vst [vmem:[#allocation26_spill] sm:$0xff] %v4566_v9  ;;  %v4573_v30 = vadd.f32 %v4360_v24, %v4030_v7  ;;  %v769_v45 = vrot.slane %v4521_v40, 7 }
 0x140   : > { %6688 = vst [vmem:[#allocation110_spill] sm:$0xff] %v4551_v2  ;;  %v4568_v23 = vpop.permute.xlu1 %1487  ;;  %v4577_v49 = vadd.f32 %v4030_v7, %v4365_v26  ;;  %v1398_v61 = vmul.f32 %v4253_v60, %v4566_v9  ;;  %v1065_v16 = vadd.f32 %v1033_v17, %v736_v50  ;;  %v1263_v12 = vmul.f32 %v6695_v35, %v1103_v8  ;;  %v4595_v9 = vld [vmem:[%s6332_s5 + $0x88] sm:$0xff] }
 0x141   : > { %6692 = vst [vmem:[#allocation111_spill] sm:$0xff] %v4568_v23  ;;  %6693 = vst [vmem:[#allocation112_spill] sm:$0xff] %v4573_v30  ;;  %v1500_v38 = vpop.permute.xlu0 %1499  ;;  %v6696_v24 = vrot.slane %v4505_v47, 7  ;;  %v738_v35 = vmul.f32 %v4091_v44, %v4551_v2  ;;  %v1105_v50 = vmul.f32 %v4076_v36, %v4505_v47  ;;  %v1328_v46 = vrot.slane %v4521_v40, 1 }
 0x142   : > { %6694 = vst [vmem:[#allocation113_spill] sm:$0xff] %v4577_v49  ;;  %v1558_v0 = vmul.f32 %v1492_v56, %v1398_v61  ;;  %v1295_v17 = vadd.f32 %v1263_v12, %v1065_v16  ;;  %v4610_v12 = vsel %vm782_vm2, %v766_v5, %v767_v52  ;;  %v6701_v61 = vld [vmem:[#allocation61_spill] sm:$0xff]  ;;  %v740_v63 = vmul.f32 %v4091_v44, %v4577_v49 }
 0x143   : > { %v4589_v26 = vsel %vm782_vm2, %v767_v52, %v6696_v24  ;;  %1939 = vperm.xlu1 %3326, %v4595_v9   ;;  %1967 = vperm.xlu0 %3327, %v3789_v53   ;;  %6698 = vst [vmem:[#allocation114_spill] sm:$0xff] %v4610_v12  ;;  %v842_v53 = vmul.f32 %v4071_v32, %v4610_v12  ;;  %v1332_v62 = vrot.slane %v4573_v30, 1 }
 0x144   : > { %6697 = vst [vmem:[#allocation55_spill] sm:$0xff] %v4589_v26  ;;  %v843_v56 = vmul.f32 %v4071_v32, %v4589_v26  ;;  %v1496_v8 = vpop.permute.xlu1 %1495  ;;  %v4612_v20 = vadd.f32 %v1558_v0, %v1295_v17  ;;  %v1265_v59 = vmul.f32 %v6701_v61, %v1105_v50  ;;  %v4622_v24 = vsel %vm1339_vm1, %v1327_v1, %v1328_v46 }
 0x145   : > { %v1508_v16 = vpop.permute.xlu0 %1507  ;;  %6702 = vst [vmem:[#allocation28_spill] sm:$0xff] %v4622_v24  ;;  %v1104_v52 = vmul.f32 %v4076_v36, %v4514_v19  ;;  %v4628_v0 = vsel %vm1339_vm1, %v1326_v33, %v1327_v1  ;;  %v1400_v17 = vmul.f32 %v4253_v60, %v4622_v24  ;;  %v741_v48 = vmul.f32 %v4091_v44, %v4573_v30 }
 0x146   : > { %6699 = vst [vmem:[#allocation115_spill] sm:$0xff] %v4612_v20  ;;  %v1035_v26 = vmul.f32 %v6700_v28, %v843_v56  ;;  %6703 = vst [vmem:[#allocation61_spill] sm:$0xff] %v4628_v0  ;;  %v4633_v28 = vld [vmem:[%s6332_s5 + $0x98] sm:$0xff]  ;;  %v6705_v56 = vld [vmem:[#allocation25_spill] sm:$0xff]  ;;  %v1399_v61 = vmul.f32 %v4253_v60, %v4628_v0 }
 0x147   : > { %6704 = vst [vmem:[#allocation116_spill] sm:$0xff] %v4633_v28  ;;  %1947 = vperm.xlu1 %3326, %v4633_v28   ;;  %v1034_v50 = vmul.f32 %v6705_v56, %v842_v53  ;;  %1975 = vperm.xlu0 %3327, %v3805_v57   ;;  %v6706_v20 = vld [vmem:[#allocation56_spill] sm:$0xff]  ;;  %v1560_v0 = vmul.f32 %v1500_v38, %v1400_v17  ;;  %v4679_v17 = vld [vmem:[%s6332_s5 + $0xe0] sm:$0xff] }
 0x148   : > { %v1067_v5 = vadd.f32 %v1035_v26, %v738_v35  ;;  %v1504_v1 = vpop.permute.xlu1 %1503  ;;  %v1264_v12 = vmul.f32 %v6706_v20, %v1104_v52  ;;  %v6707_v26 = vrot.slane %v4551_v2, 7  ;;  %v1559_v57 = vmul.f32 %v1496_v8, %v1399_v61  ;;  %6712 = vst [vmem:[#allocation118_spill] sm:$0xff] %v4679_v17 }
 0x149   : > { %v4652_v53 = vpop.permute.xlu0 %1515  ;;  %v1066_v24 = vadd.f32 %v1034_v50, %v737_v25  ;;  %v1107_v20 = vmul.f32 %v4076_v36, %v4551_v2  ;;  %v1329_v52 = vrot.slane %v4551_v2, 1  ;;  %v739_v38 = vmul.f32 %v4091_v44, %v4525_v54 }
 0x14a   : > { %v4650_v35 = vsel %vm782_vm2, %v769_v45, %v6707_v26  ;;  %v1297_v56 = vadd.f32 %v1265_v59, %v1067_v5  ;;  %v4663_v26 = vld [vmem:[%s6332_s5 + $0xa8] sm:$0xff]  ;;  %v6710_v8 = vrot.slane %v4505_v47, 7 }
 0x14b   : > { %6708 = vst [vmem:[#allocation25_spill] sm:$0xff] %v4650_v35  ;;  %v845_v33 = vmul.f32 %v4071_v32, %v4650_v35  ;;  %1955 = vperm.xlu1 %3326, %v4663_v26   ;;  %v1296_v25 = vadd.f32 %v1264_v12, %v1066_v24  ;;  %1983 = vperm.xlu0 %3327, %v4679_v17   ;;  %v6714_v24 = vld [vmem:[#allocation66_spill] sm:$0xff] }
 0x14c   : > { %v4666_v59 = vadd.f32 %v1560_v0, %v1297_v56  ;;  %v4674_v5 = vsel %vm782_vm2, %v6710_v8, %v769_v45  ;;  %v1512_v50 = vpop.permute.xlu1 %1511  ;;  %v6713_v0 = vld [vmem:[#allocation30_spill] sm:$0xff]  ;;  %v1267_v12 = vmul.f32 %v6714_v24, %v1107_v20  ;;  %v4686_v56 = vsel %vm1339_vm1, %v1329_v52, %v1330_v4 }
 0x14d   : > { %6711 = vst [vmem:[#allocation117_spill] sm:$0xff] %v4674_v5  ;;  %v1037_v61 = vmul.f32 %v6713_v0, %v845_v33  ;;  %6715 = vst [vmem:[#allocation30_spill] sm:$0xff] %v4686_v56  ;;  %v844_v45 = vmul.f32 %v4071_v32, %v4674_v5  ;;  %v4690_v8 = vpop.permute.xlu0 %1523  ;;  %v4692_v47 = vadd.f32 %v1559_v57, %v1296_v25  ;;  %v6718_v0 = vld [vmem:[#allocation27_spill] sm:$0xff]  ;;  %v4710_v25 = vld [vmem:[%s6332_s5 + $0xb8] sm:$0xff]  ;;  %v1331_v5 = vrot.slane %v4577_v49, 1 }
 0x14e   : > { %6709 = vst [vmem:[#allocation56_spill] sm:$0xff] %v4666_v59  ;;  %v1402_v59 = vmul.f32 %v4253_v60, %v4686_v56  ;;  %v1106_v17 = vmul.f32 %v4076_v36, %v4521_v40  ;;  %v4700_v33 = vsel %vm1339_vm1, %v1328_v46, %v1329_v52  ;;  %v742_v57 = vmul.f32 %v4091_v44, %v4402_v10  ;;  %v6720_v56 = vld [vmem:[#allocation62_spill] sm:$0xff] }
 0x14f   : > { %6716 = vst [vmem:[#allocation66_spill] sm:$0xff] %v4692_v47  ;;  %6717 = vst [vmem:[#allocation119_spill] sm:$0xff] %v4700_v33  ;;  %v1069_v20 = vadd.f32 %v1037_v61, %v740_v63  ;;  %v1036_v24 = vmul.f32 %v6718_v0, %v844_v45  ;;  %v1401_v35 = vmul.f32 %v4253_v60, %v4700_v33  ;;  %1963 = vperm.xlu1 %3326, %v4710_v25   ;;  %v3365_v0 = vld [vmem:[%s6332_s5 + $0xf0] sm:$0xff] }
 0x150   : > { %6719 = vst [vmem:[#allocation27_spill] sm:$0xff] %v4710_v25  ;;  %v1562_v40 = vmul.f32 %v1508_v16, %v1402_v59  ;;  %v1266_v46 = vmul.f32 %v6720_v56, %v1106_v17  ;;  %v6721_v63 = vrot.slane %v4577_v49, 7  ;;  %v6722_v52 = vrot.slane %v4525_v54, 7  ;;  %1991 = vperm.xlu0 %3327, %v3365_v0   ;;  %v4727_v33 = vpop.permute.xlu1 %1519 }
 0x151   : > { %v1109_v45 = vmul.f32 %v4076_v36, %v4577_v49  ;;  %v1299_v16 = vadd.f32 %v1267_v12, %v1069_v20  ;;  %v1068_v59 = vadd.f32 %v1036_v24, %v739_v38  ;;  %v1561_v17 = vmul.f32 %v1504_v1, %v1401_v35  ;;  %v4731_v47 = vpop.permute.xlu0 %1531  ;;  %v6727_v12 = vld [vmem:[#allocation32_spill] sm:$0xff]  ;;  %v4752_v24 = vld [vmem:[%s6332_s5 + $0xc8] sm:$0xff] }
 0x152   : > { %v4720_v61 = vsel %vm782_vm2, %v6722_v52, %v6721_v63  ;;  %6724 = vst [vmem:[#allocation120_spill] sm:$0xff] %v4731_v47  ;;  %v6725_v63 = vld [vmem:[#allocation72_spill] sm:$0xff]  ;;  %v6728_v1 = vrot.slane %v4525_v54, 7  ;;  %v6729_v35 = vrot.slane %v4551_v2, 7  ;;  %6731 = vst [vmem:[#allocation121_spill] sm:$0xff] %v4752_v24  ;;  %v4779_v2 = vld [vmem:[%s6332_s5 + $0x80] sm:$0xff] }
 0x153   : > { %6723 = vst [vmem:[#allocation62_spill] sm:$0xff] %v4720_v61  ;;  %v847_v56 = vmul.f32 %v4071_v32, %v4720_v61  ;;  %v1269_v52 = vmul.f32 %v6725_v63, %v1109_v45  ;;  %v4738_v0 = vadd.f32 %v1562_v40, %v1299_v16  ;;  %v1298_v23 = vadd.f32 %v1266_v46, %v1068_v59 }
 0x154   : > { %v4747_v20 = vsel %vm782_vm2, %v6729_v35, %v6728_v1  ;;  %1971 = vperm.xlu1 %3326, %v4752_v24   ;;  %v4757_v40 = vsel %vm1339_vm1, %v1331_v5, %v1332_v62  ;;  %v1108_v45 = vmul.f32 %v4076_v36, %v4525_v54  ;;  %v4765_v16 = vsel %vm1339_vm1, %v1330_v4, %v1331_v5  ;;  %v6735_v5 = vld [vmem:[#allocation29_spill] sm:$0xff] }
 0x155   : > { %6726 = vst [vmem:[#allocation72_spill] sm:$0xff] %v4738_v0  ;;  %v1039_v38 = vmul.f32 %v6727_v12, %v847_v56  ;;  %6730 = vst [vmem:[#allocation32_spill] sm:$0xff] %v4747_v20  ;;  %v846_v46 = vmul.f32 %v4071_v32, %v4747_v20  ;;  %v6437_v59 = vmov 6   ;;  %v4768_v56 = vpop.permute.xlu1 %1527  ;;  %v4770_v63 = vadd.f32 %v1561_v17, %v1298_v23  ;;  %v4782_v4 = vpop.permute.xlu0 %1641  ;;  %v6736_v23 = vld [vmem:[#allocation67_spill] sm:$0xff] }
 0x156   : > { %6732 = vst [vmem:[#allocation122_spill] sm:$0xff] %v4757_v40  ;;  %6733 = vst [vmem:[#allocation123_spill] sm:$0xff] %v4765_v16  ;;  %3329 = vset.pattern.permute.xlu0 %v6437_v59  ;;  %v1404_v1 = vmul.f32 %v4253_v60, %v4757_v40  ;;  %v1403_v35 = vmul.f32 %v4253_v60, %v4765_v16  ;;  %v1268_v17 = vmul.f32 %v6736_v23, %v1108_v45  ;;  %v4802_v45 = vld [vmem:[%s6332_s5 + $0xd8] sm:$0xff] }
 0x157   : > { %v1071_v12 = vadd.f32 %v1039_v38, %v742_v57  ;;  %2395 = vperm.xlu0 %3329, %v4779_v2   ;;  %6734 = vst [vmem:[#allocation124_spill] sm:$0xff] %v4782_v4  ;;  %v1038_v59 = vmul.f32 %v6735_v5, %v846_v46  ;;  %v744_v57 = vmul.f32 %v4091_v44, %v4429_v39  ;;  %v6737_v38 = vrot.slane %v4402_v10, 7 }
 0x158   : > { %v6738_v54 = vrot.slane %v4573_v30, 7  ;;  %v1564_v24 = vmul.f32 %v4652_v53, %v1404_v1  ;;  %v1563_v0 = vmul.f32 %v1512_v50, %v1403_v35  ;;  %6740 = vst [vmem:[#allocation67_spill] sm:$0xff] %v4802_v45  ;;  %1979 = vperm.xlu1 %3326, %v4802_v45   ;;  %v1111_v23 = vmul.f32 %v4076_v36, %v4402_v10  ;;  %v6753_v45 = vld [vmem:[#allocation73_spill] sm:$0xff] }
 0x159   : > { %v1301_v47 = vadd.f32 %v1269_v52, %v1071_v12  ;;  %v1070_v5 = vadd.f32 %v1038_v59, %v741_v48  ;;  %v4809_v53 = vpop.permute.xlu1 %1535  ;;  %v6742_v12 = vld [vmem:[#allocation34_spill] sm:$0xff]  ;;  %v743_v35 = vmul.f32 %v4091_v44, %v4399_v15  ;;  %v6744_v48 = vrot.slane %v4577_v49, 7 }
 0x15a   : > { %v4794_v16 = vsel %vm782_vm2, %v6738_v54, %v6737_v38  ;;  %v1333_v54 = vrot.slane %v4402_v10, 1  ;;  %v6743_v38 = vrot.slane %v4573_v30, 7  ;;  %v4827_v52 = vld [vmem:[%s6332_s5 + $0x8] sm:$0xff]  ;;  %v6748_v4 = vrot.slane %v4399_v15, 1 }
 0x15b   : > { %6739 = vst [vmem:[#allocation29_spill] sm:$0xff] %v4794_v16  ;;  %v849_v46 = vmul.f32 %v4071_v32, %v4794_v16  ;;  %v4811_v50 = vadd.f32 %v1564_v24, %v1301_v47  ;;  %6746 = vst [vmem:[#allocation126_spill] sm:$0xff] %v4827_v52  ;;  %2335 = vperm.xlu0 %3329, %v4827_v52   ;;  %v4830_v47 = vpop.permute.xlu0 %1653  ;;  %v1300_v24 = vadd.f32 %v1268_v17, %v1070_v5  ;;  %v4852_v5 = vld [vmem:[%s6332_s5 + $0xe8] sm:$0xff] }
 0x15c   : > { %v4822_v59 = vsel %vm782_vm2, %v6744_v48, %v6743_v38  ;;  %v4837_v49 = vsel %vm1339_vm1, %v1333_v54, %v6748_v4  ;;  %v1110_v16 = vmul.f32 %v4076_v36, %v4573_v30  ;;  %v4847_v17 = vsel %vm1339_vm1, %v1332_v62, %v1333_v54  ;;  %6751 = vst [vmem:[#allocation128_spill] sm:$0xff] %v4852_v5 }
 0x15d   : > { %6741 = vst [vmem:[#allocation125_spill] sm:$0xff] %v4811_v50  ;;  %v1041_v1 = vmul.f32 %v6742_v12, %v849_v46  ;;  %6745 = vst [vmem:[#allocation34_spill] sm:$0xff] %v4822_v59  ;;  %v6747_v46 = vld [vmem:[#allocation76_spill] sm:$0xff]  ;;  %v848_v38 = vmul.f32 %v4071_v32, %v4822_v59  ;;  %v1406_v50 = vmul.f32 %v4253_v60, %v4837_v49  ;;  %1987 = vperm.xlu1 %3326, %v4852_v5   ;;  %v4863_v54 = vpop.permute.xlu1 %1645 }
 0x15e   : > { %v1271_v12 = vmul.f32 %v6747_v46, %v1111_v23  ;;  %6749 = vst [vmem:[#allocation76_spill] sm:$0xff] %v4837_v49  ;;  %6750 = vst [vmem:[#allocation127_spill] sm:$0xff] %v4847_v17  ;;  %v4855_v4 = vadd.f32 %v1563_v0, %v1300_v24  ;;  %v1270_v62 = vmul.f32 %v6753_v45, %v1110_v16  ;;  %v6453_v5 = vrot.slane %v6684_v18, 1  ;;  %v4880_v45 = vld [vmem:[%s6332_s5 + $0xf8] sm:$0xff] }
 0x15f   : > { %v1073_v48 = vadd.f32 %v1041_v1, %v744_v57  ;;  %v6752_v57 = vld [vmem:[#allocation31_spill] sm:$0xff]  ;;  %v1405_v1 = vmul.f32 %v4253_v60, %v4847_v17  ;;  %v1566_v30 = vmul.f32 %v4690_v8, %v1406_v50  ;;  %2407 = vperm.xlu0 %3329, %v4633_v28   ;;  %v4865_v49 = vpop.permute.xlu0 %1661  ;;  %v1086_v8 = vmul.f32 %v4076_v36, %v6684_v18  ;;  %v6759_v50 = vld [vmem:[#allocation50_spill] sm:$0xff]  ;;  %v6783_v28 = vld [vmem:[#allocation65_spill] sm:$0xff] }
 0x160   : > { %v1040_v23 = vmul.f32 %v6752_v57, %v848_v38  ;;  %6754 = vst [vmem:[#allocation31_spill] sm:$0xff] %v4863_v54  ;;  %v6755_v38 = vld [vmem:[#allocation49_spill] sm:$0xff]  ;;  %v4920_v18 = vadd.f32 %v4030_v7, %v4454_v31 }
 0x161   : > { %v1303_v46 = vadd.f32 %v1271_v12, %v1073_v48  ;;  %v1565_v24 = vmul.f32 %v4727_v33, %v1405_v1  ;;  %v719_v57 = vmul.f32 %v4091_v44, %v6755_v38  ;;  %v6756_v12 = vld [vmem:[#allocation16_spill] sm:$0xff]  ;;  %1995 = vperm.xlu1 %3326, %v4880_v45   ;;  %v6760_v33 = vrot.slane %v6759_v50, 1  ;;  %v4901_v1 = vpop.permute.xlu1 %1649 }
 0x162   : > { %v1072_v0 = vadd.f32 %v1040_v23, %v743_v35  ;;  %v1016_v48 = vmul.f32 %v6756_v12, %v4559_v27  ;;  %6758 = vst [vmem:[#allocation16_spill] sm:$0xff] %v4880_v45  ;;  %v4893_v27 = vadd.f32 %v4419_v51, %v4030_v7  ;;  %v4898_v23 = vld [vmem:[%s6332_s5 + $0x20] sm:$0xff]  ;;  %6764 = vst [vmem:[#allocation132_spill] sm:$0xff] %v4901_v1  ;;  %v759_v12 = vrot.slane %v4171_v41, 7 }
 0x163   : > { %v4875_v16 = vadd.f32 %v1566_v30, %v1303_v46  ;;  %v4889_v35 = vsel %vm1339_vm1, %v6453_v5, %v6760_v33  ;;  %6763 = vst [vmem:[#allocation131_spill] sm:$0xff] %v4898_v23  ;;  %2347 = vperm.xlu0 %3329, %v4898_v23   ;;  %v4903_v46 = vpop.permute.xlu0 %1669  ;;  %v6765_v33 = vld [vmem:[#allocation82_spill] sm:$0xff]  ;;  %v6457_v45 = vmov 5   ;;  %v1096_v1 = vmul.f32 %v4076_v36, %v4171_v41 }
 0x164   : > { %6761 = vst [vmem:[#allocation129_spill] sm:$0xff] %v4889_v35  ;;  %6762 = vst [vmem:[#allocation130_spill] sm:$0xff] %v4893_v27  ;;  %v1302_v30 = vadd.f32 %v1270_v62, %v1072_v0  ;;  %v4908_v5 = vadd.f32 %v4030_v7, %v6765_v33  ;;  %v1048_v62 = vadd.f32 %v1016_v48, %v719_v57  ;;  %v6768_v0 = vld [vmem:[#allocation40_spill] sm:$0xff]  ;;  %v6773_v48 = vrot.slane %v4893_v27, 7 }
 0x165   : > { %6757 = vst [vmem:[#allocation73_spill] sm:$0xff] %v4875_v16  ;;  %v1246_v54 = vmul.f32 %v6768_v0, %v1086_v8  ;;  %v1381_v38 = vmul.f32 %v4253_v60, %v4889_v35  ;;  %3328 = vset.pattern.permute.xlu1 %v6457_v45  ;;  %6769 = vst [vmem:[#allocation40_spill] sm:$0xff] %v4920_v18  ;;  %v6770_v8 = vrot.slane %v4178_v6, 7  ;;  %v6774_v6 = vrot.slane %v4429_v39, 7 }
 0x166   : > { %6766 = vst [vmem:[#allocation82_spill] sm:$0xff] %v4908_v5  ;;  %v4910_v51 = vadd.f32 %v1565_v24, %v1302_v30  ;;  %2105 = vperm.xlu1 %3328, %v4827_v52   ;;  %v4924_v24 = vpop.permute.xlu1 %1657  ;;  %v4938_v0 = vadd.f32 %v4438_v21, %v4030_v7  ;;  %v4962_v21 = vld [vmem:[%s6330_s3 + $0x3] ss:$0 sm:$0xff]  ;;  %v6777_v16 = vrot.slane %v4495_v14, 7  ;;  %v6778_v35 = vrot.slane %v4908_v5, 7 }
 0x167   : > { %2423 = vperm.xlu0 %3329, %v4710_v25   ;;  %v4926_v57 = vpop.permute.xlu0 %1677  ;;  %v4933_v30 = vsel %vm782_vm2, %v6770_v8, %v759_v12  ;;  %v1278_v33 = vadd.f32 %v1246_v54, %v1048_v62  ;;  %v1541_v31 = vmul.f32 %v4326_v11, %v1381_v38  ;;  %v4949_v8 = vsel %vm782_vm2, %v6774_v6, %v6773_v48  ;;  %v4954_v11 = vld [vmem:[%s6332_s5 + $0x10] sm:$0xff] }
 0x168   : > { %6767 = vst [vmem:[#allocation133_spill] sm:$0xff] %v4910_v51  ;;  %6771 = vst [vmem:[#allocation134_spill] sm:$0xff] %v4933_v30  ;;  %v834_v7 = vmul.f32 %v4071_v32, %v4933_v30  ;;  %v747_v54 = vmul.f32 %v4091_v44, %v4938_v0  ;;  %v852_v6 = vmul.f32 %v4071_v32, %v4949_v8  ;;  %v6465_v62 = vmov 7  }
 0x169   : > { %6772 = vst [vmem:[#allocation135_spill] sm:$0xff] %v4938_v0  ;;  %6775 = vst [vmem:[#allocation136_spill] sm:$0xff] %v4949_v8  ;;  %v1114_v38 = vmul.f32 %v4076_v36, %v4893_v27  ;;  %v4981_v25 = vsel %vm782_vm2, %v6778_v35, %v6777_v16  ;;  %v6781_v50 = vrot.slane %v4893_v27, 1  ;;  %v1611_v52 = vmul.f32 %v4962_v21, %v6783_v28  ;;  %v6787_v35 = vld [vmem:[#allocation35_spill] sm:$0xff]  ;;  %v6788_v8 = vld [vmem:[#allocation80_spill] sm:$0xff] }
 0x16a   : > { %6776 = vst [vmem:[#allocation137_spill] sm:$0xff] %v4954_v11  ;;  %2109 = vperm.xlu1 %3328, %v4954_v11   ;;  %v1666_v48 = vpop.permute.xlu1 %1665  ;;  %6779 = vst [vmem:[#allocation138_spill] sm:$0xff] %v4981_v25  ;;  %v6780_v11 = vrot.slane %v4920_v18, 1  ;;  %v6784_v51 = vrot.slane %v4197_v37, 1  ;;  %v6785_v5 = vrot.slane %v4171_v41, 1  ;;  %v1044_v17 = vmul.f32 %v6787_v35, %v852_v6 }
 0x16b   : > { %3340 = vset.pattern.permute.xlu0 %v6465_v62  ;;  %v4971_v45 = vpop.permute.xlu0 %1685  ;;  %v1274_v40 = vmul.f32 %v6788_v8, %v1114_v38  ;;  %v6789_v28 = vrot.slane %v4197_v37, 7  ;;  %v1771_v41 = vmul.f32 %v4830_v47, %v1611_v52  ;;  %v6791_v38 = vld [vmem:[#allocation18_spill] sm:$0xff]  ;;  %v6483_v52 = vrot.slane %v4495_v14, 1 }
 0x16c   : > { %v4989_v62 = vsel %vm1339_vm1, %v6781_v50, %v6780_v11  ;;  %2629 = vperm.xlu0 %3340, %v4595_v9   ;;  %v5000_v16 = vsel %vm1339_vm1, %v6785_v5, %v6784_v51  ;;  %v1573_v11 = vadd.f32 %v1541_v31, %v1278_v33  ;;  %v729_v5 = vmul.f32 %v4091_v44, %v4390_v43 }
 0x16d   : > { %6782 = vst [vmem:[#allocation139_spill] sm:$0xff] %v4989_v62  ;;  %6786 = vst [vmem:[#allocation140_spill] sm:$0xff] %v5000_v16  ;;  %v1409_v50 = vmul.f32 %v4253_v60, %v4989_v62  ;;  %v5010_v61 = vsel %vm782_vm2, %v759_v12, %v6789_v28  ;;  %v840_v51 = vmul.f32 %v4071_v32, %v4981_v25  ;;  %v5028_v12 = vld [vmem:[%s6332_s5 + $0x90] sm:$0xff]  ;;  %v6797_v32 = vld [vmem:[#allocation81_spill] sm:$0xff] }
 0x16e   : > { %6790 = vst [vmem:[#allocation35_spill] sm:$0xff] %v5010_v61  ;;  %2117 = vperm.xlu1 %3328, %v4898_v23   ;;  %v1076_v8 = vadd.f32 %v1044_v17, %v747_v54  ;;  %v1674_v33 = vpop.permute.xlu1 %1673  ;;  %v1026_v35 = vmul.f32 %v6791_v38, %v834_v7  ;;  %v1391_v28 = vmul.f32 %v4253_v60, %v5000_v16  ;;  %v6794_v7 = vld [vmem:[#allocation74_spill] sm:$0xff] }
 0x16f   : > { %v1569_v6 = vmul.f32 %v4809_v53, %v1409_v50  ;;  %v1694_v31 = vpop.permute.xlu0 %1693  ;;  %v5023_v47 = vadd.f32 %v1771_v41, %v1573_v11  ;;  %v6793_v53 = vld [vmem:[#allocation42_spill] sm:$0xff]  ;;  %v1613_v50 = vmul.f32 %v4962_v21, %v6794_v7  ;;  %v735_v38 = vmul.f32 %v4091_v44, %v4514_v19  ;;  %v6799_v44 = vld [vmem:[#allocation23_spill] sm:$0xff]  ;;  %v6801_v7 = vld [vmem:[#allocation60_spill] sm:$0xff] }
 0x170   : > { %2633 = vperm.xlu0 %3340, %v5028_v12   ;;  %v1256_v17 = vmul.f32 %v6793_v53, %v1096_v1  ;;  %v1306_v54 = vadd.f32 %v1274_v40, %v1076_v8  ;;  %v1102_v41 = vmul.f32 %v4076_v36, %v4495_v14  ;;  %v6795_v11 = vrot.slane %v4478_v34, 1  ;;  %v5052_v1 = vld [vmem:[%s6332_s5 + $0x30] sm:$0xff] }
 0x171   : > { %6792 = vst [vmem:[#allocation80_spill] sm:$0xff] %v5023_v47  ;;  %v1615_v40 = vmul.f32 %v4962_v21, %v6797_v32  ;;  %6798 = vst [vmem:[#allocation42_spill] sm:$0xff] %v5052_v1  ;;  %v1032_v36 = vmul.f32 %v6799_v44, %v840_v51  ;;  %v1773_v53 = vmul.f32 %v4865_v49, %v1613_v50  ;;  %v6802_v47 = vld [vmem:[#allocation87_spill] sm:$0xff]  ;;  %v5070_v51 = vld [vmem:[%s6332_s5 + $0x18] sm:$0xff] }
 0x172   : > { %v5045_v25 = vsel %vm1339_vm1, %v6483_v52, %v6795_v11  ;;  %2125 = vperm.xlu1 %3328, %v5052_v1   ;;  %v5056_v8 = vadd.f32 %v1569_v6, %v1306_v54  ;;  %v1612_v11 = vmul.f32 %v4962_v21, %v6801_v7  ;;  %v1682_v52 = vpop.permute.xlu1 %1681  ;;  %v1058_v32 = vadd.f32 %v1026_v35, %v729_v5  ;;  %v6803_v5 = vld [vmem:[#allocation83_spill] sm:$0xff]  ;;  %v6804_v35 = vld [vmem:[#allocation52_spill] sm:$0xff]  ;;  %v6834_v7 = vld [vmem:[#allocation25_spill] sm:$0xff] }
 0x173   : > { %6796 = vst [vmem:[#allocation18_spill] sm:$0xff] %v5045_v25  ;;  %v5061_v19 = vpop.permute.xlu0 %1701  ;;  %v1551_v23 = vmul.f32 %v4469_v13, %v1391_v28  ;;  %v1775_v34 = vmul.f32 %v4903_v46, %v1615_v40  ;;  %v1617_v1 = vmul.f32 %v4962_v21, %v6802_v47  ;;  %v1397_v49 = vmul.f32 %v4253_v60, %v5045_v25 }
 0x174   : > { %6800 = vst [vmem:[#allocation23_spill] sm:$0xff] %v5056_v8  ;;  %2573 = vperm.xlu0 %3340, %v5070_v51   ;;  %v5076_v6 = vadd.f32 %v1773_v53, %v4377_v55  ;;  %v1772_v13 = vmul.f32 %v4924_v24, %v1612_v11  ;;  %v1614_v46 = vmul.f32 %v4962_v21, %v6803_v5  ;;  %v5091_v55 = vld [vmem:[%s6332_s5 + $0x40] sm:$0xff]  ;;  %v6806_v53 = vld [vmem:[#allocation86_spill] sm:$0xff] }
 0x175   : > { %v1262_v28 = vmul.f32 %v6804_v35, %v1102_v41  ;;  %v5083_v54 = vadd.f32 %v1775_v34, %v4411_v29  ;;  %v1777_v50 = vmul.f32 %v4926_v57, %v1617_v1  ;;  %v1619_v40 = vmul.f32 %v4962_v21, %v4933_v30  ;;  %6805 = vst [vmem:[#allocation52_spill] sm:$0xff] %v5091_v55 }
 0x176   : > { %2133 = vperm.xlu1 %3328, %v5091_v55   ;;  %v1064_v24 = vadd.f32 %v1032_v36, %v735_v38  ;;  %v5095_v44 = vadd.f32 %v1772_v13, %v4322_v22  ;;  %v1774_v41 = vmul.f32 %v1666_v48, %v1614_v46  ;;  %v1616_v29 = vmul.f32 %v4962_v21, %v6806_v53  ;;  %v1690_v34 = vpop.permute.xlu1 %1689  ;;  %v6808_v22 = vld [vmem:[#allocation111_spill] sm:$0xff]  ;;  %v6809_v48 = vld [vmem:[#allocation93_spill] sm:$0xff] }
 0x177   : > { %v5099_v57 = vpop.permute.xlu0 %1709  ;;  %v1288_v1 = vadd.f32 %v1256_v17, %v1058_v32  ;;  %v5102_v11 = vadd.f32 %v1777_v50, %v4432_v42  ;;  %v1779_v35 = vmul.f32 %v4971_v45, %v1619_v40  ;;  %v1621_v30 = vmul.f32 %v4962_v21, %v4446_v3  ;;  %v6810_v46 = vld [vmem:[#allocation89_spill] sm:$0xff]  ;;  %v6811_v17 = vld [vmem:[#allocation103_spill] sm:$0xff] }
 0x178   : > { %6807 = vst [vmem:[#allocation141_spill] sm:$0xff] %v5099_v57  ;;  %2645 = vperm.xlu0 %3340, %v4663_v26   ;;  %v1557_v38 = vmul.f32 %v6808_v22, %v1397_v49  ;;  %v5110_v36 = vadd.f32 %v1774_v41, %v6809_v48  ;;  %v1776_v13 = vmul.f32 %v1674_v33, %v1616_v29  ;;  %v6812_v3 = vld [vmem:[#allocation97_spill] sm:$0xff]  ;;  %v6833_v53 = vmov 7  }
 0x179   : > { %v1618_v47 = vmul.f32 %v4962_v21, %v6810_v46  ;;  %v1583_v32 = vadd.f32 %v1551_v23, %v1288_v1  ;;  %v5115_v42 = vadd.f32 %v1779_v35, %v6811_v17  ;;  %v1781_v50 = vmul.f32 %v1694_v31, %v1621_v30  ;;  %v5130_v30 = vld [vmem:[%s6332_s5 + $0xb0] sm:$0xff]  ;;  %v6813_v31 = vld [vmem:[#allocation114_spill] sm:$0xff]  ;;  %v6820_v17 = vld [vmem:[#allocation117_spill] sm:$0xff] }
 0x17a   : > { %v1620_v45 = vmul.f32 %v4962_v21, %v5010_v61  ;;  %2169 = vperm.xlu1 %3328, %v4595_v9   ;;  %v1294_v40 = vadd.f32 %v1262_v28, %v1064_v24  ;;  %v5121_v49 = vadd.f32 %v1776_v13, %v6812_v3  ;;  %v5123_v22 = vpop.permute.xlu1 %1697  ;;  %v1627_v28 = vmul.f32 %v4962_v21, %v6813_v31  ;;  %v6814_v3 = vld [vmem:[#allocation5_spill] sm:$0xff]  ;;  %v6818_v35 = vld [vmem:[#allocation6_spill] sm:$0xff] }
 0x17b   : > { %v1778_v41 = vmul.f32 %v1682_v52, %v1618_v47  ;;  %v1718_v33 = vpop.permute.xlu0 %1717  ;;  %v5125_v29 = vadd.f32 %v1781_v50, %v1583_v32  ;;  %v6815_v52 = vrot.slane %v4399_v15, 7  ;;  %v6816_v47 = vrot.slane %v4402_v10, 7  ;;  %v6828_v10 = vld [vmem:[#allocation55_spill] sm:$0xff]  ;;  %v6829_v31 = vld [vmem:[#allocation33_spill] sm:$0xff] }
 0x17c   : > { %v1780_v23 = vmul.f32 %v1690_v34, %v1620_v45  ;;  %2649 = vperm.xlu0 %3340, %v5130_v30   ;;  %v1589_v24 = vadd.f32 %v1557_v38, %v1294_v40  ;;  %v1787_v13 = vmul.f32 %v1718_v33, %v1627_v28  ;;  %v6819_v32 = vmov 6   ;;  %v5218_v57 = vld [vmem:[%s6330_s3 + $0x1] ss:$0 sm:$0xff] }
 0x17d   : > { %v5136_v1 = vadd.f32 %v1778_v41, %v6814_v3  ;;  %v5144_v34 = vsel %vm782_vm2, %v6816_v47, %v6815_v52  ;;  %v1629_v38 = vmul.f32 %v4962_v21, %v6820_v17  ;;  %v5160_v41 = vld [vmem:[%s6332_s5 + $0x38] sm:$0xff]  ;;  %v6492_v28 = vrot.slane %v4429_v39, 1  ;;  %v6823_v3 = vld [vmem:[#allocation66_spill] sm:$0xff]  ;;  %v5212_v17 = vld [vmem:[%s6330_s3 + $0x5] ss:$0 sm:$0xff] }
 0x17e   : > { %6817 = vst [vmem:[#allocation111_spill] sm:$0xff] %v5144_v34  ;;  %v5147_v48 = vadd.f32 %v1780_v23, %v6818_v35  ;;  %3330 = vset.pattern.permute.xlu1 %v6819_v32  ;;  %v5153_v50 = vpop.permute.xlu1 %1705  ;;  %v5155_v40 = vadd.f32 %v1787_v13, %v1589_v24  ;;  %v1631_v23 = vmul.f32 %v4962_v21, %v4747_v20  ;;  %v6825_v47 = vrot.slane %v4399_v15, 1  ;;  %v5187_v13 = vld [vmem:[%s6332_s5] sm:$0xff] }
 0x17f   : > { %2399 = vperm.xlu1 %3330, %v4595_v9   ;;  %6821 = vst [vmem:[#allocation93_spill] sm:$0xff] %v5153_v50  ;;  %v1726_v45 = vpop.permute.xlu0 %1725  ;;  %v5169_v9 = vld [vmem:[%s6330_s3] ss:$0 sm:$0xff]  ;;  %v1628_v20 = vmul.f32 %v4962_v21, %v6828_v10  ;;  %v1633_v50 = vmul.f32 %v4962_v21, %v4822_v59  ;;  %v6831_v59 = vld [vmem:[#allocation95_spill] sm:$0xff]  ;;  %v1635_v8 = vmul.f32 %v4962_v21, %v5144_v34 }
 0x180   : > { %6822 = vst [vmem:[#allocation103_spill] sm:$0xff] %v5155_v40  ;;  %2589 = vperm.xlu0 %3340, %v5160_v41   ;;  %v1789_v33 = vmul.f32 %v1726_v45, %v1629_v38  ;;  %v850_v24 = vmul.f32 %v5169_v9, %v5144_v34  ;;  %v5182_v35 = vsel %vm1339_vm1, %v6825_v47, %v6492_v28  ;;  %v5202_v47 = vld [vmem:[%s6332_s5 + $0xc0] sm:$0xff]  ;;  %v6849_v40 = vld [vmem:[#allocation67_spill] sm:$0xff] }
 0x181   : > { %6826 = vst [vmem:[#allocation5_spill] sm:$0xff] %v5182_v35  ;;  %6827 = vst [vmem:[#allocation6_spill] sm:$0xff] %v5202_v47  ;;  %v5228_v25 = vmul.f32 %v5212_v17, %v6831_v59  ;;  %v1407_v46 = vmul.f32 %v4253_v60, %v5182_v35  ;;  %v6835_v59 = vld [vmem:[#allocation100_spill] sm:$0xff] }
 0x182   : > { %v5174_v52 = vadd.f32 %v1789_v33, %v6823_v3  ;;  %v5190_v38 = vpop.permute.xlu1 %1713  ;;  %v5195_v33 = vld [vmem:[%s6330_s3 + $0x4] ss:$0 sm:$0xff]  ;;  %v1042_v55 = vmul.f32 %v6829_v31, %v850_v24  ;;  %v5254_v24 = vmul.f32 %v5212_v17, %v5000_v16 }
 0x183   : > { %2331 = vperm.xlu1 %3330, %v5187_v13   ;;  %v1734_v45 = vpop.permute.xlu0 %1733  ;;  %v745_v3 = vmul.f32 %v5195_v33, %v4893_v27  ;;  %v6839_v27 = vld [vmem:[#allocation115_spill] sm:$0xff] }
 0x184   : > { %6824 = vst [vmem:[#allocation97_spill] sm:$0xff] %v5174_v52  ;;  %2657 = vperm.xlu0 %3340, %v5202_v47   ;;  %v1791_v28 = vmul.f32 %v1734_v45, %v1631_v23  ;;  %v1112_v23 = vmul.f32 %v5218_v57, %v4399_v15  ;;  %v6830_v45 = vld [vmem:[#allocation92_spill] sm:$0xff]  ;;  %v5243_v52 = vmul.f32 %v5212_v17, %v6835_v59  ;;  %v6838_v59 = vld [vmem:[#allocation45_spill] sm:$0xff] }
 0x185   : > { %v5224_v10 = vmul.f32 %v5212_v17, %v6830_v45  ;;  %v1630_v45 = vmul.f32 %v4962_v21, %v6834_v7  ;;  %v1074_v34 = vadd.f32 %v1042_v55, %v745_v3  ;;  %v6837_v7 = vld [vmem:[#allocation77_spill] sm:$0xff]  ;;  %v6842_v55 = vrot.slane %v4920_v18, 1 }
 0x186   : > { %v5233_v31 = vadd.f32 %v1791_v28, %v4770_v63  ;;  %v1722_v5 = vpop.permute.xlu1 %1721  ;;  %v5248_v63 = vld [vmem:[%s6332_s5 + $0x48] sm:$0xff] }
 0x187   : > { %3331 = vset.pattern.permute.xlu1 %v6833_v53  ;;  %v1742_v47 = vpop.permute.xlu0 %1741  ;;  %v1788_v60 = vmul.f32 %v1722_v5, %v1628_v20  ;;  %6836 = vst [vmem:[#allocation33_spill] sm:$0xff] %v5248_v63  ;;  %v5259_v20 = vmul.f32 %v5212_v17, %v6838_v59  ;;  %v1567_v5 = vmul.f32 %v4768_v56, %v1407_v46  ;;  %v6844_v59 = vld [vmem:[#allocation62_spill] sm:$0xff] }
 0x188   : > { %6832 = vst [vmem:[#allocation66_spill] sm:$0xff] %v5233_v31  ;;  %2597 = vperm.xlu0 %3340, %v5248_v63   ;;  %v1793_v28 = vmul.f32 %v1742_v47, %v1633_v50  ;;  %2625 = vperm.xlu1 %3331, %v4779_v2   ;;  %v1272_v31 = vmul.f32 %v6837_v7, %v1112_v23  ;;  %v6841_v47 = vrot.slane %v4938_v0, 1  ;;  %v6845_v46 = vld [vmem:[#allocation122_spill] sm:$0xff] }
 0x189   : > { %v5264_v63 = vadd.f32 %v1788_v60, %v6839_v27  ;;  %v1632_v56 = vmul.f32 %v4962_v21, %v6844_v59  ;;  %v5281_v27 = vmul.f32 %v5212_v17, %v6845_v46  ;;  %v6847_v60 = vld [vmem:[#allocation76_spill] sm:$0xff]  ;;  %v6852_v46 = vld [vmem:[#allocation127_spill] sm:$0xff] }
 0x18a   : > { %v5267_v50 = vadd.f32 %v1793_v28, %v4855_v4  ;;  %v5275_v7 = vsel %vm1339_vm1, %v6842_v55, %v6841_v47  ;;  %v1730_v3 = vpop.permute.xlu1 %1729  ;;  %v5285_v4 = vmul.f32 %v5212_v17, %v6847_v60  ;;  %v6850_v47 = vld [vmem:[#allocation136_spill] sm:$0xff] }
 0x18b   : > { %6843 = vst [vmem:[#allocation115_spill] sm:$0xff] %v5275_v7  ;;  %v1750_v23 = vpop.permute.xlu0 %1749  ;;  %6846 = vst [vmem:[#allocation142_spill] sm:$0xff] %v5281_v27  ;;  %v1790_v28 = vmul.f32 %v1730_v3, %v1630_v45  ;;  %v1637_v55 = vmul.f32 %v4962_v21, %v6850_v47  ;;  %v5293_v59 = vmul.f32 %v5212_v17, %v5275_v7  ;;  %v6854_v60 = vld [vmem:[#allocation56_spill] sm:$0xff]  ;;  %v6856_v45 = vld [vmem:[#allocation133_spill] sm:$0xff]  ;;  %v6861_v47 = vrot.slane %v4938_v0, 7 }
 0x18c   : > { %6840 = vst [vmem:[#allocation77_spill] sm:$0xff] %v5267_v50  ;;  %6848 = vst [vmem:[#allocation143_spill] sm:$0xff] %v5285_v4  ;;  %2669 = vperm.xlu0 %3340, %v6849_v40   ;;  %v1795_v16 = vmul.f32 %v1750_v23, %v1635_v8  ;;  %2561 = vperm.xlu1 %3331, %v5187_v13   ;;  %v1304_v50 = vadd.f32 %v1272_v31, %v1074_v34  ;;  %v6859_v34 = vld [vmem:[#allocation7_spill] sm:$0xff] }
 0x18d   : > { %6851 = vst [vmem:[#allocation67_spill] sm:$0xff] %v5293_v59  ;;  %v5297_v27 = vmul.f32 %v5212_v17, %v6852_v46  ;;  %v5300_v4 = vadd.f32 %v1790_v28, %v6854_v60  ;;  %v5307_v8 = vmul.f32 %v5212_v17, %v5182_v35  ;;  %v6860_v31 = vrot.slane %v6859_v34, 7  ;;  %v6864_v28 = vld [vmem:[#allocation118_spill] sm:$0xff] }
 0x18e   : > { %v5303_v3 = vadd.f32 %v1795_v16, %v6856_v45  ;;  %v1599_v23 = vadd.f32 %v1567_v5, %v1304_v50  ;;  %v1738_v46 = vpop.permute.xlu1 %1737  ;;  %v5319_v60 = vmul.f32 %v5212_v17, %v4989_v62  ;;  %v6865_v35 = vld [vmem:[#allocation126_spill] sm:$0xff]  ;;  %v6866_v5 = vld [vmem:[#allocation29_spill] sm:$0xff]  ;;  %v6871_v59 = vrot.slane %v4399_v15, 7 }
 0x18f   : > { %6853 = vst [vmem:[#allocation144_spill] sm:$0xff] %v5297_v27  ;;  %6855 = vst [vmem:[#allocation56_spill] sm:$0xff] %v5300_v4  ;;  %v5315_v7 = vsel %vm782_vm2, %v6861_v47, %v6860_v31  ;;  %v1758_v27 = vpop.permute.xlu0 %1757  ;;  %v1792_v16 = vmul.f32 %v1738_v46, %v1632_v56  ;;  %v1634_v50 = vmul.f32 %v4962_v21, %v6866_v5  ;;  %v6870_v31 = vrot.slane %v4429_v39, 7  ;;  %v6880_v15 = vld [vmem:[#allocation50_spill] sm:$0xff] }
 0x190   : > { %6857 = vst [vmem:[#allocation133_spill] sm:$0xff] %v5303_v3  ;;  %6858 = vst [vmem:[#allocation145_spill] sm:$0xff] %v5307_v8  ;;  %2673 = vperm.xlu0 %3340, %v6864_v28   ;;  %v1797_v45 = vmul.f32 %v1758_v27, %v1637_v55  ;;  %2565 = vperm.xlu1 %3331, %v6865_v35   ;;  %v6867_v3 = vld [vmem:[#allocation72_spill] sm:$0xff]  ;;  %v823_v46 = vmul.f32 %v5169_v9, %v5315_v7 }
 0x191   : > { %6862 = vst [vmem:[#allocation146_spill] sm:$0xff] %v5315_v7  ;;  %6863 = vst [vmem:[#allocation147_spill] sm:$0xff] %v5319_v60  ;;  %v5326_v8 = vadd.f32 %v1792_v16, %v6867_v3  ;;  %v5336_v56 = vsel %vm782_vm2, %v6871_v59, %v6870_v31  ;;  %v5345_v3 = vld [vmem:[%s6332_s5 + $0x68] sm:$0xff]  ;;  %v6517_v16 = vrot.slane %v6859_v34, 1  ;;  %v6877_v31 = vld [vmem:[#allocation125_spill] sm:$0xff]  ;;  %v718_v7 = vmul.f32 %v5195_v33, %v6880_v15 }
 0x192   : > { %v5328_v47 = vadd.f32 %v1797_v45, %v1599_v23  ;;  %6872 = vst [vmem:[#allocation72_spill] sm:$0xff] %v5336_v56  ;;  %v1746_v35 = vpop.permute.xlu1 %1745  ;;  %6874 = vst [vmem:[#allocation149_spill] sm:$0xff] %v5345_v3  ;;  %v6875_v23 = vmov 5   ;;  %v1636_v59 = vmul.f32 %v4962_v21, %v5336_v56  ;;  %v6876_v45 = vld [vmem:[#allocation116_spill] sm:$0xff] }
 0x193   : > { %6868 = vst [vmem:[#allocation118_spill] sm:$0xff] %v5326_v8  ;;  %v5340_v27 = vpop.permute.xlu0 %1765  ;;  %v1794_v55 = vmul.f32 %v1746_v35, %v1634_v50  ;;  %v6879_v50 = vld [vmem:[#allocation14_spill] sm:$0xff] }
 0x194   : > { %6869 = vst [vmem:[#allocation126_spill] sm:$0xff] %v5328_v47  ;;  %6873 = vst [vmem:[#allocation148_spill] sm:$0xff] %v5340_v27  ;;  %2613 = vperm.xlu0 %3340, %v5345_v3   ;;  %3332 = vset.pattern.permute.xlu1 %v6875_v23  ;;  %v1015_v35 = vmul.f32 %v6879_v50, %v823_v46  ;;  %v6882_v27 = vld [vmem:[#allocation48_spill] sm:$0xff]  ;;  %v1085_v46 = vmul.f32 %v5218_v57, %v6859_v34 }
 0x195   : > { %2177 = vperm.xlu1 %3332, %v6876_v45   ;;  %v5354_v5 = vadd.f32 %v1794_v55, %v6877_v31  ;;  %v6883_v0 = vrot.slane %v6882_v27, 1  ;;  %v835_v27 = vmul.f32 %v5169_v9, %v5010_v61  ;;  %v6896_v3 = vld [vmem:[#allocation132_spill] sm:$0xff]  ;;  %v6897_v61 = vld [vmem:[#allocation57_spill] sm:$0xff] }
 0x196   : > { %v1754_v62 = vpop.permute.xlu1 %1753  ;;  %v1047_v50 = vadd.f32 %v1015_v35, %v718_v7  ;;  %v6891_v7 = vld [vmem:[#allocation90_spill] sm:$0xff] }
 0x197   : > { %6878 = vst [vmem:[#allocation116_spill] sm:$0xff] %v5354_v5  ;;  %v1796_v47 = vmul.f32 %v1754_v62, %v1636_v59  ;;  %v5360_v60 = vpop.permute.xlu0 %1875  ;;  %v5368_v8 = vsel %vm1339_vm1, %v6517_v16, %v6883_v0  ;;  %v6885_v62 = vld [vmem:[#allocation64_spill] sm:$0xff]  ;;  %v6886_v59 = vld [vmem:[#allocation73_spill] sm:$0xff]  ;;  %v1844_v35 = vmul.f32 %v5212_v17, %v6891_v7 }
 0x198   : > { %3351 = vset.pattern.permute.xlu0 %v6875_v23  ;;  %6881 = vst [vmem:[#allocation125_spill] sm:$0xff] %v5360_v60  ;;  %6884 = vst [vmem:[#allocation14_spill] sm:$0xff] %v5368_v8  ;;  %v1842_v55 = vmul.f32 %v5212_v17, %v6885_v62  ;;  %v5385_v0 = vld [vmem:[%s6330_s3 + $0x2] ss:$0 sm:$0xff]  ;;  %v6889_v60 = vld [vmem:[#allocation39_spill] sm:$0xff] }
 0x199   : > { %2101 = vperm.xlu0 %3351, %v5187_v13   ;;  %3333 = vset.pattern.permute.xlu1 %v6819_v32  ;;  %v5377_v31 = vadd.f32 %v1796_v47, %v6886_v59  ;;  %v1380_v13 = vmul.f32 %v5385_v0, %v5368_v8  ;;  %v1245_v34 = vmul.f32 %v6889_v60, %v1085_v46  ;;  %v6890_v62 = vld [vmem:[#allocation54_spill] sm:$0xff]  ;;  %v6895_v46 = vld [vmem:[#allocation88_spill] sm:$0xff]  ;;  %v6995_v58 = vld [vmem:[#allocation145_spill] sm:$0xff] }
 0x19a   : > { %2403 = vperm.xlu1 %3333, %v5028_v12   ;;  %v5380_v15 = vpop.permute.xlu1 %1761  ;;  %v1610_v47 = vmul.f32 %v4962_v21, %v6890_v62 }
 0x19b   : > { %6887 = vst [vmem:[#allocation73_spill] sm:$0xff] %v5377_v31  ;;  %6888 = vst [vmem:[#allocation150_spill] sm:$0xff] %v5380_v15  ;;  %v1888_v16 = vpop.permute.xlu0 %1887  ;;  %v6892_v31 = vld [vmem:[#allocation137_spill] sm:$0xff]  ;;  %v1277_v15 = vadd.f32 %v1245_v34, %v1047_v50  ;;  %v1540_v62 = vmul.f32 %v6895_v46, %v1380_v13  ;;  %v1840_v34 = vmul.f32 %v5212_v17, %v6897_v61  ;;  %v6902_v46 = vrot.slane %v4197_v37, 1 }
 0x19c   : > { %v2002_v59 = vmul.f32 %v1888_v16, %v1842_v55  ;;  %v1770_v39 = vmul.f32 %v6896_v3, %v1610_v47  ;;  %v5408_v16 = vld [vmem:[%s6332_s5 + $0x28] sm:$0xff]  ;;  %v6901_v47 = vrot.slane %v4390_v43, 1  ;;  %v1097_v61 = vmul.f32 %v5218_v57, %v4197_v37 }
 0x19d   : > { %2113 = vperm.xlu0 %3351, %v5070_v51  }
 0x19e   : > { %2339 = vperm.xlu1 %3333, %v6892_v31   ;;  %v5399_v8 = vadd.f32 %v2002_v59, %v5095_v44  ;;  %v5401_v5 = vpop.permute.xlu1 %1871  ;;  %v6898_v44 = vld [vmem:[#allocation10_spill] sm:$0xff]  ;;  %v6899_v59 = vld [vmem:[#allocation101_spill] sm:$0xff] }
 0x19f   : > { %6894 = vst [vmem:[#allocation137_spill] sm:$0xff] %v5401_v5  ;;  %v1896_v60 = vpop.permute.xlu0 %1895  ;;  %v730_v7 = vmul.f32 %v5195_v33, %v6899_v59  ;;  %v6900_v5 = vld [vmem:[#allocation20_spill] sm:$0xff] }
 0x1a0   : > { %6893 = vst [vmem:[#allocation39_spill] sm:$0xff] %v5399_v8  ;;  %v2004_v55 = vmul.f32 %v1896_v60, %v1844_v35  ;;  %v1027_v13 = vmul.f32 %v6900_v5, %v835_v27  ;;  %v5425_v35 = vsel %vm1339_vm1, %v6902_v46, %v6901_v47  ;;  %v1572_v60 = vadd.f32 %v1540_v62, %v1277_v15  ;;  %v6904_v5 = vld [vmem:[#allocation82_spill] sm:$0xff] }
 0x1a1   : > { %2121 = vperm.xlu0 %3351, %v5408_v16   ;;  %6903 = vst [vmem:[#allocation88_spill] sm:$0xff] %v5425_v35  ;;  %v6905_v27 = vrot.slane %v6904_v5, 7  ;;  %v1392_v46 = vmul.f32 %v5385_v0, %v5425_v35  ;;  %v6914_v37 = vrot.slane %v6904_v5, 1 }
 0x1a2   : > { %2343 = vperm.xlu1 %3333, %v5070_v51   ;;  %v5428_v50 = vadd.f32 %v2004_v55, %v5110_v36  ;;  %v6906_v51 = vrot.slane %v6898_v44, 7  ;;  %v1880_v8 = vpop.permute.xlu1 %1879  ;;  %v1802_v4 = vadd.f32 %v1770_v39, %v1572_v60  ;;  %v6907_v36 = vld [vmem:[#allocation69_spill] sm:$0xff]  ;;  %v1059_v55 = vadd.f32 %v1027_v13, %v730_v7  ;;  %v6910_v7 = vld [vmem:[#allocation43_spill] sm:$0xff] }
 0x1a3   : > { %v1904_v18 = vpop.permute.xlu0 %1903  ;;  %v2000_v47 = vmul.f32 %v1880_v8, %v1840_v34  ;;  %v1841_v62 = vmul.f32 %v5212_v17, %v6907_v36  ;;  %v1257_v34 = vmul.f32 %v6910_v7, %v1097_v61  ;;  %v1850_v61 = vmul.f32 %v5212_v17, %v5425_v35  ;;  %v6922_v35 = vld [vmem:[#allocation94_spill] sm:$0xff] }
 0x1a4   : > { %v5438_v3 = vsel %vm782_vm2, %v6906_v51, %v6905_v27  ;;  %v2006_v15 = vmul.f32 %v1904_v18, %v5224_v10  ;;  %v6908_v27 = vrot.slane %v6899_v59, 7  ;;  %v6909_v51 = vrot.slane %v4390_v43, 7 }
 0x1a5   : > { %2129 = vperm.xlu0 %3351, %v5160_v41   ;;  %v5456_v10 = vadd.f32 %v2000_v47, %v1802_v4  ;;  %v839_v60 = vmul.f32 %v5169_v9, %v5438_v3  ;;  %v6911_v4 = vld [vmem:[#allocation91_spill] sm:$0xff]  ;;  %v1289_v47 = vadd.f32 %v1257_v34, %v1059_v55  ;;  %v6913_v13 = vrot.slane %v4495_v14, 1  ;;  %v6920_v34 = vld [vmem:[#allocation12_spill] sm:$0xff] }
 0x1a6   : > { %3334 = vset.pattern.permute.xlu1 %v6833_v53  ;;  %v5453_v39 = vsel %vm782_vm2, %v6909_v51, %v6908_v27  ;;  %v5459_v18 = vadd.f32 %v2006_v15, %v5121_v49  ;;  %v1884_v51 = vpop.permute.xlu1 %1883  ;;  %v6912_v15 = vld [vmem:[#allocation102_spill] sm:$0xff]  ;;  %v6919_v55 = vrot.slane %v6899_v59, 1 }
 0x1a7   : > { %2637 = vperm.xlu1 %3334, %v6876_v45   ;;  %v1622_v27 = vmul.f32 %v4962_v21, %v5453_v39  ;;  %v1912_v43 = vpop.permute.xlu0 %1911  ;;  %v2001_v8 = vmul.f32 %v1884_v51, %v1841_v62  ;;  %v1843_v45 = vmul.f32 %v5212_v17, %v6911_v4  ;;  %v1552_v7 = vmul.f32 %v6912_v15, %v1392_v46 }
 0x1a8   : > { %v2008_v49 = vmul.f32 %v1912_v43, %v5228_v25  ;;  %v5481_v62 = vsel %vm1339_vm1, %v6914_v37, %v6913_v13  ;;  %v6918_v25 = vrot.slane %v6898_v44, 1  ;;  %v734_v37 = vmul.f32 %v5195_v33, %v6920_v34  ;;  %v6921_v13 = vld [vmem:[#allocation24_spill] sm:$0xff] }
 0x1a9   : > { %2165 = vperm.xlu0 %3351, %v4779_v2   ;;  %6915 = vst [vmem:[#allocation132_spill] sm:$0xff] %v5481_v62  ;;  %v6916_v2 = vld [vmem:[#allocation80_spill] sm:$0xff]  ;;  %v1031_v15 = vmul.f32 %v6921_v13, %v839_v60  ;;  %v1396_v60 = vmul.f32 %v5385_v0, %v5481_v62  ;;  %v1584_v13 = vadd.f32 %v1552_v7, %v1289_v47 }
 0x1aa   : > { %v5484_v51 = vadd.f32 %v2001_v8, %v6916_v2  ;;  %v5487_v43 = vadd.f32 %v2008_v49, %v5136_v1  ;;  %v5496_v46 = vsel %vm1339_vm1, %v6919_v55, %v6918_v25  ;;  %v1782_v8 = vmul.f32 %v5123_v22, %v1622_v27  ;;  %v1892_v2 = vpop.permute.xlu1 %1891 }
 0x1ab   : > { %2569 = vperm.xlu1 %3334, %v6892_v31   ;;  %v1920_v1 = vpop.permute.xlu0 %1919  ;;  %v2003_v49 = vmul.f32 %v1892_v2, %v1843_v45  ;;  %v1852_v25 = vmul.f32 %v5212_v17, %v5496_v46  ;;  %v1101_v55 = vmul.f32 %v5218_v57, %v6904_v5  ;;  %v6925_v45 = vld [vmem:[#allocation109_spill] sm:$0xff] }
 0x1ac   : > { %6917 = vst [vmem:[#allocation101_spill] sm:$0xff] %v5487_v43  ;;  %v2010_v31 = vmul.f32 %v1920_v1, %v1850_v61  ;;  %v1845_v43 = vmul.f32 %v5212_v17, %v6922_v35  ;;  %v1626_v61 = vmul.f32 %v4962_v21, %v6925_v45  ;;  %v3389_v2 = vld [vmem:[%s6332_s5 + $0xa0] sm:$0xff]  ;;  %v1814_v47 = vadd.f32 %v1782_v8, %v1584_v13 }
 0x1ad   : > { %2173 = vperm.xlu0 %3351, %v5028_v12   ;;  %v5512_v22 = vadd.f32 %v2003_v49, %v5076_v6  ;;  %v1063_v12 = vadd.f32 %v1031_v15, %v734_v37 }
 0x1ae   : > { %v5515_v27 = vadd.f32 %v2010_v31, %v5147_v48  ;;  %v1900_v1 = vpop.permute.xlu1 %1899  ;;  %v6926_v48 = vld [vmem:[#allocation51_spill] sm:$0xff]  ;;  %v6927_v31 = vld [vmem:[#allocation8_spill] sm:$0xff] }
 0x1af   : > { %6923 = vst [vmem:[#allocation20_spill] sm:$0xff] %v5512_v22  ;;  %3335 = vset.pattern.permute.xlu1 %v6875_v23  ;;  %v1928_v35 = vpop.permute.xlu0 %1927  ;;  %v2005_v7 = vmul.f32 %v1900_v1, %v1845_v43  ;;  %v1261_v49 = vmul.f32 %v6926_v48, %v1101_v55  ;;  %v1786_v22 = vmul.f32 %v5190_v38, %v1626_v61  ;;  %v6930_v55 = vrot.slane %v6898_v44, 7 }
 0x1b0   : > { %6924 = vst [vmem:[#allocation82_spill] sm:$0xff] %v5515_v27  ;;  %2181 = vperm.xlu1 %3335, %v3389_v2   ;;  %v2012_v6 = vmul.f32 %v1928_v35, %v1852_v25  ;;  %v1556_v27 = vmul.f32 %v6927_v31, %v1396_v60  ;;  %v6929_v35 = vld [vmem:[#allocation26_spill] sm:$0xff]  ;;  %v6931_v60 = vrot.slane %v6899_v59, 7 }
 0x1b1   : > { %2185 = vperm.xlu0 %3351, %v4663_v26   ;;  %v5527_v37 = vadd.f32 %v2005_v7, %v5083_v54  ;;  %v1293_v45 = vadd.f32 %v1261_v49, %v1063_v12  ;;  %v1856_v25 = vmul.f32 %v5212_v17, %v6929_v35 }
 0x1b2   : > { %v5529_v15 = vadd.f32 %v2012_v6, %v1814_v47  ;;  %v1908_v62 = vpop.permute.xlu1 %1907  ;;  %v5545_v38 = vsel %vm782_vm2, %v6931_v60, %v6930_v55  ;;  %v6934_v47 = vld [vmem:[#allocation28_spill] sm:$0xff]  ;;  %v6935_v6 = vrot.slane %v6904_v5, 1  ;;  %v6940_v55 = vld [vmem:[#allocation30_spill] sm:$0xff] }
 0x1b3   : > { %v5533_v8 = vpop.permute.xlu0 %1935  ;;  %v2007_v43 = vmul.f32 %v1908_v62, %v5243_v52  ;;  %v1588_v54 = vadd.f32 %v1556_v27, %v1293_v45  ;;  %v1623_v52 = vmul.f32 %v4962_v21, %v5545_v38  ;;  %v6933_v27 = vld [vmem:[#allocation121_spill] sm:$0xff]  ;;  %v1858_v7 = vmul.f32 %v5212_v17, %v6934_v47 }
 0x1b4   : > { %6928 = vst [vmem:[#allocation69_spill] sm:$0xff] %v5529_v15  ;;  %3336 = vset.pattern.permute.xlu1 %v6819_v32 }
 0x1b5   : > { %2189 = vperm.xlu0 %3351, %v5130_v30   ;;  %2411 = vperm.xlu1 %3336, %v3389_v2   ;;  %v5548_v13 = vadd.f32 %v2007_v43, %v5102_v11  ;;  %v1818_v62 = vadd.f32 %v1786_v22, %v1588_v54  ;;  %v6936_v11 = vrot.slane %v6898_v44, 1  ;;  %v1783_v49 = vmul.f32 %v5061_v19, %v1623_v52 }
 0x1b6   : > { %v1916_v12 = vpop.permute.xlu1 %1915 }
 0x1b7   : > { %6932 = vst [vmem:[#allocation43_spill] sm:$0xff] %v5548_v13  ;;  %v1944_v61 = vpop.permute.xlu0 %1943  ;;  %v2009_v1 = vmul.f32 %v1916_v12, %v5254_v24  ;;  %v5563_v48 = vsel %vm1339_vm1, %v6936_v11, %v6935_v6  ;;  %v6943_v12 = vld [vmem:[#allocation104_spill] sm:$0xff] }
 0x1b8   : > { %v2016_v45 = vmul.f32 %v1944_v61, %v1856_v25  ;;  %6937 = vst [vmem:[#allocation91_spill] sm:$0xff] %v5563_v48  ;;  %v1853_v43 = vmul.f32 %v5212_v17, %v5563_v48  ;;  %v1815_v61 = vadd.f32 %v1783_v49, %v6943_v12  ;;  %v6947_v6 = vld [vmem:[#allocation40_spill] sm:$0xff]  ;;  %v6948_v49 = vld [vmem:[#allocation130_spill] sm:$0xff] }
 0x1b9   : > { %2201 = vperm.xlu0 %3351, %v6933_v27   ;;  %2415 = vperm.xlu1 %3336, %v4663_v26   ;;  %v5566_v22 = vadd.f32 %v2009_v1, %v5115_v42  ;;  %v1860_v42 = vmul.f32 %v5212_v17, %v6940_v55  ;;  %v778_v11 = vrot.slane %v6947_v6, 7  ;;  %v6960_v15 = vrot.slane %v6948_v49, 7  ;;  %v6967_v55 = vld [vmem:[#allocation116_spill] sm:$0xff] }
 0x1ba   : > { %v5568_v24 = vadd.f32 %v2016_v45, %v1818_v62  ;;  %v1924_v31 = vpop.permute.xlu1 %1923 }
 0x1bb   : > { %6938 = vst [vmem:[#allocation102_spill] sm:$0xff] %v5566_v22  ;;  %v1952_v26 = vpop.permute.xlu0 %1951  ;;  %v2011_v25 = vmul.f32 %v1924_v31, %v5259_v20  ;;  %v851_v20 = vmul.f32 %v5169_v9, %v5336_v56  ;;  %v6949_v31 = vrot.slane %v6948_v49, 1  ;;  %v5624_v22 = vsel %vm782_vm2, %v6960_v15, %v778_v11  ;;  %v6964_v15 = vld [vmem:[#allocation103_spill] sm:$0xff] }
 0x1bc   : > { %6939 = vst [vmem:[#allocation80_spill] sm:$0xff] %v5568_v24  ;;  %v2018_v54 = vmul.f32 %v1952_v26, %v1858_v7  ;;  %v6950_v26 = vld [vmem:[#allocation41_spill] sm:$0xff]  ;;  %v1638_v56 = vmul.f32 %v4962_v21, %v5624_v22 }
 0x1bd   : > { %2209 = vperm.xlu0 %3351, %v6849_v40   ;;  %2351 = vperm.xlu1 %3336, %v5408_v16   ;;  %v5579_v60 = vadd.f32 %v2011_v25, %v5125_v29  ;;  %v6945_v29 = vld [vmem:[#allocation56_spill] sm:$0xff]  ;;  %v6953_v25 = vld [vmem:[#allocation149_spill] sm:$0xff] }
 0x1be   : > { %v5582_v19 = vadd.f32 %v2018_v54, %v5264_v63  ;;  %v1932_v52 = vpop.permute.xlu1 %1931  ;;  %v6954_v54 = vld [vmem:[#allocation61_spill] sm:$0xff] }
 0x1bf   : > { %6941 = vst [vmem:[#allocation12_spill] sm:$0xff] %v5579_v60  ;;  %v1960_v62 = vpop.permute.xlu0 %1959  ;;  %v2013_v1 = vmul.f32 %v1932_v52, %v1853_v43  ;;  %v746_v52 = vmul.f32 %v5195_v33, %v6947_v6 }
 0x1c0   : > { %6942 = vst [vmem:[#allocation24_spill] sm:$0xff] %v5582_v19  ;;  %v2020_v40 = vmul.f32 %v1960_v62, %v1860_v42  ;;  %v1857_v42 = vmul.f32 %v5212_v17, %v6954_v54  ;;  %v6955_v62 = vld [vmem:[#allocation36_spill] sm:$0xff] }
 0x1c1   : > { %2213 = vperm.xlu0 %3351, %v6864_v28   ;;  %3337 = vset.pattern.permute.xlu1 %v6833_v53  ;;  %v5589_v45 = vadd.f32 %v2013_v1, %v1815_v61  ;;  %v6951_v28 = vrot.slane %v6950_v26, 1  ;;  %v1043_v12 = vmul.f32 %v6955_v62, %v851_v20  ;;  %v6956_v61 = vld [vmem:[#allocation142_spill] sm:$0xff] }
 0x1c2   : > { %2641 = vperm.xlu1 %3337, %v3389_v2   ;;  %v5592_v7 = vadd.f32 %v2020_v40, %v6945_v29  ;;  %v5594_v63 = vpop.permute.xlu1 %1939  ;;  %v6957_v40 = vld [vmem:[#allocation131_spill] sm:$0xff]  ;;  %v1113_v29 = vmul.f32 %v5218_v57, %v6950_v26 }
 0x1c3   : > { %6944 = vst [vmem:[#allocation51_spill] sm:$0xff] %v5589_v45  ;;  %v5603_v43 = vsel %vm1339_vm1, %v6951_v28, %v6949_v31  ;;  %v1968_v2 = vpop.permute.xlu0 %1967  ;;  %v6958_v28 = vld [vmem:[#allocation118_spill] sm:$0xff]  ;;  %v1075_v26 = vadd.f32 %v1043_v12, %v746_v52 }
 0x1c4   : > { %6946 = vst [vmem:[#allocation8_spill] sm:$0xff] %v5592_v7  ;;  %6952 = vst [vmem:[#allocation26_spill] sm:$0xff] %v5603_v43  ;;  %v2022_v1 = vmul.f32 %v1968_v2, %v6956_v61  ;;  %v1408_v31 = vmul.f32 %v5385_v0, %v5603_v43  ;;  %v6961_v2 = vld [vmem:[#allocation16_spill] sm:$0xff]  ;;  %v6962_v61 = vld [vmem:[#allocation119_spill] sm:$0xff]  ;;  %v1866_v49 = vmul.f32 %v5212_v17, %v5603_v43 }
 0x1c5   : > { %2153 = vperm.xlu0 %3351, %v6953_v25   ;;  %v6970_v43 = vld [vmem:[#allocation150_spill] sm:$0xff] }
 0x1c6   : > { %2577 = vperm.xlu1 %3337, %v6957_v40   ;;  %v5618_v25 = vadd.f32 %v2022_v1, %v6958_v28  ;;  %v1948_v45 = vpop.permute.xlu1 %1947  ;;  %v1859_v40 = vmul.f32 %v5212_v17, %v6962_v61  ;;  %v6963_v1 = vld [vmem:[#allocation143_spill] sm:$0xff]  ;;  %v1798_v24 = vmul.f32 %v6970_v43, %v1638_v56 }
 0x1c7   : > { %v2017_v20 = vmul.f32 %v1948_v45, %v1857_v42  ;;  %v1976_v62 = vpop.permute.xlu0 %1975  ;;  %v6965_v45 = vld [vmem:[#allocation79_spill] sm:$0xff] }
 0x1c8   : > { %6959 = vst [vmem:[#allocation121_spill] sm:$0xff] %v5618_v25  ;;  %v2024_v28 = vmul.f32 %v1976_v62, %v6963_v1  ;;  %v1273_v42 = vmul.f32 %v6965_v45, %v1113_v29  ;;  %v6966_v25 = vld [vmem:[#allocation120_spill] sm:$0xff]  ;;  %v6969_v1 = vld [vmem:[#allocation123_spill] sm:$0xff] }
 0x1c9   : > { %2225 = vperm.xlu0 %3351, %v6961_v2   ;;  %v5636_v13 = vadd.f32 %v2017_v20, %v6964_v15  ;;  %v1568_v60 = vmul.f32 %v6966_v25, %v1408_v31  ;;  %v6971_v29 = vld [vmem:[#allocation135_spill] sm:$0xff]  ;;  %v6974_v25 = vld [vmem:[#allocation97_spill] sm:$0xff] }
 0x1ca   : > { %2581 = vperm.xlu1 %3337, %v5408_v16   ;;  %v5641_v7 = vadd.f32 %v2024_v28, %v6967_v55  ;;  %v1956_v52 = vpop.permute.xlu1 %1955  ;;  %v1861_v16 = vmul.f32 %v5212_v17, %v6969_v1  ;;  %v1305_v19 = vadd.f32 %v1273_v42, %v1075_v26  ;;  %v6972_v31 = vrot.slane %v6971_v29, 7  ;;  %v6976_v28 = vld [vmem:[#allocation27_spill] sm:$0xff]  ;;  %v6977_v26 = vld [vmem:[#allocation73_spill] sm:$0xff] }
 0x1cb   : > { %v2019_v12 = vmul.f32 %v1956_v52, %v1859_v40  ;;  %v1984_v62 = vpop.permute.xlu0 %1983  ;;  %v6979_v52 = vld [vmem:[#allocation67_spill] sm:$0xff] }
 0x1cc   : > { %6968 = vst [vmem:[#allocation28_spill] sm:$0xff] %v5641_v7  ;;  %v2026_v20 = vmul.f32 %v1984_v62, %v1866_v49  ;;  %v5653_v55 = vsel %vm782_vm2, %v778_v11, %v6972_v31  ;;  %v1600_v15 = vadd.f32 %v1568_v60, %v1305_v19  ;;  %v5668_v11 = vld [vmem:[%s6332_s5 + $0xd0] sm:$0xff]  ;;  %v5674_v60 = vld [vmem:[%s6330_s3 + $0x7] ss:$0 sm:$0xff]  ;;  %v6980_v19 = vld [vmem:[#allocation66_spill] sm:$0xff] }
 0x1cd   : > { %3353 = vset.pattern.permute.xlu0 %v6819_v32  ;;  %6973 = vst [vmem:[#allocation104_spill] sm:$0xff] %v5653_v55  ;;  %v5656_v40 = vadd.f32 %v2019_v12, %v6974_v25  ;;  %v822_v43 = vmul.f32 %v5169_v9, %v5653_v55  ;;  %v6983_v31 = vld [vmem:[#allocation144_spill] sm:$0xff]  ;;  %v1639_v7 = vmul.f32 %v4962_v21, %v5653_v55 }
 0x1ce   : > { %2431 = vperm.xlu0 %3353, %v6933_v27   ;;  %3338 = vset.pattern.permute.xlu1 %v6875_v23  ;;  %v5660_v45 = vadd.f32 %v2026_v20, %v6977_v26  ;;  %v1964_v56 = vpop.permute.xlu1 %1963  ;;  %v1830_v42 = vadd.f32 %v1798_v24, %v1600_v15  ;;  %v2314_v24 = vmul.f32 %v5674_v60, %v6920_v34  ;;  %v6985_v26 = vld [vmem:[#allocation17_spill] sm:$0xff] }
 0x1cf   : > { %6975 = vst [vmem:[#allocation56_spill] sm:$0xff] %v5656_v40  ;;  %2193 = vperm.xlu1 %3338, %v6976_v28   ;;  %v2021_v49 = vmul.f32 %v1964_v56, %v1861_v16  ;;  %v1992_v27 = vpop.permute.xlu0 %1991  ;;  %v6984_v28 = vld [vmem:[#allocation48_spill] sm:$0xff]  ;;  %v1014_v56 = vmul.f32 %v6985_v26, %v822_v43  ;;  %v1084_v26 = vmul.f32 %v5218_v57, %v6971_v29 }
 0x1d0   : > { %6978 = vst [vmem:[#allocation149_spill] sm:$0xff] %v5660_v45  ;;  %v2028_v62 = vmul.f32 %v1992_v27, %v6979_v52  ;;  %v717_v15 = vmul.f32 %v5195_v33, %v6984_v28  ;;  %v6986_v27 = vld [vmem:[#allocation7_spill] sm:$0xff] }
 0x1d1   : > { %v5677_v12 = vadd.f32 %v2021_v49, %v6980_v19  ;;  %v5692_v49 = vld [vmem:[%s6332_s5 + $0x58] sm:$0xff] }
 0x1d2   : > { %2435 = vperm.xlu0 %3353, %v5668_v11   ;;  %v5682_v16 = vadd.f32 %v2028_v62, %v1830_v42  ;;  %v6987_v42 = vrot.slane %v6986_v27, 1  ;;  %v6990_v62 = vld [vmem:[#allocation77_spill] sm:$0xff] }
 0x1d3   : > { %6981 = vst [vmem:[#allocation61_spill] sm:$0xff] %v5677_v12  ;;  %3339 = vset.pattern.permute.xlu1 %v6819_v32  ;;  %v1972_v20 = vpop.permute.xlu1 %1971 }
 0x1d4   : > { %6982 = vst [vmem:[#allocation36_spill] sm:$0xff] %v5682_v16  ;;  %2419 = vperm.xlu1 %3339, %v5130_v30   ;;  %v2023_v25 = vmul.f32 %v1972_v20, %v6983_v31  ;;  %v6988_v30 = vrot.slane %v6971_v29, 1  ;;  %v6993_v20 = vld [vmem:[#allocation49_spill] sm:$0xff]  ;;  %v6994_v16 = vld [vmem:[#allocation42_spill] sm:$0xff] }
 0x1d5   : > { %v2299_v31 = vmul.f32 %v5674_v60, %v6993_v20  ;;  %v6999_v29 = vld [vmem:[#allocation106_spill] sm:$0xff] }
 0x1d6   : > { %2375 = vperm.xlu0 %3353, %v5692_v49   ;;  %v2396_v34 = vpop.permute.xlu0 %2395  ;;  %v5701_v52 = vsel %vm1339_vm1, %v6988_v30, %v6987_v42  ;;  %v5704_v19 = vadd.f32 %v2023_v25, %v6990_v62  ;;  %v1046_v30 = vadd.f32 %v1014_v56, %v717_v15  ;;  %v6997_v62 = vld [vmem:[#allocation133_spill] sm:$0xff]  ;;  %v2317_v45 = vmul.f32 %v5674_v60, %v6999_v29  ;;  %v7002_v15 = vld [vmem:[#allocation148_spill] sm:$0xff] }
 0x1d7   : > { %6989 = vst [vmem:[#allocation142_spill] sm:$0xff] %v5701_v52  ;;  %v5706_v43 = vmul.f32 %v2396_v34, %v2314_v24  ;;  %v1980_v28 = vpop.permute.xlu1 %1979  ;;  %v1379_v25 = vmul.f32 %v5385_v0, %v5701_v52  ;;  %v6996_v24 = vld [vmem:[#allocation128_spill] sm:$0xff]  ;;  %v1799_v56 = vmul.f32 %v7002_v15, %v1639_v7  ;;  %v7007_v7 = vld [vmem:[#allocation126_spill] sm:$0xff] }
 0x1d8   : > { %6991 = vst [vmem:[#allocation131_spill] sm:$0xff] %v5704_v19  ;;  %2355 = vperm.xlu1 %3339, %v6994_v16   ;;  %v2025_v42 = vmul.f32 %v1980_v28, %v6995_v58  ;;  %v7000_v19 = vld [vmem:[#allocation37_spill] sm:$0xff]  ;;  %v7003_v58 = vld [vmem:[#allocation147_spill] sm:$0xff] }
 0x1d9   : > { %6992 = vst [vmem:[#allocation118_spill] sm:$0xff] %v5706_v43  ;;  %v1244_v40 = vmul.f32 %v7000_v19, %v1084_v26  ;;  %v7001_v43 = vld [vmem:[#allocation108_spill] sm:$0xff]  ;;  %v5738_v19 = vld [vmem:[%s6332_s5 + $0xf0] sm:$0xff] }
 0x1da   : > { %2447 = vperm.xlu0 %3353, %v6996_v24   ;;  %v2336_v34 = vpop.permute.xlu0 %2335  ;;  %v5720_v20 = vadd.f32 %v2025_v42, %v6997_v62  ;;  %v1609_v55 = vmul.f32 %v4962_v21, %v7001_v43  ;;  %v1869_v42 = vmul.f32 %v5212_v17, %v5701_v52  ;;  %7006 = vst [vmem:[#allocation119_spill] sm:$0xff] %v5738_v19  ;;  %v5761_v52 = vld [vmem:[%s6332_s5 + $0x78] sm:$0xff] }
 0x1db   : > { %v2459_v12 = vmul.f32 %v2336_v34, %v2299_v31  ;;  %v1276_v62 = vadd.f32 %v1244_v40, %v1046_v30  ;;  %v7004_v31 = vld [vmem:[#allocation85_spill] sm:$0xff]  ;;  %v7009_v30 = vld [vmem:[#allocation31_spill] sm:$0xff]  ;;  %7012 = vst [vmem:[#allocation103_spill] sm:$0xff] %v5761_v52 }
 0x1dc   : > { %6998 = vst [vmem:[#allocation16_spill] sm:$0xff] %v5720_v20  ;;  %2359 = vperm.xlu1 %3339, %v5160_v41   ;;  %v1988_v28 = vpop.permute.xlu1 %1987  ;;  %v1539_v34 = vmul.f32 %v7004_v31, %v1379_v25  ;;  %v7005_v20 = vld [vmem:[#allocation129_spill] sm:$0xff]  ;;  %v1769_v25 = vmul.f32 %v7009_v30, %v1609_v55 }
 0x1dd   : > { %v2027_v24 = vmul.f32 %v1988_v28, %v7003_v58  ;;  %v1839_v29 = vmul.f32 %v5212_v17, %v7005_v20  ;;  %v5749_v40 = vld [vmem:[%s6330_s3 + $0x6] ss:$0 sm:$0xff]  ;;  %v7010_v58 = vld [vmem:[#allocation23_spill] sm:$0xff] }
 0x1de   : > { %2451 = vperm.xlu0 %3353, %v5738_v19   ;;  %v2408_v41 = vpop.permute.xlu0 %2407  ;;  %v1831_v31 = vadd.f32 %v1799_v56, %v7010_v58  ;;  %v7013_v30 = vld [vmem:[#allocation65_spill] sm:$0xff] }
 0x1df   : > { %v5742_v26 = vadd.f32 %v2027_v24, %v7007_v7  ;;  %v5744_v28 = vmul.f32 %v2408_v41, %v2317_v45  ;;  %v3393_v24 = vld [vmem:[%s6332_s5 + $0xb8] sm:$0xff]  ;;  %v1571_v45 = vadd.f32 %v1539_v34, %v1276_v62  ;;  %v7011_v41 = vld [vmem:[#allocation125_spill] sm:$0xff]  ;;  %v2069_v56 = vmul.f32 %v5749_v40, %v7013_v30  ;;  %v5774_v34 = vld [vmem:[%s6330_s3 + $0x8] ss:$0 sm:$0xff] }
 0x1e0   : > { %3341 = vset.pattern.permute.xlu1 %v6833_v53  ;;  %v1996_v15 = vpop.permute.xlu1 %1995  ;;  %v1999_v7 = vmul.f32 %v7011_v41, %v1839_v29  ;;  %v7015_v30 = vld [vmem:[#allocation60_spill] sm:$0xff]  ;;  %v7023_v19 = vld [vmem:[#allocation21_spill] sm:$0xff] }
 0x1e1   : > { %7008 = vst [vmem:[#allocation143_spill] sm:$0xff] %v5742_v26  ;;  %v2029_v20 = vmul.f32 %v1996_v15, %v1869_v42  ;;  %2653 = vperm.xlu1 %3341, %v3393_v24   ;;  %v7014_v15 = vld [vmem:[#allocation112_spill] sm:$0xff]  ;;  %v1801_v24 = vadd.f32 %v1769_v25, %v1571_v45 }
 0x1e2   : > { %2391 = vperm.xlu0 %3353, %v5761_v52   ;;  %v2348_v55 = vpop.permute.xlu0 %2347  ;;  %v2321_v58 = vmul.f32 %v5674_v60, %v7014_v15  ;;  %v7017_v15 = vld [vmem:[#allocation59_spill] sm:$0xff] }
 0x1e3   : > { %v5766_v42 = vadd.f32 %v2029_v20, %v1831_v31  ;;  %v2031_v29 = vadd.f32 %v1999_v7, %v1801_v24  ;;  %v2070_v20 = vmul.f32 %v5749_v40, %v7015_v30  ;;  %v2302_v7 = vmul.f32 %v5674_v60, %v7017_v15  ;;  %v7018_v24 = vld [vmem:[#allocation6_spill] sm:$0xff] }
 0x1e5   : > { %2585 = vperm.xlu1 %3341, %v6994_v16   ;;  %v2106_v62 = vpop.permute.xlu1 %2105  ;;  %v2545_v16 = vmul.f32 %v5774_v34, %v6954_v54 }
 0x1e6   : > { %v2229_v41 = vmul.f32 %v2106_v62, %v2069_v56  ;;  %3356 = vset.pattern.permute.xlu0 %v6833_v53  ;;  %v2424_v26 = vpop.permute.xlu0 %2423  ;;  %v7019_v62 = vld [vmem:[#allocation83_spill] sm:$0xff] }
 0x1e7   : > { %2685 = vperm.xlu0 %3356, %v6961_v2   ;;  %v5780_v31 = vmul.f32 %v2424_v26, %v2321_v58  ;;  %v2072_v30 = vmul.f32 %v5749_v40, %v7019_v62  ;;  %v838_v2 = vmul.f32 %v5169_v9, %v5545_v38  ;;  %v7020_v58 = vmov 0  }
 0x1e8   : > { %v2261_v25 = vadd.f32 %v2229_v41, %v2031_v29  ;;  %v2546_v41 = vmul.f32 %v5774_v34, %v6934_v47  ;;  %v733_v62 = vmul.f32 %v5195_v33, %v4495_v14 }
 0x1e9   : > { %7016 = vst [vmem:[#allocation79_spill] sm:$0xff] %v5780_v31  ;;  %3342 = vset.pattern.permute.xlu1 %v6875_v23  ;;  %v2110_v45 = vpop.permute.xlu1 %2109  ;;  %v7021_v31 = vld [vmem:[#allocation33_spill] sm:$0xff] }
 0x1ea   : > { %v2230_v56 = vmul.f32 %v2110_v45, %v2070_v20  ;;  %2197 = vperm.xlu1 %3342, %v7018_v24   ;;  %v5790_v52 = vadd.f32 %v2459_v12, %v2261_v25  ;;  %v2462_v45 = vmul.f32 %v2348_v55, %v2302_v7  ;;  %v7022_v12 = vld [vmem:[#allocation86_spill] sm:$0xff]  ;;  %v2531_v55 = vmul.f32 %v5774_v34, %v6911_v4 }
 0x1eb   : > { %v2630_v26 = vpop.permute.xlu0 %2629  ;;  %3357 = vset.pattern.permute.xlu0 %v7020_v58  ;;  %v2074_v25 = vmul.f32 %v5749_v40, %v7022_v12  ;;  %v1030_v58 = vmul.f32 %v7023_v19, %v838_v2  ;;  %v1395_v7 = vmul.f32 %v5385_v0, %v5563_v48  ;;  %v7025_v12 = vld [vmem:[#allocation89_spill] sm:$0xff] }
 0x1ec   : > { %v5796_v54 = vadd.f32 %v2230_v56, %v5456_v10  ;;  %v2705_v29 = vmul.f32 %v2630_v26, %v2545_v16  ;;  %v1100_v10 = vmul.f32 %v5218_v57, %v6898_v44  ;;  %v7024_v56 = vld [vmem:[#allocation39_spill] sm:$0xff]  ;;  %v2076_v19 = vmul.f32 %v5749_v40, %v7025_v12  ;;  %v7029_v12 = vld [vmem:[#allocation105_spill] sm:$0xff] }
 0x1ed   : > { %v2118_v20 = vpop.permute.xlu1 %2117  ;;  %v1062_v14 = vadd.f32 %v1030_v58, %v733_v62  ;;  %v7026_v44 = vld [vmem:[#allocation47_spill] sm:$0xff] }
 0x1ee   : > { %v2232_v15 = vmul.f32 %v2118_v20, %v2072_v30  ;;  %2137 = vperm.xlu1 %3342, %v7021_v31  }
 0x1ef   : > { %v2634_v16 = vpop.permute.xlu0 %2633 }
 0x1f0   : > { %v2264_v26 = vadd.f32 %v2232_v15, %v7024_v56  ;;  %v5809_v47 = vmul.f32 %v2634_v16, %v2546_v41  ;;  %v1260_v15 = vmul.f32 %v7026_v44, %v1100_v10  ;;  %v7027_v41 = vld [vmem:[#allocation138_spill] sm:$0xff] }
 0x1f1   : > { %v2126_v30 = vpop.permute.xlu1 %2125  ;;  %v1625_v16 = vmul.f32 %v4962_v21, %v7027_v41  ;;  %v7031_v21 = vld [vmem:[#allocation141_spill] sm:$0xff] }
 0x1f2   : > { %v2234_v20 = vmul.f32 %v2126_v30, %v2074_v25  ;;  %3343 = vset.pattern.permute.xlu1 %v6819_v32  ;;  %v5818_v2 = vadd.f32 %v2462_v45, %v2264_v26  ;;  %v2549_v30 = vmul.f32 %v5774_v34, %v6969_v1  ;;  %v1555_v45 = vmul.f32 %v7029_v12, %v1395_v7  ;;  %v7030_v26 = vld [vmem:[#allocation18_spill] sm:$0xff] }
 0x1f3   : > { %2427 = vperm.xlu1 %3343, %v7018_v24   ;;  %v2574_v4 = vpop.permute.xlu0 %2573  ;;  %v1855_v58 = vmul.f32 %v5212_v17, %v7030_v26  ;;  %v1292_v10 = vadd.f32 %v1260_v15, %v1062_v14  ;;  %v1785_v41 = vmul.f32 %v7031_v21, %v1625_v16  ;;  %v7032_v24 = vld [vmem:[#allocation52_spill] sm:$0xff]  ;;  %v7035_v7 = vld [vmem:[#allocation122_spill] sm:$0xff]  ;;  %v7036_v21 = vld [vmem:[#allocation9_spill] sm:$0xff] }
 0x1f4   : > { %v5825_v56 = vadd.f32 %v2234_v20, %v5428_v50  ;;  %v5827_v25 = vmul.f32 %v2574_v4, %v2531_v55  ;;  %v7033_v50 = vld [vmem:[#allocation114_spill] sm:$0xff]  ;;  %v2550_v4 = vmul.f32 %v5774_v34, %v7035_v7 }
 0x1f5   : > { %v2134_v44 = vpop.permute.xlu1 %2133  ;;  %v2085_v55 = vmul.f32 %v5749_v40, %v7033_v50  ;;  %v1587_v12 = vadd.f32 %v1555_v45, %v1292_v10  ;;  %v2315_v50 = vmul.f32 %v5674_v60, %v7036_v21 }
 0x1f6   : > { %7028 = vst [vmem:[#allocation120_spill] sm:$0xff] %v5825_v56  ;;  %v2236_v62 = vmul.f32 %v2134_v44, %v2076_v19  ;;  %v2015_v19 = vmul.f32 %v5594_v63, %v1855_v58  ;;  %v7038_v58 = vld [vmem:[#allocation76_spill] sm:$0xff] }
 0x1f7   : > { %2363 = vperm.xlu1 %3343, %v7032_v24   ;;  %v2646_v48 = vpop.permute.xlu0 %2645  ;;  %v1817_v15 = vadd.f32 %v1785_v41, %v1587_v12  ;;  %v2552_v10 = vmul.f32 %v5774_v34, %v7038_v58  ;;  %v2529_v58 = vmul.f32 %v5774_v34, %v6907_v36  ;;  %v3397_v36 = vld [vmem:[%s6330_s3 + $0x3] ss:$0 sm:$0xff] }
 0x1f8   : > { %v5839_v20 = vadd.f32 %v2236_v62, %v5459_v18  ;;  %v5841_v1 = vmul.f32 %v2646_v48, %v2549_v30  ;;  %v7037_v18 = vld [vmem:[#allocation100_spill] sm:$0xff] }
 0x1f9   : > { %v2170_v14 = vpop.permute.xlu1 %2169  ;;  %v2535_v48 = vmul.f32 %v5774_v34, %v7037_v18  ;;  %v2047_v30 = vadd.f32 %v2015_v19, %v1817_v15  ;;  %v7040_v15 = vld [vmem:[#allocation140_spill] sm:$0xff] }
 0x1fa   : > { %7034 = vst [vmem:[#allocation116_spill] sm:$0xff] %v5839_v20  ;;  %v2245_v16 = vmul.f32 %v2170_v14, %v2085_v55  ;;  %v7050_v20 = vld [vmem:[#allocation84_spill] sm:$0xff] }
 0x1fb   : > { %2367 = vperm.xlu1 %3343, %v7021_v31   ;;  %v2650_v44 = vpop.permute.xlu0 %2649  ;;  %v3395_v31 = vld [vmem:[%s6332_s5 + $0xc8] sm:$0xff] }
 0x1fc   : > { %v5849_v26 = vmul.f32 %v2650_v44, %v2550_v4  ;;  %v2277_v7 = vadd.f32 %v2245_v16, %v2047_v30  ;;  %v2537_v16 = vmul.f32 %v5774_v34, %v7040_v15  ;;  %v821_v44 = vmul.f32 %v5169_v9, %v5624_v22  ;;  %v7046_v15 = vld [vmem:[#allocation38_spill] sm:$0xff] }
 0x1fd   : > { %v716_v30 = vmul.f32 %v5195_v33, %v6986_v27 }
 0x1fe   : > { %v2400_v62 = vpop.permute.xlu1 %2399 }
 0x1ff   : > { %v2475_v45 = vmul.f32 %v2400_v62, %v2315_v50  ;;  %3344 = vset.pattern.permute.xlu1 %v6833_v53  ;;  %v2590_v63 = vpop.permute.xlu0 %2589 }
 0x200   : > { %v5854_v41 = vmul.f32 %v2590_v63, %v2535_v48  ;;  %2661 = vperm.xlu1 %3344, %v3395_v31  }
 0x201   : > { %v2507_v55 = vadd.f32 %v2475_v45, %v2277_v7  ;;  %v1083_v7 = vmul.f32 %v5218_v57, %v6947_v6  ;;  %v7049_v6 = vld [vmem:[#allocation117_spill] sm:$0xff] }
 0x202   : > { %v5861_v4 = vpop.permute.xlu1 %2331 }
 0x203   : > { %v5863_v12 = vadd.f32 %v2705_v29, %v2507_v55  ;;  %v2658_v19 = vpop.permute.xlu0 %2657  ;;  %v7042_v29 = vld [vmem:[#allocation139_spill] sm:$0xff] }
 0x204   : > { %v5865_v14 = vmul.f32 %v2658_v19, %v2552_v10  ;;  %2593 = vperm.xlu1 %3344, %v7032_v24   ;;  %v2555_v48 = vmul.f32 %v5774_v34, %v7042_v29  ;;  %v7043_v24 = vld [vmem:[#allocation15_spill] sm:$0xff]  ;;  %v7047_v29 = vld [vmem:[#allocation146_spill] sm:$0xff] }
 0x205   : > { %v1013_v62 = vmul.f32 %v7043_v24, %v821_v44  ;;  %v7045_v10 = vld [vmem:[#allocation115_spill] sm:$0xff] }
 0x206   : > { %7039 = vst [vmem:[#allocation123_spill] sm:$0xff] %v5865_v14  ;;  %v2556_v55 = vmul.f32 %v5774_v34, %v7045_v10  ;;  %v5895_v44 = vld [vmem:[%s6332_s5 + $0x50] sm:$0xff]  ;;  %v7051_v14 = vld [vmem:[#allocation124_spill] sm:$0xff] }
 0x207   : > { %v5872_v21 = vpop.permute.xlu1 %2625  ;;  %v2598_v50 = vpop.permute.xlu0 %2597  ;;  %v1045_v19 = vadd.f32 %v1013_v62, %v716_v30 }
 0x208   : > { %v5874_v18 = vmul.f32 %v2598_v50, %v2537_v16  ;;  %3345 = vset.pattern.permute.xlu1 %v6875_v23  ;;  %v1243_v16 = vmul.f32 %v7046_v15, %v1083_v7  ;;  %v1378_v50 = vmul.f32 %v5385_v0, %v7045_v10  ;;  %v7048_v15 = vld [vmem:[#allocation14_spill] sm:$0xff]  ;;  %v2087_v10 = vmul.f32 %v5749_v40, %v7049_v6 }
 0x209   : > { %2205 = vperm.xlu1 %3345, %v5668_v11   ;;  %v1838_v27 = vmul.f32 %v5212_v17, %v7048_v15  ;;  %v837_v6 = vmul.f32 %v5169_v9, %v5453_v39  ;;  %v7056_v9 = vld [vmem:[#allocation74_spill] sm:$0xff] }
 0x20a   : > { %7041 = vst [vmem:[#allocation150_spill] sm:$0xff] %v5874_v18  ;;  %v1538_v18 = vmul.f32 %v7050_v20, %v1378_v50  ;;  %v7055_v50 = vld [vmem:[#allocation57_spill] sm:$0xff] }
 0x20b   : > { %v2562_v45 = vpop.permute.xlu1 %2561  ;;  %v2670_v63 = vpop.permute.xlu0 %2669 }
 0x20c   : > { %v5885_v31 = vmul.f32 %v2670_v63, %v2555_v48  ;;  %v1608_v48 = vmul.f32 %v3397_v36, %v7047_v29  ;;  %v1275_v63 = vadd.f32 %v1243_v16, %v1045_v19 }
 0x20d   : > { %2141 = vperm.xlu1 %3345, %v5895_v44  }
 0x20e   : > { %7044 = vst [vmem:[#allocation97_spill] sm:$0xff] %v5885_v31  ;;  %v1768_v29 = vmul.f32 %v7051_v14, %v1608_v48  ;;  %v7054_v14 = vld [vmem:[#allocation50_spill] sm:$0xff]  ;;  %v2528_v48 = vmul.f32 %v5774_v34, %v7055_v50 }
 0x20f   : > { %v2566_v24 = vpop.permute.xlu1 %2565  ;;  %v2674_v30 = vpop.permute.xlu0 %2673 }
 0x210   : > { %v2689_v62 = vmul.f32 %v2566_v24, %v2529_v58  ;;  %v5904_v7 = vmul.f32 %v2674_v30, %v2556_v55  ;;  %v1570_v55 = vadd.f32 %v1538_v18, %v1275_v63  ;;  %v7052_v24 = vld [vmem:[#allocation137_spill] sm:$0xff]  ;;  %v7053_v30 = vld [vmem:[#allocation54_spill] sm:$0xff]  ;;  %v2298_v18 = vmul.f32 %v5674_v60, %v7054_v14 }
 0x211   : > { %2145 = vperm.xlu1 %3345, %v5692_v49   ;;  %v1998_v19 = vmul.f32 %v7052_v24, %v1838_v27  ;;  %v2068_v15 = vmul.f32 %v5749_v40, %v7053_v30  ;;  %v2071_v24 = vmul.f32 %v5749_v40, %v7056_v9  ;;  %v1394_v14 = vmul.f32 %v5385_v0, %v5496_v46  ;;  %v7060_v0 = vld [vmem:[#allocation58_spill] sm:$0xff] }
 0x212   : > { %v2721_v31 = vadd.f32 %v2689_v62, %v5790_v52  ;;  %v3398_v52 = vld [vmem:[%s6332_s5 + $0xd8] sm:$0xff]  ;;  %v1800_v20 = vadd.f32 %v1768_v29, %v1570_v55  ;;  %v732_v29 = vmul.f32 %v5195_v33, %v6904_v5  ;;  %v7057_v55 = vld [vmem:[#allocation22_spill] sm:$0xff] }
 0x213   : > { %v5914_v56 = vpop.permute.xlu0 %2613 }
 0x214   : > { %v2178_v58 = vpop.permute.xlu1 %2177  ;;  %v2030_v63 = vadd.f32 %v1998_v19, %v1800_v20  ;;  %v2458_v19 = vmul.f32 %v5861_v4, %v2298_v18  ;;  %v1099_v20 = vmul.f32 %v5218_v57, %v6899_v59  ;;  %v5952_v4 = vld [vmem:[%s6331_s4] ss:$0 sm:$0xff] }
 0x215   : > { %v2247_v16 = vmul.f32 %v2178_v58, %v2087_v10  ;;  %3346 = vset.pattern.permute.xlu1 %v6819_v32  ;;  %v2760_v18 = vadd.f32 %v5952_v4, %v2721_v31  ;;  %v7064_v31 = vld [vmem:[#allocation87_spill] sm:$0xff] }
 0x216   : > { %2439 = vperm.xlu1 %3346, %v3398_v52   ;;  %v1029_v52 = vmul.f32 %v7057_v55, %v837_v6  ;;  %v7059_v6 = vld [vmem:[#allocation81_spill] sm:$0xff] }
 0x217   : > { %v2279_v27 = vadd.f32 %v2247_v16, %v5636_v13  ;;  %v7058_v13 = vld [vmem:[#allocation53_spill] sm:$0xff]  ;;  %v2073_v9 = vmul.f32 %v5749_v40, %v7059_v6 }
 0x218   : > { %v2102_v62 = vpop.permute.xlu0 %2101  ;;  %v2300_v16 = vmul.f32 %v5674_v60, %v7058_v13  ;;  %v1061_v55 = vadd.f32 %v1029_v52, %v732_v29  ;;  %v1624_v13 = vmul.f32 %v3397_v36, %v5438_v3 }
 0x219   : > { %v2228_v10 = vmul.f32 %v2102_v62, %v2068_v15  ;;  %v5930_v58 = vpop.permute.xlu1 %2403  ;;  %v2509_v30 = vadd.f32 %v5744_v28, %v2279_v27  ;;  %v2688_v27 = vmul.f32 %v2562_v45, %v2528_v48  ;;  %v2301_v45 = vmul.f32 %v5674_v60, %v7060_v0 }
 0x21a   : > { %2371 = vperm.xlu1 %3346, %v5895_v44  }
 0x21b   : > { %v2260_v15 = vadd.f32 %v2228_v10, %v2030_v63  ;;  %v7061_v10 = vld [vmem:[#allocation46_spill] sm:$0xff] }
 0x21c   : > { %v2114_v28 = vpop.permute.xlu0 %2113  ;;  %v1259_v36 = vmul.f32 %v7061_v10, %v1099_v20  ;;  %v2792_v20 = vmax.f32 %v2760_v18, 0.0 }
 0x21d   : > { %v2490_v50 = vadd.f32 %v2458_v19, %v2260_v15  ;;  %v2231_v33 = vmul.f32 %v2114_v28, %v2071_v24  ;;  %v2340_v62 = vpop.permute.xlu1 %2339  ;;  %v7062_v24 = vld [vmem:[#allocation19_spill] sm:$0xff] }
 0x21e   : > { %v2460_v57 = vmul.f32 %v2340_v62, %v2300_v16  ;;  %3347 = vset.pattern.permute.xlu1 %v6833_v53  ;;  %v1554_v29 = vmul.f32 %v7062_v24, %v1394_v14  ;;  %v7063_v16 = vld [vmem:[#allocation132_spill] sm:$0xff] }
 0x21f   : > { %v2720_v48 = vadd.f32 %v2688_v27, %v2490_v50  ;;  %v2263_v63 = vadd.f32 %v2231_v33, %v5484_v51  ;;  %2665 = vperm.xlu1 %3347, %v5668_v11   ;;  %v1854_v15 = vmul.f32 %v5212_v17, %v7063_v16  ;;  %v2075_v27 = vmul.f32 %v5749_v40, %v7064_v31  ;;  %v7065_v50 = vld [vmem:[#allocation93_spill] sm:$0xff]  ;;  %v7066_v14 = vld [vmem:[#allocation20_spill] sm:$0xff]  ;;  %v7069_v31 = vld [vmem:[#allocation55_spill] sm:$0xff] }
 0x220   : > { %v2492_v52 = vadd.f32 %v2460_v57, %v5796_v54  ;;  %v2122_v19 = vpop.permute.xlu0 %2121  ;;  %v1291_v51 = vadd.f32 %v1259_v36, %v1061_v55  ;;  %v1784_v11 = vmul.f32 %v7065_v50, %v1624_v13  ;;  %v2547_v17 = vmul.f32 %v5774_v34, %v6962_v61  ;;  %v7067_v55 = vld [vmem:[#allocation109_spill] sm:$0xff]  ;;  %v7068_v61 = vld [vmem:[#allocation64_spill] sm:$0xff] }
 0x221   : > { %v2759_v28 = vadd.f32 %v5952_v4, %v2720_v48  ;;  %v2233_v62 = vmul.f32 %v2122_v19, %v2073_v9  ;;  %v2344_v6 = vpop.permute.xlu1 %2343  ;;  %v2014_v48 = vmul.f32 %v5533_v8, %v1854_v15  ;;  %v2084_v13 = vmul.f32 %v5749_v40, %v7067_v55 }
 0x222   : > { %v2461_v33 = vmul.f32 %v2344_v6, %v2301_v45  ;;  %v1586_v54 = vadd.f32 %v1554_v29, %v1291_v51  ;;  %v2544_v8 = vmul.f32 %v5774_v34, %v6929_v35  ;;  %v7070_v51 = vld [vmem:[#allocation13_spill] sm:$0xff]  ;;  %v5998_v35 = vld [vmem:[%s6332_s5 + $0xe8] sm:$0xff] }
 0x223   : > { %v2791_v0 = vmax.f32 %v2759_v28, 0.0  ;;  %v5970_v10 = vadd.f32 %v2233_v62, %v7066_v14  ;;  %2601 = vperm.xlu1 %3347, %v5895_v44  }
 0x224   : > { %v2493_v9 = vadd.f32 %v2461_v33, %v2263_v63  ;;  %v2130_v57 = vpop.permute.xlu0 %2129  ;;  %v1816_v19 = vadd.f32 %v1784_v11, %v1586_v54  ;;  %v2530_v63 = vmul.f32 %v5774_v34, %v7068_v61  ;;  %v7073_v54 = vld [vmem:[#allocation118_spill] sm:$0xff] }
 0x225   : > { %v2235_v24 = vmul.f32 %v2130_v57, %v2075_v27  ;;  %v5978_v45 = vpack.c.bf16 %v2792_v20, %v2791_v0  ;;  %v7072_v0 = vld [vmem:[#allocation32_spill] sm:$0xff] }
 0x226   : > { %v2723_v18 = vadd.f32 %v5827_v25, %v2493_v9  ;;  %v2638_v36 = vpop.permute.xlu1 %2637  ;;  %v2046_v15 = vadd.f32 %v2014_v48, %v1816_v19  ;;  %v2086_v25 = vmul.f32 %v5749_v40, %v7069_v31  ;;  %v2089_v14 = vmul.f32 %v5749_v40, %v7072_v0  ;;  %v7078_v0 = vld [vmem:[#allocation111_spill] sm:$0xff] }
 0x227   : > { %v5982_v44 = vadd.f32 %v2235_v24, %v5527_v37  ;;  %v2707_v28 = vmul.f32 %v2638_v36, %v2547_v17  ;;  %2605 = vperm.xlu1 %3347, %v5692_v49   ;;  %v2316_v37 = vmul.f32 %v5674_v60, %v7070_v51  ;;  %v2704_v17 = vmul.f32 %v5872_v21, %v2544_v8  ;;  %v7074_v36 = vld [vmem:[#allocation80_spill] sm:$0xff]  ;;  %v6015_v21 = vld [vmem:[%s6332_s5 + $0x60] sm:$0xff] }
 0x228   : > { %v2166_v29 = vpop.permute.xlu0 %2165  ;;  %v2762_v49 = vadd.f32 %v5952_v4, %v2723_v18  ;;  %v2776_v24 = vadd.f32 %v5952_v4, %v5863_v12 }
 0x229   : > { %v2739_v62 = vadd.f32 %v2707_v28, %v2509_v30  ;;  %v2244_v6 = vmul.f32 %v2166_v29, %v2084_v13  ;;  %v7071_v30 = vld [vmem:[#allocation25_spill] sm:$0xff]  ;;  %v2476_v55 = vmul.f32 %v5930_v58, %v2316_v37 }
 0x22a   : > { %v2570_v27 = vpop.permute.xlu1 %2569  ;;  %v2088_v20 = vmul.f32 %v5749_v40, %v7071_v30  ;;  %v2794_v61 = vmax.f32 %v2762_v49, 0.0  ;;  %v2808_v51 = vmax.f32 %v2776_v24, 0.0  ;;  %v7080_v24 = vld [vmem:[#allocation8_spill] sm:$0xff] }
 0x22b   : > { %v2276_v50 = vadd.f32 %v2244_v6, %v2046_v15  ;;  %v2690_v11 = vmul.f32 %v2570_v27, %v2530_v63  ;;  %3348 = vset.pattern.permute.xlu1 %v6875_v23  ;;  %v2778_v31 = vadd.f32 %v5952_v4, %v2739_v62  ;;  %v3401_v62 = vld [vmem:[%s6332_s5 + $0xe0] sm:$0xff] }
 0x22c   : > { %v2174_v33 = vpop.permute.xlu0 %2173  ;;  %2217 = vperm.xlu1 %3348, %v5998_v35  }
 0x22d   : > { %v2506_v9 = vadd.f32 %v7073_v54, %v2276_v50  ;;  %v2722_v57 = vadd.f32 %v2690_v11, %v2492_v52  ;;  %v2246_v48 = vmul.f32 %v2174_v33, %v2086_v25  ;;  %v7075_v52 = vld [vmem:[#allocation62_spill] sm:$0xff]  ;;  %v7076_v25 = vld [vmem:[#allocation24_spill] sm:$0xff] }
 0x22e   : > { %v2090_v12 = vmul.f32 %v5749_v40, %v7075_v52  ;;  %v7077_v11 = vld [vmem:[#allocation56_spill] sm:$0xff] }
 0x22f   : > { %v2736_v13 = vadd.f32 %v2704_v17, %v2506_v9  ;;  %v2761_v18 = vadd.f32 %v5952_v4, %v2722_v57  ;;  %v2278_v19 = vadd.f32 %v2246_v48, %v7074_v36  ;;  %v2182_v28 = vpop.permute.xlu1 %2181  ;;  %v7079_v9 = vld [vmem:[#allocation107_spill] sm:$0xff]  ;;  %v2810_v48 = vmax.f32 %v2778_v31, 0.0  ;;  %v7082_v52 = vld [vmem:[#allocation68_spill] sm:$0xff] }
 0x230   : > { %v2248_v63 = vmul.f32 %v2182_v28, %v2088_v20  ;;  %v2186_v29 = vpop.permute.xlu0 %2185  ;;  %2149 = vperm.xlu1 %3348, %v6015_v21  }
 0x231   : > { %v2793_v58 = vmax.f32 %v2761_v18, 0.0  ;;  %v2508_v8 = vadd.f32 %v2476_v55, %v2278_v19  ;;  %v2249_v15 = vmul.f32 %v2186_v29, %v2089_v14  ;;  %v2775_v6 = vadd.f32 %v5952_v4, %v2736_v13  ;;  %v7081_v19 = vld [vmem:[#allocation136_spill] sm:$0xff] }
 0x232   : > { %v2280_v27 = vadd.f32 %v2248_v63, %v7076_v25  ;;  %v2093_v14 = vmul.f32 %v5749_v40, %v7078_v0  ;;  %v2095_v28 = vmul.f32 %v5749_v40, %v7081_v19 }
 0x233   : > { %v3227_v37 = vpack.c.bf16 %v2794_v61, %v2793_v58  ;;  %v2738_v50 = vadd.f32 %v5809_v47, %v2508_v8  ;;  %v2281_v49 = vadd.f32 %v2249_v15, %v7077_v11  ;;  %v2807_v33 = vmax.f32 %v2775_v6, 0.0  ;;  %v7083_v58 = vld [vmem:[#allocation110_spill] sm:$0xff]  ;;  %v7084_v15 = vld [vmem:[#allocation131_spill] sm:$0xff] }
 0x234   : > { %v2190_v30 = vpop.permute.xlu0 %2189  ;;  %3349 = vset.pattern.permute.xlu1 %v6819_v32  ;;  %v2412_v20 = vpop.permute.xlu1 %2411  ;;  %v2319_v47 = vmul.f32 %v5674_v60, %v7079_v9  ;;  %v2318_v8 = vmul.f32 %v5674_v60, %v7083_v58 }
 0x235   : > { %v2250_v17 = vmul.f32 %v2190_v30, %v2090_v12  ;;  %2443 = vperm.xlu1 %3349, %v3401_v62   ;;  %v3221_v54 = vpack.c.bf16 %v2808_v51, %v2807_v33  ;;  %v2777_v57 = vadd.f32 %v5952_v4, %v2738_v50  ;;  %v2303_v12 = vmul.f32 %v5674_v60, %v7082_v52  ;;  %v3402_v33 = vld [vmem:[%s6332_s5 + $0x68] sm:$0xff] }
 0x236   : > { %v2096_v30 = vmul.f32 %v5749_v40, %v5624_v22  ;;  %v2478_v0 = vmul.f32 %v2412_v20, %v2318_v8 }
 0x237   : > { %v6035_v55 = vadd.f32 %v2250_v17, %v7080_v24  ;;  %3222 = vmatprep.subr.bf16.mxu0 %v3221_v54  ;;  %3253 = vmatprep.subr.bf16.mxu1 %v3221_v54  ;;  %v2809_v13 = vmax.f32 %v2777_v57, 0.0  ;;  %v7086_v17 = vld [vmem:[#allocation16_spill] sm:$0xff]  ;;  %v2081_v57 = vmul.f32 %v5749_v40, %v5545_v38 }
 0x238   : > { %v2202_v18 = vpop.permute.xlu0 %2201  ;;  %3224 = vmatpush3.bf16.xpose.msra.mxu0 %v5978_v45  ;;  %3261 = vmatpush3.bf16.xpose.msra.mxu1 %v5978_v45  ;;  %v2416_v36 = vpop.permute.xlu1 %2415  ;;  %v2510_v22 = vadd.f32 %v2478_v0, %v2280_v27 }
 0x239   : > { %v2253_v61 = vmul.f32 %v2202_v18, %v2093_v14  ;;  %v2479_v63 = vmul.f32 %v2416_v36, %v2319_v47  ;;  %2379 = vperm.xlu1 %3349, %v6015_v21   ;;  %v3225_v29 = vpack.c.bf16 %v2810_v48, %v2809_v13  ;;  %v7085_v14 = vld [vmem:[#allocation30_spill] sm:$0xff]  ;;  %v7088_v13 = vld [vmem:[#allocation149_spill] sm:$0xff] }
 0x23a   : > { %v7087_v48 = vld [vmem:[#allocation90_spill] sm:$0xff] }
 0x23b   : > { %v6047_v6 = vadd.f32 %v2253_v61, %v7084_v15  ;;  %v2511_v31 = vadd.f32 %v2479_v63, %v2281_v49  ;;  %3226 = vmatprep.subr.bf16.mxu0 %v3225_v29  ;;  %3254 = vmatprep.subr.bf16.mxu1 %v3225_v29  ;;  %v2548_v49 = vmul.f32 %v5774_v34, %v7085_v14  ;;  %v7090_v29 = vld [vmem:[#allocation12_spill] sm:$0xff] }
 0x23c   : > { %v2210_v45 = vpop.permute.xlu0 %2209  ;;  %v2352_v25 = vpop.permute.xlu1 %2351  ;;  %v2532_v24 = vmul.f32 %v5774_v34, %v7087_v48  ;;  %v2099_v61 = vmul.f32 %v5749_v40, %v7001_v43  ;;  %v7091_v43 = vld [vmem:[#allocation98_spill] sm:$0xff] }
 0x23d   : > { %v2741_v51 = vadd.f32 %v5841_v1, %v2511_v31  ;;  %v2255_v50 = vmul.f32 %v2210_v45, %v2095_v28  ;;  %v2463_v11 = vmul.f32 %v2352_v25, %v2303_v12  ;;  %2383 = vperm.xlu1 %3349, %v3402_v33   ;;  %v7093_v33 = vld [vmem:[#allocation34_spill] sm:$0xff] }
 0x23f   : > { %v6058_v62 = vadd.f32 %v2255_v50, %v7086_v17  ;;  %v2495_v54 = vadd.f32 %v2463_v11, %v5970_v10  ;;  %v7092_v11 = vld [vmem:[#allocation119_spill] sm:$0xff] }
 0x240   : > { %v2214_v1 = vpop.permute.xlu0 %2213  ;;  %3228 = vmatpush3.bf16.xpose.msra.mxu0 %v3227_v37  ;;  %3262 = vmatpush3.bf16.xpose.msra.mxu1 %v3227_v37  ;;  %v2780_v37 = vadd.f32 %v5952_v4, %v2741_v51  ;;  %v2323_v51 = vmul.f32 %v5674_v60, %v7091_v43 }
 0x241   : > { %v2256_v9 = vmul.f32 %v2214_v1, %v2096_v30  ;;  %3350 = vset.pattern.permute.xlu1 %v6833_v53  ;;  %v2642_v47 = vpop.permute.xlu1 %2641  ;;  %v2091_v30 = vmul.f32 %v5749_v40, %v7093_v33 }
 0x242   : > { %v2708_v20 = vmul.f32 %v2642_v47, %v2548_v49  ;;  %2677 = vperm.xlu1 %3350, %v5998_v35   ;;  %v7089_v35 = vld [vmem:[#allocation94_spill] sm:$0xff]  ;;  %v2812_v15 = vmax.f32 %v2780_v37, 0.0 }
 0x243   : > { %v6068_v18 = vadd.f32 %v2256_v9, %v7088_v13  ;;  %v2533_v63 = vmul.f32 %v5774_v34, %v7089_v35  ;;  %v7096_v13 = vld [vmem:[#allocation103_spill] sm:$0xff] }
 0x244   : > { %v2740_v10 = vadd.f32 %v2708_v20, %v2510_v22  ;;  %v2154_v36 = vpop.permute.xlu0 %2153  ;;  %v7094_v22 = vld [vmem:[#allocation113_spill] sm:$0xff] }
 0x245   : > { %v2241_v19 = vmul.f32 %v2154_v36, %v2081_v57  ;;  %v2578_v28 = vpop.permute.xlu1 %2577  ;;  %v7095_v20 = vld [vmem:[#allocation61_spill] sm:$0xff]  ;;  %v7097_v36 = vld [vmem:[#allocation79_spill] sm:$0xff] }
 0x246   : > { %v2779_v38 = vadd.f32 %v5952_v4, %v2740_v10  ;;  %v2692_v27 = vmul.f32 %v2578_v28, %v2532_v24  ;;  %2609 = vperm.xlu1 %3350, %v6015_v21  }
 0x247   : > { %v6078_v52 = vadd.f32 %v2241_v19, %v7090_v29 }
 0x248   : > { %v2811_v12 = vmax.f32 %v2779_v38, 0.0  ;;  %v2724_v58 = vadd.f32 %v2692_v27, %v5818_v2  ;;  %v2226_v8 = vpop.permute.xlu0 %2225  ;;  %v3404_v38 = vld [vmem:[%s6332_s5 + $0xf8] sm:$0xff]  ;;  %v7098_v27 = vld [vmem:[#allocation63_spill] sm:$0xff] }
 0x249   : > { %v2259_v31 = vmul.f32 %v2226_v8, %v2099_v61  ;;  %v2582_v45 = vpop.permute.xlu1 %2581  ;;  %v2305_v35 = vmul.f32 %v5674_v60, %v7098_v27 }
 0x24a   : > { %v2693_v25 = vmul.f32 %v2582_v45, %v2533_v63  ;;  %3352 = vset.pattern.permute.xlu1 %v6875_v23  ;;  %v3229_v21 = vpack.c.bf16 %v2812_v15, %v2811_v12  ;;  %v2763_v2 = vadd.f32 %v5952_v4, %v2724_v58  ;;  %v7099_v12 = vld [vmem:[#allocation78_spill] sm:$0xff] }
 0x24b   : > { %v6085_v50 = vadd.f32 %v2259_v31, %v5766_v42  ;;  %2221 = vperm.xlu1 %3352, %v7092_v11   ;;  %v3403_v42 = vld [vmem:[%s6332_s5 + $0x70] sm:$0xff]  ;;  %v2304_v58 = vmul.f32 %v5674_v60, %v7099_v12 }
 0x24c   : > { %v2725_v0 = vadd.f32 %v2693_v25, %v2495_v54  ;;  %3230 = vmatprep.subr.bf16.mxu0 %v3229_v21  ;;  %3255 = vmatprep.subr.bf16.mxu1 %v3229_v21  ;;  %v2795_v9 = vmax.f32 %v2763_v2, 0.0  ;;  %v2320_v54 = vmul.f32 %v5674_v60, %v7094_v22  ;;  %v7101_v25 = vld [vmem:[#allocation92_spill] sm:$0xff]  ;;  %v7104_v22 = vld [vmem:[#allocation134_spill] sm:$0xff]  ;;  %v7109_v12 = vld [vmem:[#allocation123_spill] sm:$0xff] }
 0x24d   : > { %v2432_v14 = vpop.permute.xlu0 %2431  ;;  %v2534_v43 = vmul.f32 %v5774_v34, %v7101_v25  ;;  %v7112_v25 = vld [vmem:[#allocation5_spill] sm:$0xff] }
 0x24e   : > { %v2764_v23 = vadd.f32 %v5952_v4, %v2725_v0  ;;  %v2483_v49 = vmul.f32 %v2432_v14, %v2323_v51  ;;  %v2194_v17 = vpop.permute.xlu1 %2193 }
 0x24f   : > { %v2251_v1 = vmul.f32 %v2194_v17, %v2091_v30  ;;  %2157 = vperm.xlu1 %3352, %v3403_v42   ;;  %v7102_v30 = vld [vmem:[#allocation120_spill] sm:$0xff] }
 0x250   : > { %v2796_v47 = vmax.f32 %v2764_v23, 0.0  ;;  %v6096_v57 = vadd.f32 %v2483_v49, %v6047_v6 }
 0x251   : > { %v2283_v48 = vadd.f32 %v2251_v1, %v7095_v20 }
 0x252   : > { %v3231_v24 = vpack.c.bf16 %v2796_v47, %v2795_v9 }
 0x253   : > { %2161 = vperm.xlu1 %3352, %v7096_v13   ;;  %v2420_v10 = vpop.permute.xlu1 %2419  ;;  %v2513_v37 = vadd.f32 %v7097_v36, %v2283_v48  ;;  %v7105_v48 = vld [vmem:[#allocation121_spill] sm:$0xff] }
 0x254   : > { %v2480_v19 = vmul.f32 %v2420_v10, %v2320_v54  ;;  %3232 = vmatpush3.bf16.xpose.msra.mxu0 %v3231_v24  ;;  %3263 = vmatpush3.bf16.xpose.msra.mxu1 %v3231_v24  ;;  %v2077_v54 = vmul.f32 %v5749_v40, %v7104_v22  ;;  %v2830_v22 = vld [vmem:[%s6334_s7 + $0x18] sm:$0xff] }
 0x256   : > { %v2512_v28 = vadd.f32 %v2480_v19, %v6035_v55  ;;  %v7100_v55 = vld [vmem:[#allocation127_spill] sm:$0xff] }
 0x257   : > { %3354 = vset.pattern.permute.xlu1 %v6819_v32  ;;  %v2356_v6 = vpop.permute.xlu1 %2355  ;;  %v2551_v32 = vmul.f32 %v5774_v34, %v7100_v55  ;;  %v7110_v55 = vld [vmem:[#allocation70_spill] sm:$0xff] }
 0x258   : > { %v2742_v61 = vadd.f32 %v5849_v26, %v2512_v28  ;;  %2455 = vperm.xlu1 %3354, %v3404_v38   ;;  %v2464_v31 = vmul.f32 %v2356_v6, %v2304_v58  ;;  %v7108_v6 = vld [vmem:[#allocation43_spill] sm:$0xff] }
 0x25a   : > { %v2781_v21 = vadd.f32 %v5952_v4, %v2742_v61  ;;  %v2496_v2 = vadd.f32 %v2464_v31, %v7102_v30  ;;  %v7111_v31 = vld [vmem:[#allocation71_spill] sm:$0xff] }
 0x25b   : > { %v2360_v63 = vpop.permute.xlu1 %2359 }
 0x25c   : > { %v2465_v29 = vmul.f32 %v2360_v63, %v2305_v35  ;;  %2387 = vperm.xlu1 %3354, %v3403_v42   ;;  %v2813_v49 = vmax.f32 %v2781_v21, 0.0  ;;  %v6139_v35 = vld [vmem:[%s6333_s6 + $0x8] sm:$0xff] }
 0x25d   : > { %3151 = vmatprep.mubr.f32.mxu1 %v6139_v35  ;;  %v7113_v21 = vld [vmem:[#allocation150_spill] sm:$0xff] }
 0x25e   : > { %v2497_v8 = vadd.f32 %v2465_v29, %v5982_v44 }
 0x260   : > { %v2727_v26 = vadd.f32 %v5854_v41, %v2497_v8  ;;  %3355 = vset.pattern.permute.xlu1 %v6833_v53  ;;  %v2654_v15 = vpop.permute.xlu1 %2653  ;;  %v7103_v41 = vld [vmem:[#allocation29_spill] sm:$0xff] }
 0x261   : > { %v2711_v45 = vmul.f32 %v2654_v15, %v2551_v32  ;;  %2681 = vperm.xlu1 %3355, %v7092_v11   ;;  %v2092_v53 = vmul.f32 %v5749_v40, %v7103_v41  ;;  %v2307_v32 = vmul.f32 %v5674_v60, %v7110_v55  ;;  %v7114_v41 = vld [vmem:[#allocation95_spill] sm:$0xff]  ;;  %v7119_v55 = vld [vmem:[#allocation101_spill] sm:$0xff] }
 0x262   : > { %v2766_v14 = vadd.f32 %v5952_v4, %v2727_v26  ;;  %v6148_v26 = vld [vmem:[%s6333_s6] sm:$0xff] }
 0x263   : > { %v2743_v51 = vadd.f32 %v2711_v45, %v2513_v37  ;;  %v7106_v37 = vmov 0   ;;  %3149 = vmatprep.mubr.f32.mxu0 %v6148_v26  ;;  %v2306_v45 = vmul.f32 %v5674_v60, %v7111_v31 }
 0x264   : > { %v2586_v33 = vpop.permute.xlu1 %2585  ;;  %v2798_v20 = vmax.f32 %v2766_v14, 0.0 }
 0x265   : > { %v2782_v44 = vadd.f32 %v5952_v4, %v2743_v51  ;;  %v2694_v0 = vmul.f32 %v2586_v33, %v2534_v43  ;;  %2617 = vperm.xlu1 %3355, %v3403_v42   ;;  %v2553_v43 = vmul.f32 %v5774_v34, %v7112_v25  ;;  %v7121_v25 = vld [vmem:[#allocation130_spill] sm:$0xff] }
 0x267   : > { %v2814_v23 = vmax.f32 %v2782_v44, 0.0  ;;  %v2726_v11 = vadd.f32 %v2694_v0, %v2496_v2 }
 0x269   : > { %v2765_v17 = vadd.f32 %v5952_v4, %v2726_v11  ;;  %2621 = vperm.xlu1 %3355, %v7096_v13   ;;  %v2198_v1 = vpop.permute.xlu1 %2197  ;;  %v3233_v9 = vpack.c.bf16 %v2814_v23, %v2813_v49  ;;  %v7107_v13 = vld [vmem:[#allocation99_spill] sm:$0xff]  ;;  %v2828_v23 = vld [vmem:[%s6334_s7 + $0x8] sm:$0xff]  ;;  %v2827_v11 = vld [vmem:[%s6334_s7] sm:$0xff] }
 0x26a   : > { %v2252_v47 = vmul.f32 %v2198_v1, %v2092_v53  ;;  %v2322_v28 = vmul.f32 %v5674_v60, %v7107_v13  ;;  %v2536_v53 = vmul.f32 %v5774_v34, %v7114_v41  ;;  %2833 = vperm.xlu0 %3357, %v2827_v11  }
 0x26b   : > { %v2797_v42 = vmax.f32 %v2765_v17, 0.0  ;;  %3234 = vmatprep.subr.bf16.mxu0 %v3233_v9  ;;  %3256 = vmatprep.subr.bf16.mxu1 %v3233_v9  ;;  %v7115_v17 = vld [vmem:[#allocation116_spill] sm:$0xff] }
 0x26c   : > { %v2284_v24 = vadd.f32 %v2252_v47, %v7105_v48  ;;  %v2829_v47 = vld [vmem:[%s6334_s7 + $0x10] sm:$0xff] }
 0x26d   : > { %v3235_v10 = vpack.c.bf16 %v2798_v20, %v2797_v42  ;;  %v2138_v36 = vpop.permute.xlu1 %2137  ;;  %3358 = vset.pattern.permute.xlu1 %v7106_v37 }
 0x26e   : > { %v2237_v19 = vmul.f32 %v2138_v36, %v2077_v54  ;;  %2838 = vperm.xlu1 %3358, %v2828_v23   ;;  %v7116_v54 = vld [vmem:[#allocation72_spill] sm:$0xff]  ;;  %2848 = vperm.xlu0 %3357, %v2830_v22  }
 0x26f   : > { %3236 = vmatpush3.bf16.xpose.msra.mxu0 %v3235_v10  ;;  %3264 = vmatpush3.bf16.xpose.msra.mxu1 %v3235_v10  ;;  %v2094_v20 = vmul.f32 %v5749_v40, %v7116_v54 }
 0x270   : > { %v2269_v61 = vadd.f32 %v2237_v19, %v7108_v6 }
 0x272   : > { %v2428_v38 = vpop.permute.xlu1 %2427  ;;  %2843 = vperm.xlu1 %3358, %v2829_v47  }
 0x273   : > { %v2482_v27 = vmul.f32 %v2428_v38, %v2322_v28 }
 0x275   : > { %v2514_v63 = vadd.f32 %v2482_v27, %v2284_v24  ;;  %v7118_v27 = vld [vmem:[#allocation35_spill] sm:$0xff] }
 0x276   : > { %v2364_v29 = vpop.permute.xlu1 %2363 }
 0x277   : > { %v2744_v58 = vadd.f32 %v7109_v12, %v2514_v63  ;;  %v2466_v2 = vmul.f32 %v2364_v29, %v2306_v45  ;;  %v2078_v63 = vmul.f32 %v5749_v40, %v7118_v27 }
 0x279   : > { %v2783_v14 = vadd.f32 %v5952_v4, %v2744_v58  ;;  %v2498_v1 = vadd.f32 %v2466_v2, %v7115_v17  ;;  %v7123_v2 = vld [vmem:[#allocation41_spill] sm:$0xff] }
 0x27a   : > { %v2368_v8 = vpop.permute.xlu1 %2367 }
 0x27b   : > { %v2467_v15 = vmul.f32 %v2368_v8, %v2307_v32  ;;  %v2815_v10 = vmax.f32 %v2783_v14, 0.0  ;;  %v7120_v8 = vld [vmem:[#allocation11_spill] sm:$0xff]  ;;  %v7124_v14 = vld [vmem:[#allocation97_spill] sm:$0xff] }
 0x27d   : > { %v2499_v51 = vadd.f32 %v2467_v15, %v2269_v61  ;;  %v7117_v61 = vld [vmem:[#allocation28_spill] sm:$0xff]  ;;  %v2079_v15 = vmul.f32 %v5749_v40, %v7120_v8 }
 0x27f   : > { %v2729_v33 = vadd.f32 %v7113_v21, %v2499_v51  ;;  %v2662_v30 = vpop.permute.xlu1 %2661  ;;  %v7122_v51 = vld [vmem:[#allocation102_spill] sm:$0xff] }
 0x280   : > { %v2713_v44 = vmul.f32 %v2662_v30, %v2553_v43  ;;  %v2325_v43 = vmul.f32 %v5674_v60, %v7121_v25 }
 0x281   : > { %v2768_v42 = vadd.f32 %v5952_v4, %v2729_v33 }
 0x282   : > { %v2745_v0 = vadd.f32 %v2713_v44, %v6096_v57  ;;  %v2324_v44 = vmul.f32 %v5674_v60, %v7123_v2 }
 0x283   : > { %v2594_v49 = vpop.permute.xlu1 %2593  ;;  %v2800_v28 = vmax.f32 %v2768_v42, 0.0 }
 0x284   : > { %v2784_v57 = vadd.f32 %v5952_v4, %v2745_v0  ;;  %v2696_v9 = vmul.f32 %v2594_v49, %v2536_v53  ;;  %v2436_v53 = vpop.permute.xlu0 %2435  ;;  %v7125_v49 = vld [vmem:[#allocation26_spill] sm:$0xff] }
 0x285   : > { %v2484_v11 = vmul.f32 %v2436_v53, %v2324_v44  ;;  %v2554_v17 = vmul.f32 %v5774_v34, %v7125_v49  ;;  %v7132_v49 = vld [vmem:[#allocation91_spill] sm:$0xff] }
 0x286   : > { %v2816_v48 = vmax.f32 %v2784_v57, 0.0  ;;  %v2728_v24 = vadd.f32 %v2696_v9, %v2498_v1  ;;  %v7126_v1 = vld [vmem:[#allocation75_spill] sm:$0xff] }
 0x287   : > { %v2308_v57 = vmul.f32 %v5674_v60, %v7126_v1  ;;  %v7133_v1 = vld [vmem:[#allocation10_spill] sm:$0xff] }
 0x288   : > { %v2767_v36 = vadd.f32 %v5952_v4, %v2728_v24  ;;  %v2206_v37 = vpop.permute.xlu1 %2205  ;;  %v3237_v19 = vpack.c.bf16 %v2816_v48, %v2815_v10  ;;  %v7128_v24 = vld [vmem:[#allocation88_spill] sm:$0xff] }
 0x289   : > { %v2254_v13 = vmul.f32 %v2206_v37, %v2094_v20  ;;  %v6198_v20 = vld [vmem:[%s6330_s3 + $0x7] ss:$0 sm:$0xff]  ;;  %v2538_v10 = vmul.f32 %v5774_v34, %v7128_v24 }
 0x28a   : > { %v2799_v6 = vmax.f32 %v2767_v36, 0.0  ;;  %3238 = vmatprep.subr.bf16.mxu0 %v3237_v19  ;;  %3257 = vmatprep.subr.bf16.mxu1 %v3237_v19 }
 0x28b   : > { %v2286_v38 = vadd.f32 %v2254_v13, %v7117_v61 }
 0x28c   : > { %v3239_v29 = vpack.c.bf16 %v2800_v28, %v2799_v6  ;;  %v2142_v12 = vpop.permute.xlu1 %2141  ;;  %v2376_v28 = vpop.permute.xlu0 %2375  ;;  %v7129_v6 = vld [vmem:[#allocation45_spill] sm:$0xff] }
 0x28d   : > { %v2238_v58 = vmul.f32 %v2142_v12, %v2078_v63  ;;  %v2516_v22 = vadd.f32 %v2484_v11, %v2286_v38  ;;  %v2539_v61 = vmul.f32 %v5774_v34, %v7129_v6 }
 0x28e   : > { %3240 = vmatpush3.bf16.xpose.msra.mxu0 %v3239_v29  ;;  %3265 = vmatpush3.bf16.xpose.msra.mxu1 %v3239_v29 }
 0x28f   : > { %v2270_v32 = vadd.f32 %v2238_v58, %v7119_v55 }
 0x290   : > { %v2146_v31 = vpop.permute.xlu1 %2145 }
 0x291   : > { %v2239_v45 = vmul.f32 %v2146_v31, %v2079_v15 }
 0x293   : > { %v2271_v21 = vadd.f32 %v2239_v45, %v7122_v51 }
 0x295   : > { %v2440_v33 = vpop.permute.xlu1 %2439 }
 0x296   : > { %v2485_v30 = vmul.f32 %v2440_v33, %v2325_v43 }
 0x298   : > { %v2517_v0 = vadd.f32 %v2485_v30, %v6058_v62  ;;  %v7127_v62 = vld [vmem:[#allocation96_spill] sm:$0xff] }
 0x299   : > { %v2372_v41 = vpop.permute.xlu1 %2371  ;;  %v2309_v42 = vmul.f32 %v6198_v20, %v7127_v62  ;;  %v7130_v30 = vld [vmem:[#allocation40_spill] sm:$0xff]  ;;  %v7135_v62 = vld [vmem:[#allocation143_spill] sm:$0xff] }
 0x29a   : > { %v2747_v23 = vadd.f32 %v7124_v14, %v2517_v0  ;;  %v2468_v47 = vmul.f32 %v2372_v41, %v2308_v57  ;;  %v2326_v2 = vmul.f32 %v6198_v20, %v7130_v30  ;;  %v7131_v41 = vld [vmem:[#allocation104_spill] sm:$0xff]  ;;  %v2311_v57 = vmul.f32 %v6198_v20, %v7133_v1 }
 0x29b   : > { %v2469_v38 = vmul.f32 %v2376_v28, %v2309_v42  ;;  %v2097_v53 = vmul.f32 %v5749_v40, %v7131_v41  ;;  %v3406_v40 = vld [vmem:[%s6330_s3 + $0x6] ss:$0 sm:$0xff]  ;;  %v7139_v41 = vld [vmem:[#allocation146_spill] sm:$0xff] }
 0x29c   : > { %v2786_v36 = vadd.f32 %v5952_v4, %v2747_v23  ;;  %v2500_v60 = vadd.f32 %v2468_v47, %v2270_v32 }
 0x29d   : > { %v2501_v58 = vadd.f32 %v2469_v38, %v2271_v21 }
 0x29e   : > { %v2666_v9 = vpop.permute.xlu1 %2665  ;;  %v2818_v29 = vmax.f32 %v2786_v36, 0.0 }
 0x29f   : > { %v2714_v54 = vmul.f32 %v2666_v9, %v2554_v17  ;;  %v2541_v17 = vmul.f32 %v5774_v34, %v7132_v49  ;;  %v7134_v9 = vld [vmem:[#allocation135_spill] sm:$0xff] }
 0x2a0   : > { %v2327_v47 = vmul.f32 %v6198_v20, %v7134_v9 }
 0x2a1   : > { %v2746_v48 = vadd.f32 %v2714_v54, %v2516_v22  ;;  %v2701_v42 = vmul.f32 %v5914_v56, %v2541_v17  ;;  %v3407_v56 = vld [vmem:[%s6330_s3 + $0x8] ss:$0 sm:$0xff] }
 0x2a2   : > { %v2602_v37 = vpop.permute.xlu1 %2601 }
 0x2a3   : > { %v2785_v19 = vadd.f32 %v5952_v4, %v2746_v48  ;;  %v2698_v13 = vmul.f32 %v2602_v37, %v2538_v10  ;;  %v2448_v48 = vpop.permute.xlu0 %2447  ;;  %v2310_v37 = vmul.f32 %v6198_v20, %v6899_v59 }
 0x2a4   : > { %v2487_v10 = vmul.f32 %v2448_v48, %v2327_v47 }
 0x2a5   : > { %v2817_v27 = vmax.f32 %v2785_v19, 0.0  ;;  %v2730_v63 = vadd.f32 %v2698_v13, %v2500_v60  ;;  %v7136_v60 = vld [vmem:[#allocation142_spill] sm:$0xff] }
 0x2a6   : > { %v2606_v12 = vpop.permute.xlu1 %2605  ;;  %v2557_v19 = vmul.f32 %v5774_v34, %v7136_v60 }
 0x2a7   : > { %v2699_v55 = vmul.f32 %v2606_v12, %v2539_v61  ;;  %v3241_v8 = vpack.c.bf16 %v2818_v29, %v2817_v27  ;;  %v2769_v15 = vadd.f32 %v5952_v4, %v2730_v63  ;;  %v7137_v27 = vld [vmem:[#allocation82_spill] sm:$0xff] }
 0x2a9   : > { %v2731_v31 = vadd.f32 %v2699_v55, %v2501_v58  ;;  %3242 = vmatprep.subr.bf16.mxu0 %v3241_v8  ;;  %3258 = vmatprep.subr.bf16.mxu1 %v3241_v8  ;;  %v2801_v25 = vmax.f32 %v2769_v15, 0.0 }
 0x2ab   : > { %v2770_v32 = vadd.f32 %v5952_v4, %v2731_v31  ;;  %v2218_v45 = vpop.permute.xlu1 %2217 }
 0x2ac   : > { %v2257_v11 = vmul.f32 %v2218_v45, %v2097_v53  ;;  %v2098_v53 = vmul.f32 %v3406_v40, %v7139_v41 }
 0x2ad   : > { %v2802_v43 = vmax.f32 %v2770_v32, 0.0 }
 0x2af   : > { %v3243_v51 = vpack.c.bf16 %v2802_v43, %v2801_v25  ;;  %v2150_v33 = vpop.permute.xlu1 %2149 }
 0x2b1   : > { %3244 = vmatpush3.bf16.xpose.msra.mxu0 %v3243_v51  ;;  %3266 = vmatpush3.bf16.xpose.msra.mxu1 %v3243_v51 }
 0x2b4   : > { %v2444_v21 = vpop.permute.xlu1 %2443 }
 0x2b5   : > { %v2486_v44 = vmul.f32 %v2444_v21, %v2326_v2 }
 0x2b7   : > { %v2518_v0 = vadd.f32 %v2486_v44, %v6068_v18  ;;  %v2289_v18 = vadd.f32 %v2257_v11, %v7135_v62  ;;  %v7138_v44 = vld [vmem:[#allocation48_spill] sm:$0xff]  ;;  %v7140_v11 = vld [vmem:[#allocation129_spill] sm:$0xff] }
 0x2b8   : > { %v2380_v14 = vpop.permute.xlu1 %2379  ;;  %v2559_v49 = vmul.f32 %v3407_v56, %v7140_v11  ;;  %v7142_v62 = vld [vmem:[#allocation36_spill] sm:$0xff] }
 0x2b9   : > { %v2748_v23 = vadd.f32 %v5904_v7, %v2518_v0  ;;  %v2080_v7 = vmul.f32 %v3406_v40, %v5453_v39  ;;  %v2470_v6 = vmul.f32 %v2380_v14, %v2310_v37  ;;  %v2519_v61 = vadd.f32 %v2487_v10, %v2289_v18 }
 0x2ba   : > { %v2329_v0 = vmul.f32 %v6198_v20, %v7138_v44  ;;  %v2826_v44 = vld [vmem:[%s6333_s6 + $0x18] sm:$0xff] }
 0x2bb   : > { %v2240_v36 = vmul.f32 %v2150_v33, %v2080_v7  ;;  %v2787_v29 = vadd.f32 %v5952_v4, %v2748_v23  ;;  %v2082_v7 = vmul.f32 %v3406_v40, %v5438_v3 }
 0x2bc   : > { %v2384_v22 = vpop.permute.xlu1 %2383 }
 0x2bd   : > { %v2471_v54 = vmul.f32 %v2384_v22, %v2311_v57  ;;  %v2272_v39 = vadd.f32 %v2240_v36, %v7137_v27  ;;  %v2819_v31 = vmax.f32 %v2787_v29, 0.0  ;;  %v7141_v57 = vld [vmem:[#allocation7_spill] sm:$0xff] }
 0x2be   : > { %v2328_v9 = vmul.f32 %v6198_v20, %v7141_v57 }
 0x2bf   : > { %v2503_v24 = vadd.f32 %v2471_v54, %v6078_v52  ;;  %v2540_v52 = vmul.f32 %v3407_v56, %v5496_v46  ;;  %v2502_v12 = vadd.f32 %v2470_v6, %v2272_v39  ;;  %v2452_v46 = vpop.permute.xlu0 %2451  ;;  %v7146_v39 = vld [vmem:[#allocation69_spill] sm:$0xff] }
 0x2c0   : > { %v2488_v36 = vmul.f32 %v2452_v46, %v2328_v9 }
 0x2c1   : > { %v2733_v13 = vadd.f32 %v2701_v42, %v2503_v24  ;;  %v2678_v28 = vpop.permute.xlu1 %2677  ;;  %v7143_v42 = vld [vmem:[#allocation138_spill] sm:$0xff] }
 0x2c2   : > { %v2717_v38 = vmul.f32 %v2678_v28, %v2557_v19  ;;  %v2083_v48 = vmul.f32 %v3406_v40, %v7143_v42  ;;  %v7144_v24 = vld [vmem:[#allocation14_spill] sm:$0xff]  ;;  %v2312_v19 = vmul.f32 %v6198_v20, %v6904_v5  ;;  %v2542_v40 = vmul.f32 %v3407_v56, %v7063_v16 }
 0x2c3   : > { %v2772_v55 = vadd.f32 %v5952_v4, %v2733_v13  ;;  %v2392_v21 = vpop.permute.xlu0 %2391  ;;  %v2558_v10 = vmul.f32 %v3407_v56, %v7144_v24 }
 0x2c4   : > { %v2749_v63 = vadd.f32 %v2717_v38, %v2519_v61  ;;  %v7145_v38 = vld [vmem:[#allocation44_spill] sm:$0xff] }
 0x2c5   : > { %v2610_v59 = vpop.permute.xlu1 %2609  ;;  %v2804_v43 = vmax.f32 %v2772_v55, 0.0  ;;  %v2313_v27 = vmul.f32 %v6198_v20, %v7145_v38 }
 0x2c6   : > { %v2788_v34 = vadd.f32 %v5952_v4, %v2749_v63  ;;  %v2700_v58 = vmul.f32 %v2610_v59, %v2540_v52  ;;  %v7147_v59 = vld [vmem:[#allocation51_spill] sm:$0xff] }
 0x2c7   : > { %v2686_v1 = vpop.permute.xlu0 %2685  ;;  %v2473_v55 = vmul.f32 %v2392_v21, %v2313_v27 }
 0x2c8   : > { %v2820_v8 = vmax.f32 %v2788_v34, 0.0  ;;  %v2732_v15 = vadd.f32 %v2700_v58, %v2502_v12  ;;  %v2719_v54 = vmul.f32 %v2686_v1, %v2559_v49 }
 0x2ca   : > { %v2771_v32 = vadd.f32 %v5952_v4, %v2732_v15  ;;  %v2222_v45 = vpop.permute.xlu1 %2221  ;;  %v3245_v25 = vpack.c.bf16 %v2820_v8, %v2819_v31  ;;  %v7148_v31 = vld [vmem:[#allocation18_spill] sm:$0xff] }
 0x2cb   : > { %v2258_v17 = vmul.f32 %v2222_v45, %v2098_v53 }
 0x2cc   : > { %v2803_v51 = vmax.f32 %v2771_v32, 0.0  ;;  %3246 = vmatprep.subr.bf16.mxu0 %v3245_v25  ;;  %3259 = vmatprep.subr.bf16.mxu1 %v3245_v25  ;;  %v2543_v32 = vmul.f32 %v3407_v56, %v7148_v31  ;;  %v2825_v56 = vld [vmem:[%s6333_s6 + $0x10] sm:$0xff] }
 0x2cd   : > { %v2290_v18 = vadd.f32 %v2258_v17, %v7142_v62 }
 0x2ce   : > { %v3247_v33 = vpack.c.bf16 %v2804_v43, %v2803_v51  ;;  %v2158_v30 = vpop.permute.xlu1 %2157 }
 0x2cf   : > { %v2242_v37 = vmul.f32 %v2158_v30, %v2082_v7 }
 0x2d0   : > { %3248 = vmatpush3.bf16.xpose.msra.mxu0 %v3247_v33  ;;  %3267 = vmatpush3.bf16.xpose.msra.mxu1 %v3247_v33 }
 0x2d1   : > { %v2274_v3 = vadd.f32 %v2242_v37, %v7146_v39 }
 0x2d2   : > { %v2162_v2 = vpop.permute.xlu1 %2161 }
 0x2d3   : > { %v2243_v28 = vmul.f32 %v2162_v2, %v2083_v48 }
 0x2d5   : > { %v2275_v12 = vadd.f32 %v2243_v28, %v7147_v59 }
 0x2d7   : > { %v2456_v14 = vpop.permute.xlu1 %2455  ;;  %v2505_v25 = vadd.f32 %v2473_v55, %v2275_v12 }
 0x2d8   : > { %v2489_v23 = vmul.f32 %v2456_v14, %v2329_v0 }
 0x2da   : > { %v2521_v47 = vadd.f32 %v2489_v23, %v6085_v50  ;;  %v2520_v50 = vadd.f32 %v2488_v36, %v2290_v18 }
 0x2db   : > { %v2388_v22 = vpop.permute.xlu1 %2387 }
 0x2dc   : > { %v2751_v60 = vadd.f32 %v2719_v54, %v2521_v47  ;;  %v2472_v6 = vmul.f32 %v2388_v22, %v2312_v19 }
 0x2de   : > { %v2790_v52 = vadd.f32 %v5952_v4, %v2751_v60  ;;  %v2504_v34 = vadd.f32 %v2472_v6, %v2274_v3 }
 0x2e0   : > { %v2682_v13 = vpop.permute.xlu1 %2681  ;;  %v2822_v20 = vmax.f32 %v2790_v52, 0.0 }
 0x2e1   : > { %v2718_v61 = vmul.f32 %v2682_v13, %v2558_v10 }
 0x2e3   : > { %v2750_v63 = vadd.f32 %v2718_v61, %v2520_v50 }
 0x2e4   : > { %v2618_v29 = vpop.permute.xlu1 %2617 }
 0x2e5   : > { %v2789_v5 = vadd.f32 %v5952_v4, %v2750_v63  ;;  %v2702_v58 = vmul.f32 %v2618_v29, %v2542_v40 }
 0x2e7   : > { %v2821_v8 = vmax.f32 %v2789_v5, 0.0  ;;  %v2734_v15 = vadd.f32 %v2702_v58, %v2504_v34 }
 0x2e8   : > { %v2622_v45 = vpop.permute.xlu1 %2621 }
 0x2e9   : > { %v2703_v43 = vmul.f32 %v2622_v45, %v2543_v32  ;;  %v3249_v51 = vpack.c.bf16 %v2822_v20, %v2821_v8  ;;  %v2773_v16 = vadd.f32 %v5952_v4, %v2734_v15  ;;  %v2834_v0 = vpop.permute.xlu0 %2833 }
 0x2eb   : > { %v2735_v46 = vadd.f32 %v2703_v43, %v2505_v25  ;;  %3250 = vmatprep.subr.bf16.mxu0 %v3249_v51  ;;  %3260 = vmatprep.subr.bf16.mxu1 %v3249_v51  ;;  %v2805_v30 = vmax.f32 %v2773_v16, 0.0 }
 0x2ed   : > { %v2774_v33 = vadd.f32 %v5952_v4, %v2735_v46  ;;  %v2839_v4 = vpop.permute.xlu1 %2838  ;;  %v2849_v22 = vpop.permute.xlu0 %2848 }
 0x2ef   : > { %v2806_v2 = vmax.f32 %v2774_v33, 0.0 }
 0x2f1   : > { %v3251_v21 = vpack.c.bf16 %v2806_v2, %v2805_v30  ;;  %v2844_v49 = vpop.permute.xlu1 %2843 }
 0x2f3   : > { %3252 = vmatpush3.bf16.xpose.msra.mxu0 %v3251_v21  ;;  %3268 = vmatpush3.bf16.xpose.msra.mxu1 %v3251_v21 }
 0x2fa   : > { %3152 = vmatmul.mubr.f32.vlgmr.msra.gmra.mrb[0].mxu1 %v6139_v35  ;;  %3150 = vmatmul.mubr.f32.vlgmr.msra.gmra.mrb[32].mxu0 %v6148_v26 }
 0x2fb   : > { %3153 = vmatprep.mubr.f32.mxu1 %v2825_v56 }
 0x2fe   : > { %3154 = vmatmul.mubr.f32.gmra.mrb[2].mxu1 %v2825_v56 }
 0x2ff   : > { %3155 = vmatprep.mubr.f32.mxu1 %v2826_v44 }
 0x302   : > { %3156 = vmatmul.mubr.f32.gmra.mrb[4].mxu1 %v2826_v44 }
 0x3cd   : > { %v2923_v41 = vpop.f32.mrb[0].mxu1  ;;  %v2917_v53 = vpop.f32.mrb[32].mxu0 }
 0x3ce   : > { %v2924_v14 = vadd.f32 %v2923_v41, %v2839_v4  ;;  %v2925_v35 = vpop.f32.mrb[1].mxu1  ;;  %v2918_v23 = vadd.f32 %v2917_v53, %v2834_v0  ;;  %v2919_v26 = vpop.f32.mrb[33].mxu0 }
 0x3cf   : > { %v2926_v11 = vadd.f32 %v2925_v35, %v2839_v4  ;;  %v2920_v17 = vadd.f32 %v2919_v26, %v2834_v0 }
 0x3d0   : > { %2942 = vst [vmem:[%s298_s12 + $0x10] sm:$0xff] %v2924_v14  ;;  %2940 = vst [vmem:[%s298_s12] sm:$0xff] %v2918_v23 }
 0x3d1   : > { %2943 = vst [vmem:[%s298_s12 + $0x18] sm:$0xff] %v2926_v11  ;;  %v2929_v1 = vpop.f32.mrb[2].mxu1  ;;  %2941 = vst [vmem:[%s298_s12 + $0x8] sm:$0xff] %v2920_v17 }
 0x3d2   : > { %v2930_v57 = vadd.f32 %v2929_v1, %v2844_v49  ;;  %v2931_v9 = vpop.f32.mrb[3].mxu1 }
 0x3d3   : > { %v2932_v47 = vadd.f32 %v2931_v9, %v2844_v49 }
 0x3d4   : > { %2944 = vst [vmem:[%s298_s12 + $0x20] sm:$0xff] %v2930_v57 }
 0x3d5   : > { %2945 = vst [vmem:[%s298_s12 + $0x28] sm:$0xff] %v2932_v47  ;;  %v2935_v54 = vpop.f32.mrb[4].mxu1 }
 0x3d6   : > { %v2936_v62 = vadd.f32 %v2935_v54, %v2849_v22  ;;  %v2937_v18 = vpop.f32.mrb[5].mxu1 }
 0x3d7   : > { %v2938_v7 = vadd.f32 %v2937_v18, %v2849_v22 }
 0x3d8   : > { %2946 = vst [vmem:[%s298_s12 + $0x30] sm:$0xff] %v2936_v62 }
 0x3d9   : > { %2947 = vst [vmem:[%s298_s12 + $0x38] sm:$0xff] %v2938_v7 }
 0x3da   : > { %3421 = shalt.err (!%p3418_p3)
}
 0x3db   : > { %s3422_s25 = scalar_lea.hbm %s6280_s24, 1024  ;;  %s3426_s12 = scalar_lea.hbm %s6335_s8, 2048 }
 0x3dc   : > { %p3423_p4 = scmp.ne.s32.totalorder %s6280_s24, %s3422_s25  ;;  %p3427_p9 = scmp.lt.u32.totalorder %s6280_s24, %s6335_s8 }
 0x3dd   : > { %p3428_p10 = scmp.lt.u32.totalorder %s3426_s12, %s3422_s25  ;;  %p3430_p12 = scmp.lt.u32.totalorder %s3422_s25, %s6280_s24 }
 0x3de   : > { %p3424_p7 = pnand %p3423_p4, %p3566_p5 }
 0x3df   : > { %p3429_p11 = por %p3428_p10, %p3427_p9 }
 0x3e0   : > { %p3425_p8 = pneg %p3424_p7 }
 0x3e1   : > { %p3431_p13 = por %p3430_p12, %p3429_p11 }
 0x3e3   : > { %p3432_p0 = pnand %p3431_p13, %p3425_p8 }
 0x3e5   : > { %3435 = shalt.err (!%p3432_p0)
}
 0x3e6   : > { %s3481_s19 = smov 256   ;;  %s3482_s20 = smov 16  }
 0x3e7   : > { %3269 = dma.vmem_to_hbm [thread:$0]  (%p3566_p5), %s6282_s17, 1024, %s6280_s24, %s6286_s9, %s3481_s19, %s3481_s19, %s3482_s20  }
 0x3e8 PF: > { %p3275_p1 = scmp.ge.s32.totalorder %s3470_s30, 2  ;;  %s2977_s21 = sand.u32 1, %s3458_s27  }
 0x3e9   : > { %s2978_s22 = scalar_lea.sflag [#allocation3], %s2977_s21 }
 0x3ea   : > { %p3272_p2 = pnand %p3275_p1, %p3570_p6 }
 0x3ec   : > { %3453 = dma.done.wait (!%p3272_p2), %s2978_s22, 1024  }
 0x3ed   : > { %3455 = vsyncadd (!%p3272_p2), %s2978_s22, 4294966272  ;;  %p18_p3 = scmp.ge.s32.totalorder %s3553_s11, 4   ;;  %s7149_s27 = smov %s3462_s28 }
 0x3ee   : > { %s7150_s28 = smov %s3466_s29  ;;  %s7151_s29 = smov %s3564_s14 }
 0x3ef   : > { %s7152_s30 = smov %s3553_s11  ;;  %20 = sbr.rel (!%p18_p3) target bundleno = 3 (0x3), region = 87 }
 0x3f6   :  { %2983 = vsyncpa [#allocation3], 1 }
 0x3f7   :  { %2985 = vsyncpa [#allocation3 + $0x1], 1 }

</bundles_post_ra>
